<compile_context>
chip_gen: v6e
topology: v6e:2x2x1
jax: 0.10.0
libtpu: 0.0.40
codegen_flags: <defaults>
</compile_context>

<pallas_src>
import numpy as np
import jax
import jax.numpy as jnp
from jax import lax
from jax.experimental import pallas as pl
from jax.experimental.pallas import tpu as pltpu

N_LEVELS = 4
_INV_SQRT2 = 0.7071067811865476


def _mosaic_params(sems, approx_bytes):
    kwargs = {}
    # only raise the scoped-VMEM limit when the working set actually needs it
    if approx_bytes > (12 << 20):
        kwargs["vmem_limit_bytes"] = int(min(100 << 20,
                                             2 * approx_bytes + (16 << 20)))
    return pltpu.CompilerParams(dimension_semantics=sems, **kwargs)


# ------------------- per-level fused kernel (pool + conv + up) --------------

def _make_level_kernel(k, H, W, cc):
    """maxpool_k + depthwise 3x3 conv + nearest-upsample_k fused in one pass."""
    rounds = k.bit_length() - 1          # k == 2 ** rounds (k = 1 -> no pooling)

    def kernel(x_ref, w_ref, b_ref, o_ref, pad_ref):
        # x_ref: (1, cc, H, W)   w_ref: (cc, 3, 3)   b_ref: (cc, 1, 1)
        # o_ref: (1, cc, H, W)   pad_ref: (cc, H+2k, W+2k) f32 scratch
        pad_ref[...] = jnp.zeros_like(pad_ref)     # zero frame == conv zero-pad
        t = x_ref[0].astype(jnp.float32)           # (cc, H, W)

        if rounds:
            # Replicated window-max: after the rounds, t[c,h,w] holds the max of
            # x over the aligned k x k block containing (h, w).  Each doubling
            # round uses only static slices of the zero-padded scratch (the pad
            # values are never selected by the masks), jnp.where and jnp.maximum.
            col = lax.broadcasted_iota(jnp.int32, (cc, H, W), 2)
            row = lax.broadcasted_iota(jnp.int32, (cc, H, W), 1)
            for axis, pos in ((2, col), (1, row)):
                for r in range(rounds):
                    s = 1 << r
                    pad_ref[:, k:k + H, k:k + W] = t
                    if axis == 2:       # along W (lanes)
                        plus = pad_ref[:, k:k + H, k + s:k + s + W]
                        minus = pad_ref[:, k:k + H, k - s:k - s + W]
                    else:               # along H (sublanes)
                        plus = pad_ref[:, k + s:k + s + H, k:k + W]
                        minus = pad_ref[:, k - s:k - s + H, k:k + W]
                    t = jnp.maximum(t, jnp.where((pos & s) == 0, plus, minus))

        # Depthwise 3x3 conv on the coarse grid, evaluated at full resolution on
        # the block-replicated map with taps at +-k: the result is already the
        # nearest-upsampled conv output (zero frame of width k == coarse pad 1).
        pad_ref[:, k:k + H, k:k + W] = t
        w = w_ref[...].astype(jnp.float32)          # (cc, 3, 3)
        acc = jnp.zeros((cc, H, W), jnp.float32)
        for dy in range(3):
            for dx in range(3):
                tap = w[:, dy:dy + 1, dx:dx + 1]    # (cc, 1, 1)
                win = pad_ref[:, dy * k:dy * k + H, dx * k:dx * k + W]
                acc = acc + win * tap
        acc = acc + b_ref[...].astype(jnp.float32)  # bias hoisted out of taps
        o_ref[0] = acc.astype(o_ref.dtype)

    return kernel


def _level_forward(x, w, b, level):
    # x: (B, C, H, W); the BlockSpec selects this level's channel chunk directly
    # from the full tensor (no XLA slice copies).
    B, C, H, W = x.shape
    cc = w.shape[0]
    k = 1 << level
    kernel = _make_level_kernel(k, H, W, cc)
    approx = 10 * cc * H * W * x.dtype.itemsize
    return pl.pallas_call(
        kernel,
        out_shape=jax.ShapeDtypeStruct((B, cc, H, W), x.dtype),
        grid=(B,),
        in_specs=[
            pl.BlockSpec((1, cc, H, W), lambda bi, lvl=level: (bi, lvl, 0, 0)),
            pl.BlockSpec((cc, 3, 3), lambda bi: (0, 0, 0)),
            pl.BlockSpec((cc, 1, 1), lambda bi: (0, 0, 0)),
        ],
        out_specs=pl.BlockSpec((1, cc, H, W), lambda bi: (bi, 0, 0, 0)),
        scratch_shapes=[pltpu.VMEM((cc, H + 2 * k, W + 2 * k), jnp.float32)],
        compiler_params=_mosaic_params(("parallel",), approx),
    )(x, w, b)


# --------------- fused concat + 1x1 aggregation + GELU + gating -------------

def _make_aggr_kernel(n_levels, cc):
    def kernel(*refs):
        # refs = (x, s_0..s_{L-1}, w, b, out)
        x_ref = refs[0]
        s_refs = refs[1:1 + n_levels]
        w_ref, b_ref, o_ref = refs[-3], refs[-2], refs[-1]
        y = None
        for i, s_ref in enumerate(s_refs):
            wi = w_ref[:, i * cc:(i + 1) * cc].astype(jnp.float32)   # (C, cc)
            si = s_ref[0].astype(jnp.float32)                        # (cc, P)
            d = jnp.dot(wi, si, preferred_element_type=jnp.float32)  # (C, P)
            y = d if y is None else y + d
        y = y + b_ref[...].astype(jnp.float32)                       # (C, 1)
        # exact (erf-based) GELU -- matches torch.nn.GELU() default
        g = 0.5 * y * (1.0 + lax.erf(y * _INV_SQRT2))
        o_ref[0] = (g * x_ref[0].astype(jnp.float32)).astype(o_ref.dtype)
    return kernel


def _pick_pixel_tile(hw, target=2048):
    if hw <= target:
        return hw
    for t in range(target, 127, -1):            # prefer 128-multiples (lane-dense)
        if hw % t == 0 and t % 128 == 0:
            return t
    for t in range(target, 0, -1):
        if hw % t == 0:
            return t
    return hw


def _aggr_forward(x_flat, s_flats, w, b):
    # x_flat: (B, C, H*W); s_flats: list of (B, cc, H*W); w: (C, C); b: (C, 1)
    B, C, HW = x_flat.shape
    cc = s_flats[0].shape[1]
    P = _pick_pixel_tile(HW)
    kernel = _make_aggr_kernel(len(s_flats), cc)
    approx = 6 * (2 * C + len(s_flats) * cc) * P * x_flat.dtype.itemsize
    return pl.pallas_call(
        kernel,
        out_shape=jax.ShapeDtypeStruct((B, C, HW), x_flat.dtype),
        grid=(B, HW // P),
        in_specs=(
            [pl.BlockSpec((1, C, P), lambda bi, pi: (bi, 0, pi))]
            + [pl.BlockSpec((1, cc, P), lambda bi, pi: (bi, 0, pi))
               for _ in s_flats]
            + [pl.BlockSpec((C, C), lambda bi, pi: (0, 0)),
               pl.BlockSpec((C, 1), lambda bi, pi: (0, 0))]
        ),
        out_specs=pl.BlockSpec((1, C, P), lambda bi, pi: (bi, 0, pi)),
        compiler_params=_mosaic_params(("parallel", "parallel"), approx),
    )(x_flat, *s_flats, w, b)


# ------------------------------ model glue ----------------------------------

def init_params(key, dim, n_levels=N_LEVELS):
    cc = dim // n_levels
    keys = jax.random.split(key, 2 * n_levels + 2)
    params = {"mfr2_w": [], "mfr2_b": []}
    for i in range(n_levels):
        params["mfr2_w"].append(
            0.2 * jax.random.normal(keys[2 * i], (cc, 3, 3), jnp.float32))
        params["mfr2_b"].append(
            0.1 * jax.random.normal(keys[2 * i + 1], (cc, 1, 1), jnp.float32))
    params["aggr_w"] = 0.2 * jax.random.normal(keys[-2], (dim, dim), jnp.float32)
    params["aggr_b"] = 0.1 * jax.random.normal(keys[-1], (dim,), jnp.float32)
    # NOTE: mfr1 convs of the PyTorch module are dead code in forward.
    return params


def dafm_forward(x, params, n_levels=N_LEVELS):
    B, C, H, W = x.shape
    cc = C // n_levels
    k_max = 1 << (n_levels - 1)
    assert C % n_levels == 0, "dim must be divisible by n_levels"
    assert H % k_max == 0 and W % k_max == 0, (
        "H and W must be divisible by 2**(n_levels-1); adaptive_max_pool2d on "
        "non-divisible sizes is not supported by this kernel")
    s_list = [
        _level_forward(x, params["mfr2_w"][i], params["mfr2_b"][i], i)
        for i in range(n_levels)
    ]
    x_flat = x.reshape(B, C, H * W)                     # free reshape, NCHW kept
    s_flats = [s.reshape(B, cc, H * W) for s in s_list]
    y = _aggr_forward(x_flat, s_flats, params["aggr_w"],
                      params["aggr_b"].reshape(C, 1))
    return y.reshape(B, C, H, W)


# ------------------------- pure-JAX reference (for checking) ----------------

def ref_forward(x, params, n_levels=N_LEVELS):
    B, C, H, W = x.shape
    cc = C // n_levels
    outs = []
    for i in range(n_levels):
        xi = x[:, i * cc:(i + 1) * cc]
        if i == 0:
            t = xi
        else:
            k = 2 ** i
            t = xi.reshape(B, cc, H // k, k, W // k, k).max(axis=(3, 5))
        w = params["mfr2_w"][i][:, None]                 # (cc, 1, 3, 3)
        t = lax.conv_general_dilated(
            t, w, window_strides=(1, 1), padding=((1, 1), (1, 1)),
            feature_group_count=cc,
            dimension_numbers=("NCHW", "OIHW", "NCHW"),
            precision=lax.Precision.HIGHEST)
        t = t + params["mfr2_b"][i].reshape(1, cc, 1, 1)
        if i > 0:
            k = 2 ** i
            t = jnp.repeat(jnp.repeat(t, k, axis=2), k, axis=3)
        outs.append(t)
    cat = jnp.concatenate(outs, axis=1)
    y = jnp.einsum("bchw,oc->bohw", cat, params["aggr_w"],
                   precision=lax.Precision.HIGHEST)
    y = y + params["aggr_b"].reshape(1, C, 1, 1)
    g = 0.5 * y * (1.0 + lax.erf(y * _INV_SQRT2))
    return g * x


# --------------------------------- main --------------------------------------

if __name__ == "__main__":
    key = jax.random.PRNGKey(0)
    kx, kp = jax.random.split(key)
    B, C, H, W = 2, 16, 16, 16            # dim=16, n_levels=4 -> chunk_dim=4
    x = jax.random.normal(kx, (B, C, H, W), jnp.float32)
    params = init_params(kp, C)

    fwd = jax.jit(dafm_forward)
    out = jax.block_until_ready(fwd(x, params))
    ref = jax.block_until_ready(ref_forward(x, params))

    assert out.shape == (B, C, H, W)
    np.testing.assert_allclose(np.asarray(out), np.asarray(ref),
                               atol=2e-3, rtol=2e-3)
    print("KERNEL_OK")
</pallas_src>

<mosaic_0001>
module attributes {stable_mosaic.version = 11 : i64} {
  func.func @kernel(%arg0: i32, %arg1: memref<1x4x16x16xf32, #tpu.memory_space<vmem>>, %arg2: memref<4x3x3xf32, #tpu.memory_space<vmem>>, %arg3: memref<4x1x1xf32, #tpu.memory_space<vmem>>, %arg4: memref<1x4x16x16xf32, #tpu.memory_space<vmem>>, %arg5: memref<4x32x32xf32, #tpu.memory_space<vmem>>) attributes {dimension_semantics = [#tpu.dimension_semantics<parallel>], iteration_bounds = array<i64: 2>, scalar_prefetch = 0 : i64, scratch_operands = 1 : i64, tpu.core_type = #tpu.core_type<tc>, window_params = [{transform_indices = @transform_0, window_bounds = array<i64: 1, 4, 16, 16>}, {pipeline_mode = #tpu.pipeline_mode<synchronous>, transform_indices = @transform_1, window_bounds = array<i64: 4, 3, 3>}, {pipeline_mode = #tpu.pipeline_mode<synchronous>, transform_indices = @transform_2, window_bounds = array<i64: 4, 1, 1>}, {transform_indices = @transform_3, window_bounds = array<i64: 1, 4, 16, 16>}]} {
    %cst = arith.constant 0.000000e+00 : f32
    %0 = vector.broadcast %cst : f32 to vector<4x32x32xf32>
    %c0 = arith.constant 0 : index
    %c0_0 = arith.constant 0 : index
    %c0_1 = arith.constant 0 : index
    %1 = vector.load %arg5[%c0, %c0_0, %c0_1] : memref<4x32x32xf32, #tpu.memory_space<vmem>>, vector<4x32x32xf32>
    tpu.vector_store %arg5[%c0, %c0_0, %c0_1], %0 {strides = array<i32>} : memref<4x32x32xf32, #tpu.memory_space<vmem>>, vector<4x32x32xf32>,
    %c0_2 = arith.constant 0 : index
    %c0_3 = arith.constant 0 : index
    %c0_4 = arith.constant 0 : index
    %c0_5 = arith.constant 0 : index
    %2 = vector.load %arg1[%c0_2, %c0_3, %c0_4, %c0_5] : memref<1x4x16x16xf32, #tpu.memory_space<vmem>>, vector<1x4x16x16xf32>
    %3 = vector.shape_cast %2 : vector<1x4x16x16xf32> to vector<4x16x16xf32>
    %4 = tpu.iota {dimensions = array<i32: 2>} : vector<4x16x16xi32>
    %5 = tpu.iota {dimensions = array<i32: 1>} : vector<4x16x16xi32>
    %c0_6 = arith.constant 0 : index
    %c8 = arith.constant 8 : index
    %c8_7 = arith.constant 8 : index
    %6 = vector.load %arg5[%c0_6, %c8, %c8_7] : memref<4x32x32xf32, #tpu.memory_space<vmem>>, vector<4x16x16xf32>
    tpu.vector_store %arg5[%c0_6, %c8, %c8_7], %3 {strides = array<i32>} : memref<4x32x32xf32, #tpu.memory_space<vmem>>, vector<4x16x16xf32>,
    %c0_8 = arith.constant 0 : index
    %c8_9 = arith.constant 8 : index
    %c9 = arith.constant 9 : index
    %7 = vector.load %arg5[%c0_8, %c8_9, %c9] : memref<4x32x32xf32, #tpu.memory_space<vmem>>, vector<4x16x16xf32>
    %c0_10 = arith.constant 0 : index
    %c8_11 = arith.constant 8 : index
    %c7 = arith.constant 7 : index
    %8 = vector.load %arg5[%c0_10, %c8_11, %c7] : memref<4x32x32xf32, #tpu.memory_space<vmem>>, vector<4x16x16xf32>
    %c1_i32 = arith.constant 1 : i32
    %9 = vector.broadcast %c1_i32 : i32 to vector<4x16x16xi32>
    %10 = arith.andi %4, %9 : vector<4x16x16xi32>
    %c0_i32 = arith.constant 0 : i32
    %11 = vector.broadcast %c0_i32 : i32 to vector<4x16x16xi32>
    %12 = arith.cmpi eq, %10, %11 : vector<4x16x16xi32>
    %13 = arith.select %12, %7, %8 : vector<4x16x16xi1>, vector<4x16x16xf32>
    %14 = arith.maximumf %3, %13 : vector<4x16x16xf32>
    %c0_12 = arith.constant 0 : index
    %c8_13 = arith.constant 8 : index
    %c8_14 = arith.constant 8 : index
    %15 = vector.load %arg5[%c0_12, %c8_13, %c8_14] : memref<4x32x32xf32, #tpu.memory_space<vmem>>, vector<4x16x16xf32>
    tpu.vector_store %arg5[%c0_12, %c8_13, %c8_14], %14 {strides = array<i32>} : memref<4x32x32xf32, #tpu.memory_space<vmem>>, vector<4x16x16xf32>,
    %c0_15 = arith.constant 0 : index
    %c8_16 = arith.constant 8 : index
    %c10 = arith.constant 10 : index
    %16 = vector.load %arg5[%c0_15, %c8_16, %c10] : memref<4x32x32xf32, #tpu.memory_space<vmem>>, vector<4x16x16xf32>
    %c0_17 = arith.constant 0 : index
    %c8_18 = arith.constant 8 : index
    %c6 = arith.constant 6 : index
    %17 = vector.load %arg5[%c0_17, %c8_18, %c6] : memref<4x32x32xf32, #tpu.memory_space<vmem>>, vector<4x16x16xf32>
    %c2_i32 = arith.constant 2 : i32
    %18 = vector.broadcast %c2_i32 : i32 to vector<4x16x16xi32>
    %19 = arith.andi %4, %18 : vector<4x16x16xi32>
    %c0_i32_19 = arith.constant 0 : i32
    %20 = vector.broadcast %c0_i32_19 : i32 to vector<4x16x16xi32>
    %21 = arith.cmpi eq, %19, %20 : vector<4x16x16xi32>
    %22 = arith.select %21, %16, %17 : vector<4x16x16xi1>, vector<4x16x16xf32>
    %23 = arith.maximumf %14, %22 : vector<4x16x16xf32>
    %c0_20 = arith.constant 0 : index
    %c8_21 = arith.constant 8 : index
    %c8_22 = arith.constant 8 : index
    %24 = vector.load %arg5[%c0_20, %c8_21, %c8_22] : memref<4x32x32xf32, #tpu.memory_space<vmem>>, vector<4x16x16xf32>
    tpu.vector_store %arg5[%c0_20, %c8_21, %c8_22], %23 {strides = array<i32>} : memref<4x32x32xf32, #tpu.memory_space<vmem>>, vector<4x16x16xf32>,
    %c0_23 = arith.constant 0 : index
    %c8_24 = arith.constant 8 : index
    %c12 = arith.constant 12 : index
    %25 = vector.load %arg5[%c0_23, %c8_24, %c12] : memref<4x32x32xf32, #tpu.memory_space<vmem>>, vector<4x16x16xf32>
    %c0_25 = arith.constant 0 : index
    %c8_26 = arith.constant 8 : index
    %c4 = arith.constant 4 : index
    %26 = vector.load %arg5[%c0_25, %c8_26, %c4] : memref<4x32x32xf32, #tpu.memory_space<vmem>>, vector<4x16x16xf32>
    %c4_i32 = arith.constant 4 : i32
    %27 = vector.broadcast %c4_i32 : i32 to vector<4x16x16xi32>
    %28 = arith.andi %4, %27 : vector<4x16x16xi32>
    %c0_i32_27 = arith.constant 0 : i32
    %29 = vector.broadcast %c0_i32_27 : i32 to vector<4x16x16xi32>
    %30 = arith.cmpi eq, %28, %29 : vector<4x16x16xi32>
    %31 = arith.select %30, %25, %26 : vector<4x16x16xi1>, vector<4x16x16xf32>
    %32 = arith.maximumf %23, %31 : vector<4x16x16xf32>
    %c0_28 = arith.constant 0 : index
    %c8_29 = arith.constant 8 : index
    %c8_30 = arith.constant 8 : index
    %33 = vector.load %arg5[%c0_28, %c8_29, %c8_30] : memref<4x32x32xf32, #tpu.memory_space<vmem>>, vector<4x16x16xf32>
    tpu.vector_store %arg5[%c0_28, %c8_29, %c8_30], %32 {strides = array<i32>} : memref<4x32x32xf32, #tpu.memory_space<vmem>>, vector<4x16x16xf32>,
    %c0_31 = arith.constant 0 : index
    %c9_32 = arith.constant 9 : index
    %c8_33 = arith.constant 8 : index
    %34 = vector.load %arg5[%c0_31, %c9_32, %c8_33] : memref<4x32x32xf32, #tpu.memory_space<vmem>>, vector<4x16x16xf32>
    %c0_34 = arith.constant 0 : index
    %c7_35 = arith.constant 7 : index
    %c8_36 = arith.constant 8 : index
    %35 = vector.load %arg5[%c0_34, %c7_35, %c8_36] : memref<4x32x32xf32, #tpu.memory_space<vmem>>, vector<4x16x16xf32>
    %c1_i32_37 = arith.constant 1 : i32
    %36 = vector.broadcast %c1_i32_37 : i32 to vector<4x16x16xi32>
    %37 = arith.andi %5, %36 : vector<4x16x16xi32>
    %c0_i32_38 = arith.constant 0 : i32
    %38 = vector.broadcast %c0_i32_38 : i32 to vector<4x16x16xi32>
    %39 = arith.cmpi eq, %37, %38 : vector<4x16x16xi32>
    %40 = arith.select %39, %34, %35 : vector<4x16x16xi1>, vector<4x16x16xf32>
    %41 = arith.maximumf %32, %40 : vector<4x16x16xf32>
    %c0_39 = arith.constant 0 : index
    %c8_40 = arith.constant 8 : index
    %c8_41 = arith.constant 8 : index
    %42 = vector.load %arg5[%c0_39, %c8_40, %c8_41] : memref<4x32x32xf32, #tpu.memory_space<vmem>>, vector<4x16x16xf32>
    tpu.vector_store %arg5[%c0_39, %c8_40, %c8_41], %41 {strides = array<i32>} : memref<4x32x32xf32, #tpu.memory_space<vmem>>, vector<4x16x16xf32>,
    %c0_42 = arith.constant 0 : index
    %c10_43 = arith.constant 10 : index
    %c8_44 = arith.constant 8 : index
    %43 = vector.load %arg5[%c0_42, %c10_43, %c8_44] : memref<4x32x32xf32, #tpu.memory_space<vmem>>, vector<4x16x16xf32>
    %c0_45 = arith.constant 0 : index
    %c6_46 = arith.constant 6 : index
    %c8_47 = arith.constant 8 : index
    %44 = vector.load %arg5[%c0_45, %c6_46, %c8_47] : memref<4x32x32xf32, #tpu.memory_space<vmem>>, vector<4x16x16xf32>
    %c2_i32_48 = arith.constant 2 : i32
    %45 = vector.broadcast %c2_i32_48 : i32 to vector<4x16x16xi32>
    %46 = arith.andi %5, %45 : vector<4x16x16xi32>
    %c0_i32_49 = arith.constant 0 : i32
    %47 = vector.broadcast %c0_i32_49 : i32 to vector<4x16x16xi32>
    %48 = arith.cmpi eq, %46, %47 : vector<4x16x16xi32>
    %49 = arith.select %48, %43, %44 : vector<4x16x16xi1>, vector<4x16x16xf32>
    %50 = arith.maximumf %41, %49 : vector<4x16x16xf32>
    %c0_50 = arith.constant 0 : index
    %c8_51 = arith.constant 8 : index
    %c8_52 = arith.constant 8 : index
    %51 = vector.load %arg5[%c0_50, %c8_51, %c8_52] : memref<4x32x32xf32, #tpu.memory_space<vmem>>, vector<4x16x16xf32>
    tpu.vector_store %arg5[%c0_50, %c8_51, %c8_52], %50 {strides = array<i32>} : memref<4x32x32xf32, #tpu.memory_space<vmem>>, vector<4x16x16xf32>,
    %c0_53 = arith.constant 0 : index
    %c12_54 = arith.constant 12 : index
    %c8_55 = arith.constant 8 : index
    %52 = vector.load %arg5[%c0_53, %c12_54, %c8_55] : memref<4x32x32xf32, #tpu.memory_space<vmem>>, vector<4x16x16xf32>
    %c0_56 = arith.constant 0 : index
    %c4_57 = arith.constant 4 : index
    %c8_58 = arith.constant 8 : index
    %53 = vector.load %arg5[%c0_56, %c4_57, %c8_58] : memref<4x32x32xf32, #tpu.memory_space<vmem>>, vector<4x16x16xf32>
    %c4_i32_59 = arith.constant 4 : i32
    %54 = vector.broadcast %c4_i32_59 : i32 to vector<4x16x16xi32>
    %55 = arith.andi %5, %54 : vector<4x16x16xi32>
    %c0_i32_60 = arith.constant 0 : i32
    %56 = vector.broadcast %c0_i32_60 : i32 to vector<4x16x16xi32>
    %57 = arith.cmpi eq, %55, %56 : vector<4x16x16xi32>
    %58 = arith.select %57, %52, %53 : vector<4x16x16xi1>, vector<4x16x16xf32>
    %59 = arith.maximumf %50, %58 : vector<4x16x16xf32>
    %c0_61 = arith.constant 0 : index
    %c8_62 = arith.constant 8 : index
    %c8_63 = arith.constant 8 : index
    %60 = vector.load %arg5[%c0_61, %c8_62, %c8_63] : memref<4x32x32xf32, #tpu.memory_space<vmem>>, vector<4x16x16xf32>
    tpu.vector_store %arg5[%c0_61, %c8_62, %c8_63], %59 {strides = array<i32>} : memref<4x32x32xf32, #tpu.memory_space<vmem>>, vector<4x16x16xf32>,
    %c0_64 = arith.constant 0 : index
    %c0_65 = arith.constant 0 : index
    %c0_66 = arith.constant 0 : index
    %61 = vector.load %arg2[%c0_64, %c0_65, %c0_66] : memref<4x3x3xf32, #tpu.memory_space<vmem>>, vector<4x3x3xf32>
    %cst_67 = arith.constant 0.000000e+00 : f32
    %62 = vector.broadcast %cst_67 : f32 to vector<4x16x16xf32>
    %63 = vector.extract_strided_slice %61 {offsets = [0, 0, 0], sizes = [4, 1, 1], strides = [1, 1, 1]} : vector<4x3x3xf32> to vector<4x1x1xf32>
    %c0_68 = arith.constant 0 : index
    %c0_69 = arith.constant 0 : index
    %c0_70 = arith.constant 0 : index
    %64 = vector.load %arg5[%c0_68, %c0_69, %c0_70] : memref<4x32x32xf32, #tpu.memory_space<vmem>>, vector<4x16x16xf32>
    %65 = vector.broadcast %63 : vector<4x1x1xf32> to vector<4x16x16xf32>
    %66 = arith.mulf %64, %65 : vector<4x16x16xf32>
    %67 = arith.addf %62, %66 : vector<4x16x16xf32>
    %68 = vector.extract_strided_slice %61 {offsets = [0, 0, 1], sizes = [4, 1, 1], strides = [1, 1, 1]} : vector<4x3x3xf32> to vector<4x1x1xf32>
    %c0_71 = arith.constant 0 : index
    %c0_72 = arith.constant 0 : index
    %c8_73 = arith.constant 8 : index
    %69 = vector.load %arg5[%c0_71, %c0_72, %c8_73] : memref<4x32x32xf32, #tpu.memory_space<vmem>>, vector<4x16x16xf32>
    %70 = vector.broadcast %68 : vector<4x1x1xf32> to vector<4x16x16xf32>
    %71 = arith.mulf %69, %70 : vector<4x16x16xf32>
    %72 = arith.addf %67, %71 : vector<4x16x16xf32>
    %73 = vector.extract_strided_slice %61 {offsets = [0, 0, 2], sizes = [4, 1, 1], strides = [1, 1, 1]} : vector<4x3x3xf32> to vector<4x1x1xf32>
    %c0_74 = arith.constant 0 : index
    %c0_75 = arith.constant 0 : index
    %c16 = arith.constant 16 : index
    %74 = vector.load %arg5[%c0_74, %c0_75, %c16] : memref<4x32x32xf32, #tpu.memory_space<vmem>>, vector<4x16x16xf32>
    %75 = vector.broadcast %73 : vector<4x1x1xf32> to vector<4x16x16xf32>
    %76 = arith.mulf %74, %75 : vector<4x16x16xf32>
    %77 = arith.addf %72, %76 : vector<4x16x16xf32>
    %78 = vector.extract_strided_slice %61 {offsets = [0, 1, 0], sizes = [4, 1, 1], strides = [1, 1, 1]} : vector<4x3x3xf32> to vector<4x1x1xf32>
    %c0_76 = arith.constant 0 : index
    %c8_77 = arith.constant 8 : index
    %c0_78 = arith.constant 0 : index
    %79 = vector.load %arg5[%c0_76, %c8_77, %c0_78] : memref<4x32x32xf32, #tpu.memory_space<vmem>>, vector<4x16x16xf32>
    %80 = vector.broadcast %78 : vector<4x1x1xf32> to vector<4x16x16xf32>
    %81 = arith.mulf %79, %80 : vector<4x16x16xf32>
    %82 = arith.addf %77, %81 : vector<4x16x16xf32>
    %83 = vector.extract_strided_slice %61 {offsets = [0, 1, 1], sizes = [4, 1, 1], strides = [1, 1, 1]} : vector<4x3x3xf32> to vector<4x1x1xf32>
    %c0_79 = arith.constant 0 : index
    %c8_80 = arith.constant 8 : index
    %c8_81 = arith.constant 8 : index
    %84 = vector.load %arg5[%c0_79, %c8_80, %c8_81] : memref<4x32x32xf32, #tpu.memory_space<vmem>>, vector<4x16x16xf32>
    %85 = vector.broadcast %83 : vector<4x1x1xf32> to vector<4x16x16xf32>
    %86 = arith.mulf %84, %85 : vector<4x16x16xf32>
    %87 = arith.addf %82, %86 : vector<4x16x16xf32>
    %88 = vector.extract_strided_slice %61 {offsets = [0, 1, 2], sizes = [4, 1, 1], strides = [1, 1, 1]} : vector<4x3x3xf32> to vector<4x1x1xf32>
    %c0_82 = arith.constant 0 : index
    %c8_83 = arith.constant 8 : index
    %c16_84 = arith.constant 16 : index
    %89 = vector.load %arg5[%c0_82, %c8_83, %c16_84] : memref<4x32x32xf32, #tpu.memory_space<vmem>>, vector<4x16x16xf32>
    %90 = vector.broadcast %88 : vector<4x1x1xf32> to vector<4x16x16xf32>
    %91 = arith.mulf %89, %90 : vector<4x16x16xf32>
    %92 = arith.addf %87, %91 : vector<4x16x16xf32>
    %93 = vector.extract_strided_slice %61 {offsets = [0, 2, 0], sizes = [4, 1, 1], strides = [1, 1, 1]} : vector<4x3x3xf32> to vector<4x1x1xf32>
    %c0_85 = arith.constant 0 : index
    %c16_86 = arith.constant 16 : index
    %c0_87 = arith.constant 0 : index
    %94 = vector.load %arg5[%c0_85, %c16_86, %c0_87] : memref<4x32x32xf32, #tpu.memory_space<vmem>>, vector<4x16x16xf32>
    %95 = vector.broadcast %93 : vector<4x1x1xf32> to vector<4x16x16xf32>
    %96 = arith.mulf %94, %95 : vector<4x16x16xf32>
    %97 = arith.addf %92, %96 : vector<4x16x16xf32>
    %98 = vector.extract_strided_slice %61 {offsets = [0, 2, 1], sizes = [4, 1, 1], strides = [1, 1, 1]} : vector<4x3x3xf32> to vector<4x1x1xf32>
    %c0_88 = arith.constant 0 : index
    %c16_89 = arith.constant 16 : index
    %c8_90 = arith.constant 8 : index
    %99 = vector.load %arg5[%c0_88, %c16_89, %c8_90] : memref<4x32x32xf32, #tpu.memory_space<vmem>>, vector<4x16x16xf32>
    %100 = vector.broadcast %98 : vector<4x1x1xf32> to vector<4x16x16xf32>
    %101 = arith.mulf %99, %100 : vector<4x16x16xf32>
    %102 = arith.addf %97, %101 : vector<4x16x16xf32>
    %103 = vector.extract_strided_slice %61 {offsets = [0, 2, 2], sizes = [4, 1, 1], strides = [1, 1, 1]} : vector<4x3x3xf32> to vector<4x1x1xf32>
    %c0_91 = arith.constant 0 : index
    %c16_92 = arith.constant 16 : index
    %c16_93 = arith.constant 16 : index
    %104 = vector.load %arg5[%c0_91, %c16_92, %c16_93] : memref<4x32x32xf32, #tpu.memory_space<vmem>>, vector<4x16x16xf32>
    %105 = vector.broadcast %103 : vector<4x1x1xf32> to vector<4x16x16xf32>
    %106 = arith.mulf %104, %105 : vector<4x16x16xf32>
    %107 = arith.addf %102, %106 : vector<4x16x16xf32>
    %c0_94 = arith.constant 0 : index
    %c0_95 = arith.constant 0 : index
    %c0_96 = arith.constant 0 : index
    %108 = vector.load %arg3[%c0_94, %c0_95, %c0_96] : memref<4x1x1xf32, #tpu.memory_space<vmem>>, vector<4x1x1xf32>
    %109 = vector.broadcast %108 : vector<4x1x1xf32> to vector<4x16x16xf32>
    %110 = arith.addf %107, %109 : vector<4x16x16xf32>
    %c0_97 = arith.constant 0 : index
    %c0_98 = arith.constant 0 : index
    %c0_99 = arith.constant 0 : index
    %c0_100 = arith.constant 0 : index
    %111 = vector.load %arg4[%c0_97, %c0_98, %c0_99, %c0_100] : memref<1x4x16x16xf32, #tpu.memory_space<vmem>>, vector<1x4x16x16xf32>
    %112 = vector.shape_cast %111 : vector<1x4x16x16xf32> to vector<4x16x16xf32>
    %113 = vector.shape_cast %110 : vector<4x16x16xf32> to vector<1x4x16x16xf32>
    tpu.vector_store %arg4[%c0_97, %c0_98, %c0_99, %c0_100], %113 {strides = array<i32>} : memref<1x4x16x16xf32, #tpu.memory_space<vmem>>, vector<1x4x16x16xf32>,
    return
  }
  func.func @transform_0(%arg0: i32) -> (i32, i32, i32, i32) {
    %c3_i32 = arith.constant 3 : i32
    %c0_i32 = arith.constant 0 : i32
    %c0_i32_0 = arith.constant 0 : i32
    %c0_i32_1 = arith.constant 0 : i32
    return %arg0, %c3_i32, %c0_i32, %c0_i32_0 : i32, i32, i32, i32
  }
  func.func @transform_1(%arg0: i32) -> (i32, i32, i32) {
    %c0_i32 = arith.constant 0 : i32
    %c0_i32_0 = arith.constant 0 : i32
    %c0_i32_1 = arith.constant 0 : i32
    %c0_i32_2 = arith.constant 0 : i32
    return %c0_i32, %c0_i32_0, %c0_i32_1 : i32, i32, i32
  }
  func.func @transform_2(%arg0: i32) -> (i32, i32, i32) {
    %c0_i32 = arith.constant 0 : i32
    %c0_i32_0 = arith.constant 0 : i32
    %c0_i32_1 = arith.constant 0 : i32
    %c0_i32_2 = arith.constant 0 : i32
    return %c0_i32, %c0_i32_0, %c0_i32_1 : i32, i32, i32
  }
  func.func @transform_3(%arg0: i32) -> (i32, i32, i32, i32) {
    %c0_i32 = arith.constant 0 : i32
    %c0_i32_0 = arith.constant 0 : i32
    %c0_i32_1 = arith.constant 0 : i32
    %c0_i32_2 = arith.constant 0 : i32
    return %arg0, %c0_i32, %c0_i32_0, %c0_i32_1 : i32, i32, i32, i32
  }
}

module attributes {stable_mosaic.version = 11 : i64} {
  func.func @kernel(%arg0: i32, %arg1: memref<1x4x16x16xf32, #tpu.memory_space<vmem>>, %arg2: memref<4x3x3xf32, #tpu.memory_space<vmem>>, %arg3: memref<4x1x1xf32, #tpu.memory_space<vmem>>, %arg4: memref<1x4x16x16xf32, #tpu.memory_space<vmem>>, %arg5: memref<4x24x24xf32, #tpu.memory_space<vmem>>) attributes {dimension_semantics = [#tpu.dimension_semantics<parallel>], iteration_bounds = array<i64: 2>, scalar_prefetch = 0 : i64, scratch_operands = 1 : i64, tpu.core_type = #tpu.core_type<tc>, window_params = [{transform_indices = @transform_0, window_bounds = array<i64: 1, 4, 16, 16>}, {pipeline_mode = #tpu.pipeline_mode<synchronous>, transform_indices = @transform_1, window_bounds = array<i64: 4, 3, 3>}, {pipeline_mode = #tpu.pipeline_mode<synchronous>, transform_indices = @transform_2, window_bounds = array<i64: 4, 1, 1>}, {transform_indices = @transform_3, window_bounds = array<i64: 1, 4, 16, 16>}]} {
    %cst = arith.constant 0.000000e+00 : f32
    %0 = vector.broadcast %cst : f32 to vector<4x24x24xf32>
    %c0 = arith.constant 0 : index
    %c0_0 = arith.constant 0 : index
    %c0_1 = arith.constant 0 : index
    %1 = vector.load %arg5[%c0, %c0_0, %c0_1] : memref<4x24x24xf32, #tpu.memory_space<vmem>>, vector<4x24x24xf32>
    tpu.vector_store %arg5[%c0, %c0_0, %c0_1], %0 {strides = array<i32>} : memref<4x24x24xf32, #tpu.memory_space<vmem>>, vector<4x24x24xf32>,
    %c0_2 = arith.constant 0 : index
    %c0_3 = arith.constant 0 : index
    %c0_4 = arith.constant 0 : index
    %c0_5 = arith.constant 0 : index
    %2 = vector.load %arg1[%c0_2, %c0_3, %c0_4, %c0_5] : memref<1x4x16x16xf32, #tpu.memory_space<vmem>>, vector<1x4x16x16xf32>
    %3 = vector.shape_cast %2 : vector<1x4x16x16xf32> to vector<4x16x16xf32>
    %4 = tpu.iota {dimensions = array<i32: 2>} : vector<4x16x16xi32>
    %5 = tpu.iota {dimensions = array<i32: 1>} : vector<4x16x16xi32>
    %c0_6 = arith.constant 0 : index
    %c4 = arith.constant 4 : index
    %c4_7 = arith.constant 4 : index
    %6 = vector.load %arg5[%c0_6, %c4, %c4_7] : memref<4x24x24xf32, #tpu.memory_space<vmem>>, vector<4x16x16xf32>
    tpu.vector_store %arg5[%c0_6, %c4, %c4_7], %3 {strides = array<i32>} : memref<4x24x24xf32, #tpu.memory_space<vmem>>, vector<4x16x16xf32>,
    %c0_8 = arith.constant 0 : index
    %c4_9 = arith.constant 4 : index
    %c5 = arith.constant 5 : index
    %7 = vector.load %arg5[%c0_8, %c4_9, %c5] : memref<4x24x24xf32, #tpu.memory_space<vmem>>, vector<4x16x16xf32>
    %c0_10 = arith.constant 0 : index
    %c4_11 = arith.constant 4 : index
    %c3 = arith.constant 3 : index
    %8 = vector.load %arg5[%c0_10, %c4_11, %c3] : memref<4x24x24xf32, #tpu.memory_space<vmem>>, vector<4x16x16xf32>
    %c1_i32 = arith.constant 1 : i32
    %9 = vector.broadcast %c1_i32 : i32 to vector<4x16x16xi32>
    %10 = arith.andi %4, %9 : vector<4x16x16xi32>
    %c0_i32 = arith.constant 0 : i32
    %11 = vector.broadcast %c0_i32 : i32 to vector<4x16x16xi32>
    %12 = arith.cmpi eq, %10, %11 : vector<4x16x16xi32>
    %13 = arith.select %12, %7, %8 : vector<4x16x16xi1>, vector<4x16x16xf32>
    %14 = arith.maximumf %3, %13 : vector<4x16x16xf32>
    %c0_12 = arith.constant 0 : index
    %c4_13 = arith.constant 4 : index
    %c4_14 = arith.constant 4 : index
    %15 = vector.load %arg5[%c0_12, %c4_13, %c4_14] : memref<4x24x24xf32, #tpu.memory_space<vmem>>, vector<4x16x16xf32>
    tpu.vector_store %arg5[%c0_12, %c4_13, %c4_14], %14 {strides = array<i32>} : memref<4x24x24xf32, #tpu.memory_space<vmem>>, vector<4x16x16xf32>,
    %c0_15 = arith.constant 0 : index
    %c4_16 = arith.constant 4 : index
    %c6 = arith.constant 6 : index
    %16 = vector.load %arg5[%c0_15, %c4_16, %c6] : memref<4x24x24xf32, #tpu.memory_space<vmem>>, vector<4x16x16xf32>
    %c0_17 = arith.constant 0 : index
    %c4_18 = arith.constant 4 : index
    %c2 = arith.constant 2 : index
    %17 = vector.load %arg5[%c0_17, %c4_18, %c2] : memref<4x24x24xf32, #tpu.memory_space<vmem>>, vector<4x16x16xf32>
    %c2_i32 = arith.constant 2 : i32
    %18 = vector.broadcast %c2_i32 : i32 to vector<4x16x16xi32>
    %19 = arith.andi %4, %18 : vector<4x16x16xi32>
    %c0_i32_19 = arith.constant 0 : i32
    %20 = vector.broadcast %c0_i32_19 : i32 to vector<4x16x16xi32>
    %21 = arith.cmpi eq, %19, %20 : vector<4x16x16xi32>
    %22 = arith.select %21, %16, %17 : vector<4x16x16xi1>, vector<4x16x16xf32>
    %23 = arith.maximumf %14, %22 : vector<4x16x16xf32>
    %c0_20 = arith.constant 0 : index
    %c4_21 = arith.constant 4 : index
    %c4_22 = arith.constant 4 : index
    %24 = vector.load %arg5[%c0_20, %c4_21, %c4_22] : memref<4x24x24xf32, #tpu.memory_space<vmem>>, vector<4x16x16xf32>
    tpu.vector_store %arg5[%c0_20, %c4_21, %c4_22], %23 {strides = array<i32>} : memref<4x24x24xf32, #tpu.memory_space<vmem>>, vector<4x16x16xf32>,
    %c0_23 = arith.constant 0 : index
    %c5_24 = arith.constant 5 : index
    %c4_25 = arith.constant 4 : index
    %25 = vector.load %arg5[%c0_23, %c5_24, %c4_25] : memref<4x24x24xf32, #tpu.memory_space<vmem>>, vector<4x16x16xf32>
    %c0_26 = arith.constant 0 : index
    %c3_27 = arith.constant 3 : index
    %c4_28 = arith.constant 4 : index
    %26 = vector.load %arg5[%c0_26, %c3_27, %c4_28] : memref<4x24x24xf32, #tpu.memory_space<vmem>>, vector<4x16x16xf32>
    %c1_i32_29 = arith.constant 1 : i32
    %27 = vector.broadcast %c1_i32_29 : i32 to vector<4x16x16xi32>
    %28 = arith.andi %5, %27 : vector<4x16x16xi32>
    %c0_i32_30 = arith.constant 0 : i32
    %29 = vector.broadcast %c0_i32_30 : i32 to vector<4x16x16xi32>
    %30 = arith.cmpi eq, %28, %29 : vector<4x16x16xi32>
    %31 = arith.select %30, %25, %26 : vector<4x16x16xi1>, vector<4x16x16xf32>
    %32 = arith.maximumf %23, %31 : vector<4x16x16xf32>
    %c0_31 = arith.constant 0 : index
    %c4_32 = arith.constant 4 : index
    %c4_33 = arith.constant 4 : index
    %33 = vector.load %arg5[%c0_31, %c4_32, %c4_33] : memref<4x24x24xf32, #tpu.memory_space<vmem>>, vector<4x16x16xf32>
    tpu.vector_store %arg5[%c0_31, %c4_32, %c4_33], %32 {strides = array<i32>} : memref<4x24x24xf32, #tpu.memory_space<vmem>>, vector<4x16x16xf32>,
    %c0_34 = arith.constant 0 : index
    %c6_35 = arith.constant 6 : index
    %c4_36 = arith.constant 4 : index
    %34 = vector.load %arg5[%c0_34, %c6_35, %c4_36] : memref<4x24x24xf32, #tpu.memory_space<vmem>>, vector<4x16x16xf32>
    %c0_37 = arith.constant 0 : index
    %c2_38 = arith.constant 2 : index
    %c4_39 = arith.constant 4 : index
    %35 = vector.load %arg5[%c0_37, %c2_38, %c4_39] : memref<4x24x24xf32, #tpu.memory_space<vmem>>, vector<4x16x16xf32>
    %c2_i32_40 = arith.constant 2 : i32
    %36 = vector.broadcast %c2_i32_40 : i32 to vector<4x16x16xi32>
    %37 = arith.andi %5, %36 : vector<4x16x16xi32>
    %c0_i32_41 = arith.constant 0 : i32
    %38 = vector.broadcast %c0_i32_41 : i32 to vector<4x16x16xi32>
    %39 = arith.cmpi eq, %37, %38 : vector<4x16x16xi32>
    %40 = arith.select %39, %34, %35 : vector<4x16x16xi1>, vector<4x16x16xf32>
    %41 = arith.maximumf %32, %40 : vector<4x16x16xf32>
    %c0_42 = arith.constant 0 : index
    %c4_43 = arith.constant 4 : index
    %c4_44 = arith.constant 4 : index
    %42 = vector.load %arg5[%c0_42, %c4_43, %c4_44] : memref<4x24x24xf32, #tpu.memory_space<vmem>>, vector<4x16x16xf32>
    tpu.vector_store %arg5[%c0_42, %c4_43, %c4_44], %41 {strides = array<i32>} : memref<4x24x24xf32, #tpu.memory_space<vmem>>, vector<4x16x16xf32>,
    %c0_45 = arith.constant 0 : index
    %c0_46 = arith.constant 0 : index
    %c0_47 = arith.constant 0 : index
    %43 = vector.load %arg2[%c0_45, %c0_46, %c0_47] : memref<4x3x3xf32, #tpu.memory_space<vmem>>, vector<4x3x3xf32>
    %cst_48 = arith.constant 0.000000e+00 : f32
    %44 = vector.broadcast %cst_48 : f32 to vector<4x16x16xf32>
    %45 = vector.extract_strided_slice %43 {offsets = [0, 0, 0], sizes = [4, 1, 1], strides = [1, 1, 1]} : vector<4x3x3xf32> to vector<4x1x1xf32>
    %c0_49 = arith.constant 0 : index
    %c0_50 = arith.constant 0 : index
    %c0_51 = arith.constant 0 : index
    %46 = vector.load %arg5[%c0_49, %c0_50, %c0_51] : memref<4x24x24xf32, #tpu.memory_space<vmem>>, vector<4x16x16xf32>
    %47 = vector.broadcast %45 : vector<4x1x1xf32> to vector<4x16x16xf32>
    %48 = arith.mulf %46, %47 : vector<4x16x16xf32>
    %49 = arith.addf %44, %48 : vector<4x16x16xf32>
    %50 = vector.extract_strided_slice %43 {offsets = [0, 0, 1], sizes = [4, 1, 1], strides = [1, 1, 1]} : vector<4x3x3xf32> to vector<4x1x1xf32>
    %c0_52 = arith.constant 0 : index
    %c0_53 = arith.constant 0 : index
    %c4_54 = arith.constant 4 : index
    %51 = vector.load %arg5[%c0_52, %c0_53, %c4_54] : memref<4x24x24xf32, #tpu.memory_space<vmem>>, vector<4x16x16xf32>
    %52 = vector.broadcast %50 : vector<4x1x1xf32> to vector<4x16x16xf32>
    %53 = arith.mulf %51, %52 : vector<4x16x16xf32>
    %54 = arith.addf %49, %53 : vector<4x16x16xf32>
    %55 = vector.extract_strided_slice %43 {offsets = [0, 0, 2], sizes = [4, 1, 1], strides = [1, 1, 1]} : vector<4x3x3xf32> to vector<4x1x1xf32>
    %c0_55 = arith.constant 0 : index
    %c0_56 = arith.constant 0 : index
    %c8 = arith.constant 8 : index
    %56 = vector.load %arg5[%c0_55, %c0_56, %c8] : memref<4x24x24xf32, #tpu.memory_space<vmem>>, vector<4x16x16xf32>
    %57 = vector.broadcast %55 : vector<4x1x1xf32> to vector<4x16x16xf32>
    %58 = arith.mulf %56, %57 : vector<4x16x16xf32>
    %59 = arith.addf %54, %58 : vector<4x16x16xf32>
    %60 = vector.extract_strided_slice %43 {offsets = [0, 1, 0], sizes = [4, 1, 1], strides = [1, 1, 1]} : vector<4x3x3xf32> to vector<4x1x1xf32>
    %c0_57 = arith.constant 0 : index
    %c4_58 = arith.constant 4 : index
    %c0_59 = arith.constant 0 : index
    %61 = vector.load %arg5[%c0_57, %c4_58, %c0_59] : memref<4x24x24xf32, #tpu.memory_space<vmem>>, vector<4x16x16xf32>
    %62 = vector.broadcast %60 : vector<4x1x1xf32> to vector<4x16x16xf32>
    %63 = arith.mulf %61, %62 : vector<4x16x16xf32>
    %64 = arith.addf %59, %63 : vector<4x16x16xf32>
    %65 = vector.extract_strided_slice %43 {offsets = [0, 1, 1], sizes = [4, 1, 1], strides = [1, 1, 1]} : vector<4x3x3xf32> to vector<4x1x1xf32>
    %c0_60 = arith.constant 0 : index
    %c4_61 = arith.constant 4 : index
    %c4_62 = arith.constant 4 : index
    %66 = vector.load %arg5[%c0_60, %c4_61, %c4_62] : memref<4x24x24xf32, #tpu.memory_space<vmem>>, vector<4x16x16xf32>
    %67 = vector.broadcast %65 : vector<4x1x1xf32> to vector<4x16x16xf32>
    %68 = arith.mulf %66, %67 : vector<4x16x16xf32>
    %69 = arith.addf %64, %68 : vector<4x16x16xf32>
    %70 = vector.extract_strided_slice %43 {offsets = [0, 1, 2], sizes = [4, 1, 1], strides = [1, 1, 1]} : vector<4x3x3xf32> to vector<4x1x1xf32>
    %c0_63 = arith.constant 0 : index
    %c4_64 = arith.constant 4 : index
    %c8_65 = arith.constant 8 : index
    %71 = vector.load %arg5[%c0_63, %c4_64, %c8_65] : memref<4x24x24xf32, #tpu.memory_space<vmem>>, vector<4x16x16xf32>
    %72 = vector.broadcast %70 : vector<4x1x1xf32> to vector<4x16x16xf32>
    %73 = arith.mulf %71, %72 : vector<4x16x16xf32>
    %74 = arith.addf %69, %73 : vector<4x16x16xf32>
    %75 = vector.extract_strided_slice %43 {offsets = [0, 2, 0], sizes = [4, 1, 1], strides = [1, 1, 1]} : vector<4x3x3xf32> to vector<4x1x1xf32>
    %c0_66 = arith.constant 0 : index
    %c8_67 = arith.constant 8 : index
    %c0_68 = arith.constant 0 : index
    %76 = vector.load %arg5[%c0_66, %c8_67, %c0_68] : memref<4x24x24xf32, #tpu.memory_space<vmem>>, vector<4x16x16xf32>
    %77 = vector.broadcast %75 : vector<4x1x1xf32> to vector<4x16x16xf32>
    %78 = arith.mulf %76, %77 : vector<4x16x16xf32>
    %79 = arith.addf %74, %78 : vector<4x16x16xf32>
    %80 = vector.extract_strided_slice %43 {offsets = [0, 2, 1], sizes = [4, 1, 1], strides = [1, 1, 1]} : vector<4x3x3xf32> to vector<4x1x1xf32>
    %c0_69 = arith.constant 0 : index
    %c8_70 = arith.constant 8 : index
    %c4_71 = arith.constant 4 : index
    %81 = vector.load %arg5[%c0_69, %c8_70, %c4_71] : memref<4x24x24xf32, #tpu.memory_space<vmem>>, vector<4x16x16xf32>
    %82 = vector.broadcast %80 : vector<4x1x1xf32> to vector<4x16x16xf32>
    %83 = arith.mulf %81, %82 : vector<4x16x16xf32>
    %84 = arith.addf %79, %83 : vector<4x16x16xf32>
    %85 = vector.extract_strided_slice %43 {offsets = [0, 2, 2], sizes = [4, 1, 1], strides = [1, 1, 1]} : vector<4x3x3xf32> to vector<4x1x1xf32>
    %c0_72 = arith.constant 0 : index
    %c8_73 = arith.constant 8 : index
    %c8_74 = arith.constant 8 : index
    %86 = vector.load %arg5[%c0_72, %c8_73, %c8_74] : memref<4x24x24xf32, #tpu.memory_space<vmem>>, vector<4x16x16xf32>
    %87 = vector.broadcast %85 : vector<4x1x1xf32> to vector<4x16x16xf32>
    %88 = arith.mulf %86, %87 : vector<4x16x16xf32>
    %89 = arith.addf %84, %88 : vector<4x16x16xf32>
    %c0_75 = arith.constant 0 : index
    %c0_76 = arith.constant 0 : index
    %c0_77 = arith.constant 0 : index
    %90 = vector.load %arg3[%c0_75, %c0_76, %c0_77] : memref<4x1x1xf32, #tpu.memory_space<vmem>>, vector<4x1x1xf32>
    %91 = vector.broadcast %90 : vector<4x1x1xf32> to vector<4x16x16xf32>
    %92 = arith.addf %89, %91 : vector<4x16x16xf32>
    %c0_78 = arith.constant 0 : index
    %c0_79 = arith.constant 0 : index
    %c0_80 = arith.constant 0 : index
    %c0_81 = arith.constant 0 : index
    %93 = vector.load %arg4[%c0_78, %c0_79, %c0_80, %c0_81] : memref<1x4x16x16xf32, #tpu.memory_space<vmem>>, vector<1x4x16x16xf32>
    %94 = vector.shape_cast %93 : vector<1x4x16x16xf32> to vector<4x16x16xf32>
    %95 = vector.shape_cast %92 : vector<4x16x16xf32> to vector<1x4x16x16xf32>
    tpu.vector_store %arg4[%c0_78, %c0_79, %c0_80, %c0_81], %95 {strides = array<i32>} : memref<1x4x16x16xf32, #tpu.memory_space<vmem>>, vector<1x4x16x16xf32>,
    return
  }
  func.func @transform_0(%arg0: i32) -> (i32, i32, i32, i32) {
    %c2_i32 = arith.constant 2 : i32
    %c0_i32 = arith.constant 0 : i32
    %c0_i32_0 = arith.constant 0 : i32
    %c0_i32_1 = arith.constant 0 : i32
    return %arg0, %c2_i32, %c0_i32, %c0_i32_0 : i32, i32, i32, i32
  }
  func.func @transform_1(%arg0: i32) -> (i32, i32, i32) {
    %c0_i32 = arith.constant 0 : i32
    %c0_i32_0 = arith.constant 0 : i32
    %c0_i32_1 = arith.constant 0 : i32
    %c0_i32_2 = arith.constant 0 : i32
    return %c0_i32, %c0_i32_0, %c0_i32_1 : i32, i32, i32
  }
  func.func @transform_2(%arg0: i32) -> (i32, i32, i32) {
    %c0_i32 = arith.constant 0 : i32
    %c0_i32_0 = arith.constant 0 : i32
    %c0_i32_1 = arith.constant 0 : i32
    %c0_i32_2 = arith.constant 0 : i32
    return %c0_i32, %c0_i32_0, %c0_i32_1 : i32, i32, i32
  }
  func.func @transform_3(%arg0: i32) -> (i32, i32, i32, i32) {
    %c0_i32 = arith.constant 0 : i32
    %c0_i32_0 = arith.constant 0 : i32
    %c0_i32_1 = arith.constant 0 : i32
    %c0_i32_2 = arith.constant 0 : i32
    return %arg0, %c0_i32, %c0_i32_0, %c0_i32_1 : i32, i32, i32, i32
  }
}

module attributes {stable_mosaic.version = 11 : i64} {
  func.func @kernel(%arg0: i32, %arg1: memref<1x4x16x16xf32, #tpu.memory_space<vmem>>, %arg2: memref<4x3x3xf32, #tpu.memory_space<vmem>>, %arg3: memref<4x1x1xf32, #tpu.memory_space<vmem>>, %arg4: memref<1x4x16x16xf32, #tpu.memory_space<vmem>>, %arg5: memref<4x20x20xf32, #tpu.memory_space<vmem>>) attributes {dimension_semantics = [#tpu.dimension_semantics<parallel>], iteration_bounds = array<i64: 2>, scalar_prefetch = 0 : i64, scratch_operands = 1 : i64, tpu.core_type = #tpu.core_type<tc>, window_params = [{transform_indices = @transform_0, window_bounds = array<i64: 1, 4, 16, 16>}, {pipeline_mode = #tpu.pipeline_mode<synchronous>, transform_indices = @transform_1, window_bounds = array<i64: 4, 3, 3>}, {pipeline_mode = #tpu.pipeline_mode<synchronous>, transform_indices = @transform_2, window_bounds = array<i64: 4, 1, 1>}, {transform_indices = @transform_3, window_bounds = array<i64: 1, 4, 16, 16>}]} {
    %cst = arith.constant 0.000000e+00 : f32
    %0 = vector.broadcast %cst : f32 to vector<4x20x20xf32>
    %c0 = arith.constant 0 : index
    %c0_0 = arith.constant 0 : index
    %c0_1 = arith.constant 0 : index
    %1 = vector.load %arg5[%c0, %c0_0, %c0_1] : memref<4x20x20xf32, #tpu.memory_space<vmem>>, vector<4x20x20xf32>
    tpu.vector_store %arg5[%c0, %c0_0, %c0_1], %0 {strides = array<i32>} : memref<4x20x20xf32, #tpu.memory_space<vmem>>, vector<4x20x20xf32>,
    %c0_2 = arith.constant 0 : index
    %c0_3 = arith.constant 0 : index
    %c0_4 = arith.constant 0 : index
    %c0_5 = arith.constant 0 : index
    %2 = vector.load %arg1[%c0_2, %c0_3, %c0_4, %c0_5] : memref<1x4x16x16xf32, #tpu.memory_space<vmem>>, vector<1x4x16x16xf32>
    %3 = vector.shape_cast %2 : vector<1x4x16x16xf32> to vector<4x16x16xf32>
    %4 = tpu.iota {dimensions = array<i32: 2>} : vector<4x16x16xi32>
    %5 = tpu.iota {dimensions = array<i32: 1>} : vector<4x16x16xi32>
    %c0_6 = arith.constant 0 : index
    %c2 = arith.constant 2 : index
    %c2_7 = arith.constant 2 : index
    %6 = vector.load %arg5[%c0_6, %c2, %c2_7] : memref<4x20x20xf32, #tpu.memory_space<vmem>>, vector<4x16x16xf32>
    tpu.vector_store %arg5[%c0_6, %c2, %c2_7], %3 {strides = array<i32>} : memref<4x20x20xf32, #tpu.memory_space<vmem>>, vector<4x16x16xf32>,
    %c0_8 = arith.constant 0 : index
    %c2_9 = arith.constant 2 : index
    %c3 = arith.constant 3 : index
    %7 = vector.load %arg5[%c0_8, %c2_9, %c3] : memref<4x20x20xf32, #tpu.memory_space<vmem>>, vector<4x16x16xf32>
    %c0_10 = arith.constant 0 : index
    %c2_11 = arith.constant 2 : index
    %c1 = arith.constant 1 : index
    %8 = vector.load %arg5[%c0_10, %c2_11, %c1] : memref<4x20x20xf32, #tpu.memory_space<vmem>>, vector<4x16x16xf32>
    %c1_i32 = arith.constant 1 : i32
    %9 = vector.broadcast %c1_i32 : i32 to vector<4x16x16xi32>
    %10 = arith.andi %4, %9 : vector<4x16x16xi32>
    %c0_i32 = arith.constant 0 : i32
    %11 = vector.broadcast %c0_i32 : i32 to vector<4x16x16xi32>
    %12 = arith.cmpi eq, %10, %11 : vector<4x16x16xi32>
    %13 = arith.select %12, %7, %8 : vector<4x16x16xi1>, vector<4x16x16xf32>
    %14 = arith.maximumf %3, %13 : vector<4x16x16xf32>
    %c0_12 = arith.constant 0 : index
    %c2_13 = arith.constant 2 : index
    %c2_14 = arith.constant 2 : index
    %15 = vector.load %arg5[%c0_12, %c2_13, %c2_14] : memref<4x20x20xf32, #tpu.memory_space<vmem>>, vector<4x16x16xf32>
    tpu.vector_store %arg5[%c0_12, %c2_13, %c2_14], %14 {strides = array<i32>} : memref<4x20x20xf32, #tpu.memory_space<vmem>>, vector<4x16x16xf32>,
    %c0_15 = arith.constant 0 : index
    %c3_16 = arith.constant 3 : index
    %c2_17 = arith.constant 2 : index
    %16 = vector.load %arg5[%c0_15, %c3_16, %c2_17] : memref<4x20x20xf32, #tpu.memory_space<vmem>>, vector<4x16x16xf32>
    %c0_18 = arith.constant 0 : index
    %c1_19 = arith.constant 1 : index
    %c2_20 = arith.constant 2 : index
    %17 = vector.load %arg5[%c0_18, %c1_19, %c2_20] : memref<4x20x20xf32, #tpu.memory_space<vmem>>, vector<4x16x16xf32>
    %c1_i32_21 = arith.constant 1 : i32
    %18 = vector.broadcast %c1_i32_21 : i32 to vector<4x16x16xi32>
    %19 = arith.andi %5, %18 : vector<4x16x16xi32>
    %c0_i32_22 = arith.constant 0 : i32
    %20 = vector.broadcast %c0_i32_22 : i32 to vector<4x16x16xi32>
    %21 = arith.cmpi eq, %19, %20 : vector<4x16x16xi32>
    %22 = arith.select %21, %16, %17 : vector<4x16x16xi1>, vector<4x16x16xf32>
    %23 = arith.maximumf %14, %22 : vector<4x16x16xf32>
    %c0_23 = arith.constant 0 : index
    %c2_24 = arith.constant 2 : index
    %c2_25 = arith.constant 2 : index
    %24 = vector.load %arg5[%c0_23, %c2_24, %c2_25] : memref<4x20x20xf32, #tpu.memory_space<vmem>>, vector<4x16x16xf32>
    tpu.vector_store %arg5[%c0_23, %c2_24, %c2_25], %23 {strides = array<i32>} : memref<4x20x20xf32, #tpu.memory_space<vmem>>, vector<4x16x16xf32>,
    %c0_26 = arith.constant 0 : index
    %c0_27 = arith.constant 0 : index
    %c0_28 = arith.constant 0 : index
    %25 = vector.load %arg2[%c0_26, %c0_27, %c0_28] : memref<4x3x3xf32, #tpu.memory_space<vmem>>, vector<4x3x3xf32>
    %cst_29 = arith.constant 0.000000e+00 : f32
    %26 = vector.broadcast %cst_29 : f32 to vector<4x16x16xf32>
    %27 = vector.extract_strided_slice %25 {offsets = [0, 0, 0], sizes = [4, 1, 1], strides = [1, 1, 1]} : vector<4x3x3xf32> to vector<4x1x1xf32>
    %c0_30 = arith.constant 0 : index
    %c0_31 = arith.constant 0 : index
    %c0_32 = arith.constant 0 : index
    %28 = vector.load %arg5[%c0_30, %c0_31, %c0_32] : memref<4x20x20xf32, #tpu.memory_space<vmem>>, vector<4x16x16xf32>
    %29 = vector.broadcast %27 : vector<4x1x1xf32> to vector<4x16x16xf32>
    %30 = arith.mulf %28, %29 : vector<4x16x16xf32>
    %31 = arith.addf %26, %30 : vector<4x16x16xf32>
    %32 = vector.extract_strided_slice %25 {offsets = [0, 0, 1], sizes = [4, 1, 1], strides = [1, 1, 1]} : vector<4x3x3xf32> to vector<4x1x1xf32>
    %c0_33 = arith.constant 0 : index
    %c0_34 = arith.constant 0 : index
    %c2_35 = arith.constant 2 : index
    %33 = vector.load %arg5[%c0_33, %c0_34, %c2_35] : memref<4x20x20xf32, #tpu.memory_space<vmem>>, vector<4x16x16xf32>
    %34 = vector.broadcast %32 : vector<4x1x1xf32> to vector<4x16x16xf32>
    %35 = arith.mulf %33, %34 : vector<4x16x16xf32>
    %36 = arith.addf %31, %35 : vector<4x16x16xf32>
    %37 = vector.extract_strided_slice %25 {offsets = [0, 0, 2], sizes = [4, 1, 1], strides = [1, 1, 1]} : vector<4x3x3xf32> to vector<4x1x1xf32>
    %c0_36 = arith.constant 0 : index
    %c0_37 = arith.constant 0 : index
    %c4 = arith.constant 4 : index
    %38 = vector.load %arg5[%c0_36, %c0_37, %c4] : memref<4x20x20xf32, #tpu.memory_space<vmem>>, vector<4x16x16xf32>
    %39 = vector.broadcast %37 : vector<4x1x1xf32> to vector<4x16x16xf32>
    %40 = arith.mulf %38, %39 : vector<4x16x16xf32>
    %41 = arith.addf %36, %40 : vector<4x16x16xf32>
    %42 = vector.extract_strided_slice %25 {offsets = [0, 1, 0], sizes = [4, 1, 1], strides = [1, 1, 1]} : vector<4x3x3xf32> to vector<4x1x1xf32>
    %c0_38 = arith.constant 0 : index
    %c2_39 = arith.constant 2 : index
    %c0_40 = arith.constant 0 : index
    %43 = vector.load %arg5[%c0_38, %c2_39, %c0_40] : memref<4x20x20xf32, #tpu.memory_space<vmem>>, vector<4x16x16xf32>
    %44 = vector.broadcast %42 : vector<4x1x1xf32> to vector<4x16x16xf32>
    %45 = arith.mulf %43, %44 : vector<4x16x16xf32>
    %46 = arith.addf %41, %45 : vector<4x16x16xf32>
    %47 = vector.extract_strided_slice %25 {offsets = [0, 1, 1], sizes = [4, 1, 1], strides = [1, 1, 1]} : vector<4x3x3xf32> to vector<4x1x1xf32>
    %c0_41 = arith.constant 0 : index
    %c2_42 = arith.constant 2 : index
    %c2_43 = arith.constant 2 : index
    %48 = vector.load %arg5[%c0_41, %c2_42, %c2_43] : memref<4x20x20xf32, #tpu.memory_space<vmem>>, vector<4x16x16xf32>
    %49 = vector.broadcast %47 : vector<4x1x1xf32> to vector<4x16x16xf32>
    %50 = arith.mulf %48, %49 : vector<4x16x16xf32>
    %51 = arith.addf %46, %50 : vector<4x16x16xf32>
    %52 = vector.extract_strided_slice %25 {offsets = [0, 1, 2], sizes = [4, 1, 1], strides = [1, 1, 1]} : vector<4x3x3xf32> to vector<4x1x1xf32>
    %c0_44 = arith.constant 0 : index
    %c2_45 = arith.constant 2 : index
    %c4_46 = arith.constant 4 : index
    %53 = vector.load %arg5[%c0_44, %c2_45, %c4_46] : memref<4x20x20xf32, #tpu.memory_space<vmem>>, vector<4x16x16xf32>
    %54 = vector.broadcast %52 : vector<4x1x1xf32> to vector<4x16x16xf32>
    %55 = arith.mulf %53, %54 : vector<4x16x16xf32>
    %56 = arith.addf %51, %55 : vector<4x16x16xf32>
    %57 = vector.extract_strided_slice %25 {offsets = [0, 2, 0], sizes = [4, 1, 1], strides = [1, 1, 1]} : vector<4x3x3xf32> to vector<4x1x1xf32>
    %c0_47 = arith.constant 0 : index
    %c4_48 = arith.constant 4 : index
    %c0_49 = arith.constant 0 : index
    %58 = vector.load %arg5[%c0_47, %c4_48, %c0_49] : memref<4x20x20xf32, #tpu.memory_space<vmem>>, vector<4x16x16xf32>
    %59 = vector.broadcast %57 : vector<4x1x1xf32> to vector<4x16x16xf32>
    %60 = arith.mulf %58, %59 : vector<4x16x16xf32>
    %61 = arith.addf %56, %60 : vector<4x16x16xf32>
    %62 = vector.extract_strided_slice %25 {offsets = [0, 2, 1], sizes = [4, 1, 1], strides = [1, 1, 1]} : vector<4x3x3xf32> to vector<4x1x1xf32>
    %c0_50 = arith.constant 0 : index
    %c4_51 = arith.constant 4 : index
    %c2_52 = arith.constant 2 : index
    %63 = vector.load %arg5[%c0_50, %c4_51, %c2_52] : memref<4x20x20xf32, #tpu.memory_space<vmem>>, vector<4x16x16xf32>
    %64 = vector.broadcast %62 : vector<4x1x1xf32> to vector<4x16x16xf32>
    %65 = arith.mulf %63, %64 : vector<4x16x16xf32>
    %66 = arith.addf %61, %65 : vector<4x16x16xf32>
    %67 = vector.extract_strided_slice %25 {offsets = [0, 2, 2], sizes = [4, 1, 1], strides = [1, 1, 1]} : vector<4x3x3xf32> to vector<4x1x1xf32>
    %c0_53 = arith.constant 0 : index
    %c4_54 = arith.constant 4 : index
    %c4_55 = arith.constant 4 : index
    %68 = vector.load %arg5[%c0_53, %c4_54, %c4_55] : memref<4x20x20xf32, #tpu.memory_space<vmem>>, vector<4x16x16xf32>
    %69 = vector.broadcast %67 : vector<4x1x1xf32> to vector<4x16x16xf32>
    %70 = arith.mulf %68, %69 : vector<4x16x16xf32>
    %71 = arith.addf %66, %70 : vector<4x16x16xf32>
    %c0_56 = arith.constant 0 : index
    %c0_57 = arith.constant 0 : index
    %c0_58 = arith.constant 0 : index
    %72 = vector.load %arg3[%c0_56, %c0_57, %c0_58] : memref<4x1x1xf32, #tpu.memory_space<vmem>>, vector<4x1x1xf32>
    %73 = vector.broadcast %72 : vector<4x1x1xf32> to vector<4x16x16xf32>
    %74 = arith.addf %71, %73 : vector<4x16x16xf32>
    %c0_59 = arith.constant 0 : index
    %c0_60 = arith.constant 0 : index
    %c0_61 = arith.constant 0 : index
    %c0_62 = arith.constant 0 : index
    %75 = vector.load %arg4[%c0_59, %c0_60, %c0_61, %c0_62] : memref<1x4x16x16xf32, #tpu.memory_space<vmem>>, vector<1x4x16x16xf32>
    %76 = vector.shape_cast %75 : vector<1x4x16x16xf32> to vector<4x16x16xf32>
    %77 = vector.shape_cast %74 : vector<4x16x16xf32> to vector<1x4x16x16xf32>
    tpu.vector_store %arg4[%c0_59, %c0_60, %c0_61, %c0_62], %77 {strides = array<i32>} : memref<1x4x16x16xf32, #tpu.memory_space<vmem>>, vector<1x4x16x16xf32>,
    return
  }
  func.func @transform_0(%arg0: i32) -> (i32, i32, i32, i32) {
    %c1_i32 = arith.constant 1 : i32
    %c0_i32 = arith.constant 0 : i32
    %c0_i32_0 = arith.constant 0 : i32
    %c0_i32_1 = arith.constant 0 : i32
    return %arg0, %c1_i32, %c0_i32, %c0_i32_0 : i32, i32, i32, i32
  }
  func.func @transform_1(%arg0: i32) -> (i32, i32, i32) {
    %c0_i32 = arith.constant 0 : i32
    %c0_i32_0 = arith.constant 0 : i32
    %c0_i32_1 = arith.constant 0 : i32
    %c0_i32_2 = arith.constant 0 : i32
    return %c0_i32, %c0_i32_0, %c0_i32_1 : i32, i32, i32
  }
  func.func @transform_2(%arg0: i32) -> (i32, i32, i32) {
    %c0_i32 = arith.constant 0 : i32
    %c0_i32_0 = arith.constant 0 : i32
    %c0_i32_1 = arith.constant 0 : i32
    %c0_i32_2 = arith.constant 0 : i32
    return %c0_i32, %c0_i32_0, %c0_i32_1 : i32, i32, i32
  }
  func.func @transform_3(%arg0: i32) -> (i32, i32, i32, i32) {
    %c0_i32 = arith.constant 0 : i32
    %c0_i32_0 = arith.constant 0 : i32
    %c0_i32_1 = arith.constant 0 : i32
    %c0_i32_2 = arith.constant 0 : i32
    return %arg0, %c0_i32, %c0_i32_0, %c0_i32_1 : i32, i32, i32, i32
  }
}

module attributes {stable_mosaic.version = 11 : i64} {
  func.func @kernel(%arg0: i32, %arg1: memref<1x4x16x16xf32, #tpu.memory_space<vmem>>, %arg2: memref<4x3x3xf32, #tpu.memory_space<vmem>>, %arg3: memref<4x1x1xf32, #tpu.memory_space<vmem>>, %arg4: memref<1x4x16x16xf32, #tpu.memory_space<vmem>>, %arg5: memref<4x18x18xf32, #tpu.memory_space<vmem>>) attributes {dimension_semantics = [#tpu.dimension_semantics<parallel>], iteration_bounds = array<i64: 2>, scalar_prefetch = 0 : i64, scratch_operands = 1 : i64, tpu.core_type = #tpu.core_type<tc>, window_params = [{transform_indices = @transform_0, window_bounds = array<i64: 1, 4, 16, 16>}, {pipeline_mode = #tpu.pipeline_mode<synchronous>, transform_indices = @transform_1, window_bounds = array<i64: 4, 3, 3>}, {pipeline_mode = #tpu.pipeline_mode<synchronous>, transform_indices = @transform_2, window_bounds = array<i64: 4, 1, 1>}, {transform_indices = @transform_3, window_bounds = array<i64: 1, 4, 16, 16>}]} {
    %cst = arith.constant 0.000000e+00 : f32
    %0 = vector.broadcast %cst : f32 to vector<4x18x18xf32>
    %c0 = arith.constant 0 : index
    %c0_0 = arith.constant 0 : index
    %c0_1 = arith.constant 0 : index
    %1 = vector.load %arg5[%c0, %c0_0, %c0_1] : memref<4x18x18xf32, #tpu.memory_space<vmem>>, vector<4x18x18xf32>
    tpu.vector_store %arg5[%c0, %c0_0, %c0_1], %0 {strides = array<i32>} : memref<4x18x18xf32, #tpu.memory_space<vmem>>, vector<4x18x18xf32>,
    %c0_2 = arith.constant 0 : index
    %c0_3 = arith.constant 0 : index
    %c0_4 = arith.constant 0 : index
    %c0_5 = arith.constant 0 : index
    %2 = vector.load %arg1[%c0_2, %c0_3, %c0_4, %c0_5] : memref<1x4x16x16xf32, #tpu.memory_space<vmem>>, vector<1x4x16x16xf32>
    %3 = vector.shape_cast %2 : vector<1x4x16x16xf32> to vector<4x16x16xf32>
    %c0_6 = arith.constant 0 : index
    %c1 = arith.constant 1 : index
    %c1_7 = arith.constant 1 : index
    %4 = vector.load %arg5[%c0_6, %c1, %c1_7] : memref<4x18x18xf32, #tpu.memory_space<vmem>>, vector<4x16x16xf32>
    tpu.vector_store %arg5[%c0_6, %c1, %c1_7], %3 {strides = array<i32>} : memref<4x18x18xf32, #tpu.memory_space<vmem>>, vector<4x16x16xf32>,
    %c0_8 = arith.constant 0 : index
    %c0_9 = arith.constant 0 : index
    %c0_10 = arith.constant 0 : index
    %5 = vector.load %arg2[%c0_8, %c0_9, %c0_10] : memref<4x3x3xf32, #tpu.memory_space<vmem>>, vector<4x3x3xf32>
    %cst_11 = arith.constant 0.000000e+00 : f32
    %6 = vector.broadcast %cst_11 : f32 to vector<4x16x16xf32>
    %7 = vector.extract_strided_slice %5 {offsets = [0, 0, 0], sizes = [4, 1, 1], strides = [1, 1, 1]} : vector<4x3x3xf32> to vector<4x1x1xf32>
    %c0_12 = arith.constant 0 : index
    %c0_13 = arith.constant 0 : index
    %c0_14 = arith.constant 0 : index
    %8 = vector.load %arg5[%c0_12, %c0_13, %c0_14] : memref<4x18x18xf32, #tpu.memory_space<vmem>>, vector<4x16x16xf32>
    %9 = vector.broadcast %7 : vector<4x1x1xf32> to vector<4x16x16xf32>
    %10 = arith.mulf %8, %9 : vector<4x16x16xf32>
    %11 = arith.addf %6, %10 : vector<4x16x16xf32>
    %12 = vector.extract_strided_slice %5 {offsets = [0, 0, 1], sizes = [4, 1, 1], strides = [1, 1, 1]} : vector<4x3x3xf32> to vector<4x1x1xf32>
    %c0_15 = arith.constant 0 : index
    %c0_16 = arith.constant 0 : index
    %c1_17 = arith.constant 1 : index
    %13 = vector.load %arg5[%c0_15, %c0_16, %c1_17] : memref<4x18x18xf32, #tpu.memory_space<vmem>>, vector<4x16x16xf32>
    %14 = vector.broadcast %12 : vector<4x1x1xf32> to vector<4x16x16xf32>
    %15 = arith.mulf %13, %14 : vector<4x16x16xf32>
    %16 = arith.addf %11, %15 : vector<4x16x16xf32>
    %17 = vector.extract_strided_slice %5 {offsets = [0, 0, 2], sizes = [4, 1, 1], strides = [1, 1, 1]} : vector<4x3x3xf32> to vector<4x1x1xf32>
    %c0_18 = arith.constant 0 : index
    %c0_19 = arith.constant 0 : index
    %c2 = arith.constant 2 : index
    %18 = vector.load %arg5[%c0_18, %c0_19, %c2] : memref<4x18x18xf32, #tpu.memory_space<vmem>>, vector<4x16x16xf32>
    %19 = vector.broadcast %17 : vector<4x1x1xf32> to vector<4x16x16xf32>
    %20 = arith.mulf %18, %19 : vector<4x16x16xf32>
    %21 = arith.addf %16, %20 : vector<4x16x16xf32>
    %22 = vector.extract_strided_slice %5 {offsets = [0, 1, 0], sizes = [4, 1, 1], strides = [1, 1, 1]} : vector<4x3x3xf32> to vector<4x1x1xf32>
    %c0_20 = arith.constant 0 : index
    %c1_21 = arith.constant 1 : index
    %c0_22 = arith.constant 0 : index
    %23 = vector.load %arg5[%c0_20, %c1_21, %c0_22] : memref<4x18x18xf32, #tpu.memory_space<vmem>>, vector<4x16x16xf32>
    %24 = vector.broadcast %22 : vector<4x1x1xf32> to vector<4x16x16xf32>
    %25 = arith.mulf %23, %24 : vector<4x16x16xf32>
    %26 = arith.addf %21, %25 : vector<4x16x16xf32>
    %27 = vector.extract_strided_slice %5 {offsets = [0, 1, 1], sizes = [4, 1, 1], strides = [1, 1, 1]} : vector<4x3x3xf32> to vector<4x1x1xf32>
    %c0_23 = arith.constant 0 : index
    %c1_24 = arith.constant 1 : index
    %c1_25 = arith.constant 1 : index
    %28 = vector.load %arg5[%c0_23, %c1_24, %c1_25] : memref<4x18x18xf32, #tpu.memory_space<vmem>>, vector<4x16x16xf32>
    %29 = vector.broadcast %27 : vector<4x1x1xf32> to vector<4x16x16xf32>
    %30 = arith.mulf %28, %29 : vector<4x16x16xf32>
    %31 = arith.addf %26, %30 : vector<4x16x16xf32>
    %32 = vector.extract_strided_slice %5 {offsets = [0, 1, 2], sizes = [4, 1, 1], strides = [1, 1, 1]} : vector<4x3x3xf32> to vector<4x1x1xf32>
    %c0_26 = arith.constant 0 : index
    %c1_27 = arith.constant 1 : index
    %c2_28 = arith.constant 2 : index
    %33 = vector.load %arg5[%c0_26, %c1_27, %c2_28] : memref<4x18x18xf32, #tpu.memory_space<vmem>>, vector<4x16x16xf32>
    %34 = vector.broadcast %32 : vector<4x1x1xf32> to vector<4x16x16xf32>
    %35 = arith.mulf %33, %34 : vector<4x16x16xf32>
    %36 = arith.addf %31, %35 : vector<4x16x16xf32>
    %37 = vector.extract_strided_slice %5 {offsets = [0, 2, 0], sizes = [4, 1, 1], strides = [1, 1, 1]} : vector<4x3x3xf32> to vector<4x1x1xf32>
    %c0_29 = arith.constant 0 : index
    %c2_30 = arith.constant 2 : index
    %c0_31 = arith.constant 0 : index
    %38 = vector.load %arg5[%c0_29, %c2_30, %c0_31] : memref<4x18x18xf32, #tpu.memory_space<vmem>>, vector<4x16x16xf32>
    %39 = vector.broadcast %37 : vector<4x1x1xf32> to vector<4x16x16xf32>
    %40 = arith.mulf %38, %39 : vector<4x16x16xf32>
    %41 = arith.addf %36, %40 : vector<4x16x16xf32>
    %42 = vector.extract_strided_slice %5 {offsets = [0, 2, 1], sizes = [4, 1, 1], strides = [1, 1, 1]} : vector<4x3x3xf32> to vector<4x1x1xf32>
    %c0_32 = arith.constant 0 : index
    %c2_33 = arith.constant 2 : index
    %c1_34 = arith.constant 1 : index
    %43 = vector.load %arg5[%c0_32, %c2_33, %c1_34] : memref<4x18x18xf32, #tpu.memory_space<vmem>>, vector<4x16x16xf32>
    %44 = vector.broadcast %42 : vector<4x1x1xf32> to vector<4x16x16xf32>
    %45 = arith.mulf %43, %44 : vector<4x16x16xf32>
    %46 = arith.addf %41, %45 : vector<4x16x16xf32>
    %47 = vector.extract_strided_slice %5 {offsets = [0, 2, 2], sizes = [4, 1, 1], strides = [1, 1, 1]} : vector<4x3x3xf32> to vector<4x1x1xf32>
    %c0_35 = arith.constant 0 : index
    %c2_36 = arith.constant 2 : index
    %c2_37 = arith.constant 2 : index
    %48 = vector.load %arg5[%c0_35, %c2_36, %c2_37] : memref<4x18x18xf32, #tpu.memory_space<vmem>>, vector<4x16x16xf32>
    %49 = vector.broadcast %47 : vector<4x1x1xf32> to vector<4x16x16xf32>
    %50 = arith.mulf %48, %49 : vector<4x16x16xf32>
    %51 = arith.addf %46, %50 : vector<4x16x16xf32>
    %c0_38 = arith.constant 0 : index
    %c0_39 = arith.constant 0 : index
    %c0_40 = arith.constant 0 : index
    %52 = vector.load %arg3[%c0_38, %c0_39, %c0_40] : memref<4x1x1xf32, #tpu.memory_space<vmem>>, vector<4x1x1xf32>
    %53 = vector.broadcast %52 : vector<4x1x1xf32> to vector<4x16x16xf32>
    %54 = arith.addf %51, %53 : vector<4x16x16xf32>
    %c0_41 = arith.constant 0 : index
    %c0_42 = arith.constant 0 : index
    %c0_43 = arith.constant 0 : index
    %c0_44 = arith.constant 0 : index
    %55 = vector.load %arg4[%c0_41, %c0_42, %c0_43, %c0_44] : memref<1x4x16x16xf32, #tpu.memory_space<vmem>>, vector<1x4x16x16xf32>
    %56 = vector.shape_cast %55 : vector<1x4x16x16xf32> to vector<4x16x16xf32>
    %57 = vector.shape_cast %54 : vector<4x16x16xf32> to vector<1x4x16x16xf32>
    tpu.vector_store %arg4[%c0_41, %c0_42, %c0_43, %c0_44], %57 {strides = array<i32>} : memref<1x4x16x16xf32, #tpu.memory_space<vmem>>, vector<1x4x16x16xf32>,
    return
  }
  func.func @transform_0(%arg0: i32) -> (i32, i32, i32, i32) {
    %c0_i32 = arith.constant 0 : i32
    %c0_i32_0 = arith.constant 0 : i32
    %c0_i32_1 = arith.constant 0 : i32
    %c0_i32_2 = arith.constant 0 : i32
    return %arg0, %c0_i32, %c0_i32_0, %c0_i32_1 : i32, i32, i32, i32
  }
  func.func @transform_1(%arg0: i32) -> (i32, i32, i32) {
    %c0_i32 = arith.constant 0 : i32
    %c0_i32_0 = arith.constant 0 : i32
    %c0_i32_1 = arith.constant 0 : i32
    %c0_i32_2 = arith.constant 0 : i32
    return %c0_i32, %c0_i32_0, %c0_i32_1 : i32, i32, i32
  }
  func.func @transform_2(%arg0: i32) -> (i32, i32, i32) {
    %c0_i32 = arith.constant 0 : i32
    %c0_i32_0 = arith.constant 0 : i32
    %c0_i32_1 = arith.constant 0 : i32
    %c0_i32_2 = arith.constant 0 : i32
    return %c0_i32, %c0_i32_0, %c0_i32_1 : i32, i32, i32
  }
  func.func @transform_3(%arg0: i32) -> (i32, i32, i32, i32) {
    %c0_i32 = arith.constant 0 : i32
    %c0_i32_0 = arith.constant 0 : i32
    %c0_i32_1 = arith.constant 0 : i32
    %c0_i32_2 = arith.constant 0 : i32
    return %arg0, %c0_i32, %c0_i32_0, %c0_i32_1 : i32, i32, i32, i32
  }
}

module attributes {stable_mosaic.version = 11 : i64} {
  func.func @kernel(%arg0: i32, %arg1: i32, %arg2: memref<1x16x256xf32, #tpu.memory_space<vmem>>, %arg3: memref<1x4x256xf32, #tpu.memory_space<vmem>>, %arg4: memref<1x4x256xf32, #tpu.memory_space<vmem>>, %arg5: memref<1x4x256xf32, #tpu.memory_space<vmem>>, %arg6: memref<1x4x256xf32, #tpu.memory_space<vmem>>, %arg7: memref<16x16xf32, #tpu.memory_space<vmem>>, %arg8: memref<16x1xf32, #tpu.memory_space<vmem>>, %arg9: memref<1x16x256xf32, #tpu.memory_space<vmem>>) attributes {dimension_semantics = [#tpu.dimension_semantics<parallel>, #tpu.dimension_semantics<parallel>], iteration_bounds = array<i64: 2, 1>, scalar_prefetch = 0 : i64, scratch_operands = 0 : i64, tpu.core_type = #tpu.core_type<tc>, window_params = [{transform_indices = @transform_0, window_bounds = array<i64: 1, 16, 256>}, {transform_indices = @transform_1, window_bounds = array<i64: 1, 4, 256>}, {transform_indices = @transform_2, window_bounds = array<i64: 1, 4, 256>}, {transform_indices = @transform_3, window_bounds = array<i64: 1, 4, 256>}, {transform_indices = @transform_4, window_bounds = array<i64: 1, 4, 256>}, {pipeline_mode = #tpu.pipeline_mode<synchronous>, transform_indices = @transform_5, window_bounds = array<i64: 16, 16>}, {pipeline_mode = #tpu.pipeline_mode<synchronous>, transform_indices = @transform_6, window_bounds = array<i64: 16, 1>}, {transform_indices = @transform_7, window_bounds = array<i64: 1, 16, 256>}]} {
    %c0 = arith.constant 0 : index
    %c0_0 = arith.constant 0 : index
    %0 = vector.load %arg7[%c0, %c0_0] : memref<16x16xf32, #tpu.memory_space<vmem>>, vector<16x4xf32>
    %c0_1 = arith.constant 0 : index
    %c0_2 = arith.constant 0 : index
    %c0_3 = arith.constant 0 : index
    %1 = vector.load %arg3[%c0_1, %c0_2, %c0_3] : memref<1x4x256xf32, #tpu.memory_space<vmem>>, vector<1x4x256xf32>
    %2 = vector.shape_cast %1 : vector<1x4x256xf32> to vector<4x256xf32>
    %cst = arith.constant dense<0.000000e+00> : vector<16x256xf32>
    %3 = tpu.matmul %0, %2, %cst {dimension_numbers = #tpu.dot_dimension_numbers<[1], [0], [0], [1], [0, 0, 1, 1], [], []>} : vector<16x4xf32>, vector<4x256xf32>, vector<16x256xf32> -> vector<16x256xf32>
    %c0_4 = arith.constant 0 : index
    %c4 = arith.constant 4 : index
    %4 = vector.load %arg7[%c0_4, %c4] : memref<16x16xf32, #tpu.memory_space<vmem>>, vector<16x4xf32>
    %c0_5 = arith.constant 0 : index
    %c0_6 = arith.constant 0 : index
    %c0_7 = arith.constant 0 : index
    %5 = vector.load %arg4[%c0_5, %c0_6, %c0_7] : memref<1x4x256xf32, #tpu.memory_space<vmem>>, vector<1x4x256xf32>
    %6 = vector.shape_cast %5 : vector<1x4x256xf32> to vector<4x256xf32>
    %cst_8 = arith.constant dense<0.000000e+00> : vector<16x256xf32>
    %7 = tpu.matmul %4, %6, %cst_8 {dimension_numbers = #tpu.dot_dimension_numbers<[1], [0], [0], [1], [0, 0, 1, 1], [], []>} : vector<16x4xf32>, vector<4x256xf32>, vector<16x256xf32> -> vector<16x256xf32>
    %8 = arith.addf %3, %7 : vector<16x256xf32>
    %c0_9 = arith.constant 0 : index
    %c8 = arith.constant 8 : index
    %9 = vector.load %arg7[%c0_9, %c8] : memref<16x16xf32, #tpu.memory_space<vmem>>, vector<16x4xf32>
    %c0_10 = arith.constant 0 : index
    %c0_11 = arith.constant 0 : index
    %c0_12 = arith.constant 0 : index
    %10 = vector.load %arg5[%c0_10, %c0_11, %c0_12] : memref<1x4x256xf32, #tpu.memory_space<vmem>>, vector<1x4x256xf32>
    %11 = vector.shape_cast %10 : vector<1x4x256xf32> to vector<4x256xf32>
    %cst_13 = arith.constant dense<0.000000e+00> : vector<16x256xf32>
    %12 = tpu.matmul %9, %11, %cst_13 {dimension_numbers = #tpu.dot_dimension_numbers<[1], [0], [0], [1], [0, 0, 1, 1], [], []>} : vector<16x4xf32>, vector<4x256xf32>, vector<16x256xf32> -> vector<16x256xf32>
    %13 = arith.addf %8, %12 : vector<16x256xf32>
    %c0_14 = arith.constant 0 : index
    %c12 = arith.constant 12 : index
    %14 = vector.load %arg7[%c0_14, %c12] : memref<16x16xf32, #tpu.memory_space<vmem>>, vector<16x4xf32>
    %c0_15 = arith.constant 0 : index
    %c0_16 = arith.constant 0 : index
    %c0_17 = arith.constant 0 : index
    %15 = vector.load %arg6[%c0_15, %c0_16, %c0_17] : memref<1x4x256xf32, #tpu.memory_space<vmem>>, vector<1x4x256xf32>
    %16 = vector.shape_cast %15 : vector<1x4x256xf32> to vector<4x256xf32>
    %cst_18 = arith.constant dense<0.000000e+00> : vector<16x256xf32>
    %17 = tpu.matmul %14, %16, %cst_18 {dimension_numbers = #tpu.dot_dimension_numbers<[1], [0], [0], [1], [0, 0, 1, 1], [], []>} : vector<16x4xf32>, vector<4x256xf32>, vector<16x256xf32> -> vector<16x256xf32>
    %18 = arith.addf %13, %17 : vector<16x256xf32>
    %c0_19 = arith.constant 0 : index
    %c0_20 = arith.constant 0 : index
    %19 = vector.load %arg8[%c0_19, %c0_20] : memref<16x1xf32, #tpu.memory_space<vmem>>, vector<16x1xf32>
    %20 = vector.broadcast %19 : vector<16x1xf32> to vector<16x256xf32>
    %21 = arith.addf %18, %20 : vector<16x256xf32>
    %cst_21 = arith.constant 5.000000e-01 : f32
    %22 = vector.broadcast %cst_21 : f32 to vector<16x256xf32>
    %23 = arith.mulf %22, %21 : vector<16x256xf32>
    %cst_22 = arith.constant 0.707106769 : f32
    %24 = vector.broadcast %cst_22 : f32 to vector<16x256xf32>
    %25 = arith.mulf %21, %24 : vector<16x256xf32>
    %26 = math.erf %25 : vector<16x256xf32>
    %cst_23 = arith.constant 1.000000e+00 : f32
    %27 = vector.broadcast %cst_23 : f32 to vector<16x256xf32>
    %28 = arith.addf %27, %26 : vector<16x256xf32>
    %29 = arith.mulf %23, %28 : vector<16x256xf32>
    %c0_24 = arith.constant 0 : index
    %c0_25 = arith.constant 0 : index
    %c0_26 = arith.constant 0 : index
    %30 = vector.load %arg2[%c0_24, %c0_25, %c0_26] : memref<1x16x256xf32, #tpu.memory_space<vmem>>, vector<1x16x256xf32>
    %31 = vector.shape_cast %30 : vector<1x16x256xf32> to vector<16x256xf32>
    %32 = arith.mulf %29, %31 : vector<16x256xf32>
    %c0_27 = arith.constant 0 : index
    %c0_28 = arith.constant 0 : index
    %c0_29 = arith.constant 0 : index
    %33 = vector.load %arg9[%c0_27, %c0_28, %c0_29] : memref<1x16x256xf32, #tpu.memory_space<vmem>>, vector<1x16x256xf32>
    %34 = vector.shape_cast %33 : vector<1x16x256xf32> to vector<16x256xf32>
    %35 = vector.shape_cast %32 : vector<16x256xf32> to vector<1x16x256xf32>
    tpu.vector_store %arg9[%c0_27, %c0_28, %c0_29], %35 {strides = array<i32>} : memref<1x16x256xf32, #tpu.memory_space<vmem>>, vector<1x16x256xf32>,
    return
  }
  func.func @transform_0(%arg0: i32, %arg1: i32) -> (i32, i32, i32) {
    %c0_i32 = arith.constant 0 : i32
    %c0_i32_0 = arith.constant 0 : i32
    return %arg0, %c0_i32, %arg1 : i32, i32, i32
  }
  func.func @transform_1(%arg0: i32, %arg1: i32) -> (i32, i32, i32) {
    %c0_i32 = arith.constant 0 : i32
    %c0_i32_0 = arith.constant 0 : i32
    return %arg0, %c0_i32, %arg1 : i32, i32, i32
  }
  func.func @transform_2(%arg0: i32, %arg1: i32) -> (i32, i32, i32) {
    %c0_i32 = arith.constant 0 : i32
    %c0_i32_0 = arith.constant 0 : i32
    return %arg0, %c0_i32, %arg1 : i32, i32, i32
  }
  func.func @transform_3(%arg0: i32, %arg1: i32) -> (i32, i32, i32) {
    %c0_i32 = arith.constant 0 : i32
    %c0_i32_0 = arith.constant 0 : i32
    return %arg0, %c0_i32, %arg1 : i32, i32, i32
  }
  func.func @transform_4(%arg0: i32, %arg1: i32) -> (i32, i32, i32) {
    %c0_i32 = arith.constant 0 : i32
    %c0_i32_0 = arith.constant 0 : i32
    return %arg0, %c0_i32, %arg1 : i32, i32, i32
  }
  func.func @transform_5(%arg0: i32, %arg1: i32) -> (i32, i32) {
    %c0_i32 = arith.constant 0 : i32
    %c0_i32_0 = arith.constant 0 : i32
    %c0_i32_1 = arith.constant 0 : i32
    return %c0_i32, %c0_i32_0 : i32, i32
  }
  func.func @transform_6(%arg0: i32, %arg1: i32) -> (i32, i32) {
    %c0_i32 = arith.constant 0 : i32
    %c0_i32_0 = arith.constant 0 : i32
    %c0_i32_1 = arith.constant 0 : i32
    return %c0_i32, %c0_i32_0 : i32, i32
  }
  func.func @transform_7(%arg0: i32, %arg1: i32) -> (i32, i32, i32) {
    %c0_i32 = arith.constant 0 : i32
    %c0_i32_0 = arith.constant 0 : i32
    return %arg0, %c0_i32, %arg1 : i32, i32, i32
  }
}

</mosaic_0001>

<bundles_post_ra>
// kernel: dafm_forward.5
= control target key start
LH: loop header
LB: loop body
LE: loop exit
PB: predicated region body
PF: predicated region fallthrough
CT: control target
= control target key end

     0   :  { %s1015_s12 = smov 0   ;;  %s1461_s0 = inlined_call_operand.vmem [shape: f32[2,16,16,16], index: 0, kind: input, shape index: {}]   ;;  %s1462_s1 = inlined_call_operand.vmem [shape: f32[4,3,3], index: 1, kind: input, shape index: {}]   ;;  %s1463_s2 = inlined_call_operand.vmem [shape: f32[4,1,1], index: 2, kind: input, shape index: {}]   ;;  %s1464_s3 = inlined_call_operand.vmem [shape: f32[2,4,16,16], index: 3, kind: output, shape index: {}]  }
   0x1 LB: > { %s878_s13 = sadd.s32 4294967295, %s988_s12   ;;  %p882_p0 = scmp.ge.s32.totalorder %s988_s12, 1  ;;  %s988_s12 = sphi %s1015_s12, %s13_s12  }
   0x2   : > { %p137_p1 = scmp.lt.s32.totalorder %s988_s12, 3 }
   0x4   : > { %p138_p2 = pnand %p882_p0, %p137_p1 }
   0x5   : > { %s990_s18 = smov (!%p138_p2), 127   ;;  %s991_s23 = smov (!%p138_p2), 126  }
   0x6   : > { %141 = sbr.rel (%p138_p2) target bundleno = 399 (0x18f), region = 32  ;;  %p1075_p3 = scmp.lt.s32.totalorder (!%p138_p2), %s878_s13, 1 }
   0x7   : > { %s994_s29 = smov (!%p138_p2), 1  }
   0xb   : > { %v236_v0 = vld [vmem:[%s1462_s1 + $0x8] sm:$0x7]  ;;  %v234_v1 = vld [vmem:[%s1462_s1] sm:$0x7]  ;;  %v235_v2 = vld [vmem:[%s1462_s1 + $0x4] sm:$0x7] }
   0xc   : > { %282 = vrot.lane.b32.xlu1 %v236_v0, %s990_s18  ;;  %278 = vrot.lane.b32.xlu0 %v234_v1, %s990_s18  ;;  %895 = vpush %v234_v1  ;;  %v237_v3 = vld [vmem:[%s1462_s1 + $0xc] sm:$0x7]  ;;  %v1043_v4 = vrot.slane %v235_v2, 1  ;;  %v1045_v5 = vrot.slane %v234_v1, 1  ;;  %v1053_v7 = vrot.slane %v236_v0, 1  ;;  %v992_v8 = vmov 0  }
   0xd   : > { %897 = vpush %v235_v2  ;;  %v1051_v6 = vrot.slane %v237_v3, 1  ;;  %981 = vset.pattern.permute.xlu1 %v992_v8  ;;  %980 = vset.pattern.permute.xlu0 %v992_v8  ;;  %v1067_v9 = vrot.slane %v235_v2, 2  ;;  %v1069_v10 = vrot.slane %v234_v1, 2  ;;  %v1071_v11 = vrot.slane %v237_v3, 2  ;;  %s1467_s13 = smov (!%p1075_p3, %s878_s13), 1 }
   0xe   : > { %899 = vpush %v236_v0  ;;  %v1083_v12 = vrot.slane %v236_v0, 2  ;;  %vm171_vm0 = vcmask 146432   ;;  %vm174_vm1 = vcmask 140288   ;;  %v993_v13 = vmov 0.0   ;;  %s893_s25 = sshll.u32 %s1467_s13, 8 }
   0xf   : > { %901 = vpush %v237_v3  ;;  %s165_s28 = scalar_lea.vmem %s1461_s0, %s893_s25  ;;  %v888_v22 = vld [vmem:[%s1463_s2 + $0x1] ss:$0 sm:$0xff]  ;;  %v887_v23 = vld [vmem:[%s1463_s2] ss:$0 sm:$0xff]  ;;  %v889_v24 = vld [vmem:[%s1463_s2 + $0x2] ss:$0 sm:$0xff] }
  0x10   : > { %284 = vrot.lane.b32.xlu1 %v237_v3, %s990_s18  ;;  %280 = vrot.lane.b32.xlu0 %v235_v2, %s990_s18  ;;  %173 = vst.msk [vmem:[#allocation2 + $0x8] sm:$0xff] %vm171_vm0, %v993_v13  ;;  %172 = vst.msk [vmem:[#allocation2] sm:$0xff] %vm171_vm0, %v993_v13  ;;  %v186_v14 = vld [vmem:[%s165_s28 + $0x8] sm:$0xff]  ;;  %v185_v15 = vld [vmem:[%s165_s28] sm:$0xff]  ;;  %vm225_vm2 = vcmask 138248   ;;  %vm814_vm3 = vcmask 130048  }
  0x11   : > { %175 = vst.msk [vmem:[#allocation2 + $0x10] sm:$0x3] %vm174_vm1, %v993_v13  ;;  %178 = vst.msk [vmem:[#allocation2 + $0x28] sm:$0x3] %vm174_vm1, %v993_v13  ;;  %v188_v16 = vld [vmem:[%s165_s28 + $0x18] sm:$0xff]  ;;  %v187_v17 = vld [vmem:[%s165_s28 + $0x10] sm:$0xff] }
  0x12   : > { %176 = vst.msk [vmem:[#allocation2 + $0x18] sm:$0xff] %vm171_vm0, %v993_v13  ;;  %177 = vst.msk [vmem:[#allocation2 + $0x20] sm:$0xff] %vm171_vm0, %v993_v13  ;;  %v190_v18 = vld [vmem:[%s165_s28 + $0x28] sm:$0xff]  ;;  %v189_v19 = vld [vmem:[%s165_s28 + $0x20] sm:$0xff] }
  0x13   : > { %179 = vst.msk [vmem:[#allocation2 + $0x30] sm:$0xff] %vm171_vm0, %v993_v13  ;;  %180 = vst.msk [vmem:[#allocation2 + $0x38] sm:$0xff] %vm171_vm0, %v993_v13  ;;  %v192_v20 = vld [vmem:[%s165_s28 + $0x38] sm:$0xff]  ;;  %v191_v21 = vld [vmem:[%s165_s28 + $0x30] sm:$0xff] }
  0x14   : > { %348 = vrot.lane.b32.xlu1 %v235_v2, %s991_s23  ;;  %346 = vrot.lane.b32.xlu0 %v234_v1, %s991_s23  ;;  %181 = vst.msk [vmem:[#allocation2 + $0x40] sm:$0x3] %vm174_vm1, %v993_v13  ;;  %184 = vst.msk [vmem:[#allocation2 + $0x58] sm:$0x3] %vm174_vm1, %v993_v13  ;;  %v890_v25 = vld [vmem:[%s1463_s2 + $0x3] ss:$0 sm:$0xff] }
  0x15   : > { %182 = vst.msk [vmem:[#allocation2 + $0x48] sm:$0xff] %vm171_vm0, %v993_v13  ;;  %183 = vst.msk [vmem:[#allocation2 + $0x50] sm:$0xff] %vm171_vm0, %v993_v13 }
  0x18   : > { %352 = vrot.lane.b32.xlu1 %v237_v3, %s991_s23  ;;  %350 = vrot.lane.b32.xlu0 %v236_v0, %s991_s23 }
  0x1c   : > { %456 = vrot.lane.b32.xlu1 %v1043_v4, %s990_s18  ;;  %454 = vrot.lane.b32.xlu0 %v1045_v5, %s990_s18 }
  0x20   : > { %460 = vrot.lane.b32.xlu1 %v1051_v6, %s990_s18  ;;  %458 = vrot.lane.b32.xlu0 %v1053_v7, %s990_s18 }
  0x24   : > { %524 = vrot.lane.b32.xlu1 %v1043_v4, %s991_s23  ;;  %522 = vrot.lane.b32.xlu0 %v1045_v5, %s991_s23 }
  0x28   : > { %528 = vrot.lane.b32.xlu1 %v1051_v6, %s991_s23  ;;  %526 = vrot.lane.b32.xlu0 %v1053_v7, %s991_s23 }
  0x2c   : > { %632 = vrot.lane.b32.xlu1 %v1067_v9, %s990_s18  ;;  %630 = vrot.lane.b32.xlu0 %v1069_v10, %s990_s18 }
  0x30   : > { %636 = vrot.lane.b32.xlu1 %v1071_v11, %s990_s18  ;;  %634 = vrot.lane.b32.xlu0 %v1083_v12, %s990_s18 }
  0x34   : > { %700 = vrot.lane.b32.xlu1 %v1067_v9, %s991_s23  ;;  %698 = vrot.lane.b32.xlu0 %v1069_v10, %s991_s23 }
  0x38   : > { %704 = vrot.lane.b32.xlu1 %v1071_v11, %s991_s23  ;;  %702 = vrot.lane.b32.xlu0 %v1083_v12, %s991_s23 }
  0x3c   : > { %203 = vrot.lane.b32.xlu1 %v186_v14, %s994_s29  ;;  %201 = vrot.lane.b32.xlu0 %v185_v15, %s994_s29 }
  0x3d   : > { %s896_s11 = spop %895 }
  0x3e   : > { %s1127_s14 = spop %897  ;;  %v248_v54 = vstv %s896_s11 }
  0x3f   : > { %s1131_s15 = spop %899 }
  0x40   : > { %207 = vrot.lane.b32.xlu1 %v188_v16, %s994_s29  ;;  %205 = vrot.lane.b32.xlu0 %v187_v17, %s994_s29  ;;  %s1133_s16 = spop %901  ;;  %v256_v14 = vstv %s1131_s15 }
  0x44   : > { %211 = vrot.lane.b32.xlu1 %v190_v18, %s994_s29  ;;  %209 = vrot.lane.b32.xlu0 %v189_v19, %s994_s29 }
  0x48   : > { %215 = vrot.lane.b32.xlu1 %v192_v20, %s994_s29  ;;  %213 = vrot.lane.b32.xlu0 %v191_v21, %s994_s29 }
  0x4c   : > { %795 = vperm.xlu1 %981, %v888_v22   ;;  %791 = vperm.xlu0 %980, %v887_v23  }
  0x50   : > { %799 = vperm.xlu1 %981, %v889_v24   ;;  %803 = vperm.xlu0 %980, %v890_v25  }
  0x7e   : > { %v283_v26 = vpop.permute.xlu1 %282  ;;  %v279_v27 = vpop.permute.xlu0 %278 }
  0x7f   : > { %903 = vpush %v279_v27 }
  0x82   : > { %v285_v28 = vpop.permute.xlu1 %284  ;;  %v281_v29 = vpop.permute.xlu0 %280 }
  0x83   : > { %905 = vpush %v281_v29 }
  0x84   : > { %907 = vpush %v283_v26 }
  0x85   : > { %909 = vpush %v285_v28 }
  0x86   : > { %v349_v30 = vpop.permute.xlu1 %348  ;;  %v347_v31 = vpop.permute.xlu0 %346 }
  0x87   : > { %911 = vpush %v347_v31 }
  0x88   : > { %913 = vpush %v349_v30 }
  0x8a   : > { %v353_v32 = vpop.permute.xlu1 %352  ;;  %v351_v33 = vpop.permute.xlu0 %350 }
  0x8b   : > { %915 = vpush %v351_v33 }
  0x8c   : > { %917 = vpush %v353_v32 }
  0x8d   : > { %919 = vpush %v1045_v5  ;;  %v252_v5 = vstv %s1127_s14 }
  0x8e   : > { %921 = vpush %v1043_v4  ;;  %v457_v34 = vpop.permute.xlu1 %456  ;;  %v455_v35 = vpop.permute.xlu0 %454 }
  0x8f   : > { %923 = vpush %v1053_v7 }
  0x90   : > { %925 = vpush %v1051_v6 }
  0x91   : > { %927 = vpush %v455_v35 }
  0x92   : > { %929 = vpush %v457_v34  ;;  %v461_v36 = vpop.permute.xlu1 %460  ;;  %v459_v37 = vpop.permute.xlu0 %458 }
  0x93   : > { %931 = vpush %v459_v37 }
  0x94   : > { %933 = vpush %v461_v36 }
  0x96   : > { %v525_v38 = vpop.permute.xlu1 %524  ;;  %v523_v39 = vpop.permute.xlu0 %522 }
  0x97   : > { %935 = vpush %v523_v39 }
  0x98   : > { %937 = vpush %v525_v38 }
  0x9a   : > { %v529_v40 = vpop.permute.xlu1 %528  ;;  %v527_v41 = vpop.permute.xlu0 %526 }
  0x9b   : > { %939 = vpush %v527_v41 }
  0x9c   : > { %941 = vpush %v529_v40 }
  0x9d   : > { %943 = vpush %v1069_v10 }
  0x9e   : > { %945 = vpush %v1067_v9  ;;  %v633_v42 = vpop.permute.xlu1 %632  ;;  %v631_v43 = vpop.permute.xlu0 %630 }
  0x9f   : > { %947 = vpush %v1083_v12 }
  0xa0   : > { %949 = vpush %v1071_v11 }
  0xa1   : > { %951 = vpush %v631_v43 }
  0xa2   : > { %953 = vpush %v633_v42  ;;  %v637_v44 = vpop.permute.xlu1 %636  ;;  %v635_v45 = vpop.permute.xlu0 %634 }
  0xa3   : > { %955 = vpush %v635_v45 }
  0xa4   : > { %957 = vpush %v637_v44 }
  0xa6   : > { %v701_v46 = vpop.permute.xlu1 %700  ;;  %v699_v47 = vpop.permute.xlu0 %698 }
  0xa7   : > { %959 = vpush %v699_v47 }
  0xa8   : > { %961 = vpush %v701_v46 }
  0xaa   : > { %v705_v48 = vpop.permute.xlu1 %704  ;;  %v703_v49 = vpop.permute.xlu0 %702 }
  0xab   : > { %963 = vpush %v703_v49 }
  0xac   : > { %965 = vpush %v705_v48 }
  0xae   : > { %v204_v50 = vpop.permute.xlu1 %203  ;;  %v202_v51 = vpop.permute.xlu0 %201 }
  0xaf   : > { %227 = vst.msk [vmem:[#allocation2 + $0x9] sm:$0xff] %vm225_vm2, %v204_v50  ;;  %226 = vst.msk [vmem:[#allocation2 + $0x1] sm:$0xff] %vm225_vm2, %v202_v51 }
  0xb0   : > { %s904_s17 = spop %903 }
  0xb1   : > { %v287_v57 = vstv %s904_s17 }
  0xb2   : > { %v208_v52 = vpop.permute.xlu1 %207  ;;  %v206_v53 = vpop.permute.xlu0 %205 }
  0xb3   : > { %229 = vst.msk [vmem:[#allocation2 + $0x21] sm:$0xff] %vm225_vm2, %v208_v52  ;;  %228 = vst.msk [vmem:[#allocation2 + $0x19] sm:$0xff] %vm225_vm2, %v206_v53 }
  0xb4   : > { %s906_s19 = spop %905 }
  0xb5   : > { %s1141_s20 = spop %907  ;;  %v290_v2 = vstv %s906_s19 }
  0xb6   : > { %v1137_v55 = vld [vmem:[#allocation2] sm:$0xff]  ;;  %v1139_v56 = vld [vmem:[#allocation2 + $0x8] sm:$0xff]  ;;  %v212_v58 = vpop.permute.xlu1 %211  ;;  %v210_v59 = vpop.permute.xlu0 %209  ;;  %s1153_s21 = spop %909  ;;  %v293_v10 = vstv %s1141_s20 }
  0xb7   : > { %v1144_v60 = vmul.f32 %v248_v54, %v1137_v55  ;;  %v1147_v61 = vmul.f32 %v248_v54, %v1139_v56  ;;  %v298_v62 = vmul.f32 %v287_v57, %v1137_v55  ;;  %v299_v63 = vmul.f32 %v287_v57, %v1139_v56  ;;  %231 = vst.msk [vmem:[#allocation2 + $0x39] sm:$0xff] %vm225_vm2, %v212_v58  ;;  %v1187_v13 = vld [vmem:[#allocation2 + $0x1] sm:$0xff]  ;;  %v1190_v15 = vld [vmem:[#allocation2 + $0x9] sm:$0xff] }
  0xb8   : > { %230 = vst.msk [vmem:[#allocation2 + $0x31] sm:$0xff] %vm225_vm2, %v210_v59  ;;  %s1155_s22 = spop %911  ;;  %v296_v39 = vstv %s1153_s21  ;;  %v1272_v50 = vld [vmem:[#allocation2 + $0x2] sm:$0xff]  ;;  %v1274_v51 = vld [vmem:[#allocation2 + $0xa] sm:$0xff] }
  0xb9   : > { %316 = vrot.lane.b32.xlu1 %v299_v63, %s990_s18  ;;  %314 = vrot.lane.b32.xlu0 %v298_v62, %s990_s18  ;;  %s1166_s24 = spop %913  ;;  %v355_v42 = vstv %s1155_s22 }
  0xba   : > { %v1159_v0 = vld [vmem:[#allocation2 + $0x18] sm:$0xff]  ;;  %v1161_v1 = vld [vmem:[#allocation2 + $0x20] sm:$0xff]  ;;  %v216_v3 = vpop.permute.xlu1 %215  ;;  %v214_v4 = vpop.permute.xlu0 %213  ;;  %v367_v44 = vmul.f32 %v355_v42, %v1139_v56  ;;  %v366_v45 = vmul.f32 %v355_v42, %v1137_v55  ;;  %v358_v46 = vstv %s1166_s24 }
  0xbb   : > { %v300_v6 = vmul.f32 %v290_v2, %v1159_v0  ;;  %v301_v7 = vmul.f32 %v290_v2, %v1161_v1  ;;  %233 = vst.msk [vmem:[#allocation2 + $0x51] sm:$0xff] %vm225_vm2, %v216_v3  ;;  %232 = vst.msk [vmem:[#allocation2 + $0x49] sm:$0xff] %vm225_vm2, %v214_v4  ;;  %v1173_v8 = vmul.f32 %v252_v5, %v1161_v1  ;;  %v1203_v22 = vld [vmem:[#allocation2 + $0x19] sm:$0xff]  ;;  %v1205_v23 = vld [vmem:[#allocation2 + $0x21] sm:$0xff] }
  0xbc   : > { %s1170_s25 = spop %915  ;;  %v1176_v9 = vmul.f32 %v252_v5, %v1159_v0  ;;  %v369_v47 = vmul.f32 %v358_v46, %v1161_v1  ;;  %v368_v48 = vmul.f32 %v358_v46, %v1159_v0  ;;  %v1283_v55 = vld [vmem:[#allocation2 + $0x1a] sm:$0xff]  ;;  %v1285_v56 = vld [vmem:[#allocation2 + $0x22] sm:$0xff] }
  0xbd   : > { %s1178_s26 = spop %917  ;;  %320 = vrot.lane.b32.xlu1 %v301_v7, %s990_s18  ;;  %318 = vrot.lane.b32.xlu0 %v300_v6, %s990_s18  ;;  %v361_v49 = vstv %s1170_s25 }
  0xbe   : > { %s920_s27 = spop %919  ;;  %v1194_v18 = vld [vmem:[#allocation2 + $0x39] sm:$0xff] }
  0xbf   : > { %v1183_v11 = vld [vmem:[#allocation2 + $0x30] sm:$0xff]  ;;  %v1185_v12 = vld [vmem:[#allocation2 + $0x38] sm:$0xff]  ;;  %v427_v16 = vstv %s920_s27  ;;  %s922_s28 = spop %921 }
  0xc0   : > { %v1192_v17 = vld [vmem:[#allocation2 + $0x31] sm:$0xff]  ;;  %v303_v19 = vmul.f32 %v293_v10, %v1185_v12  ;;  %v1198_v20 = vmul.f32 %v427_v16, %v1187_v13  ;;  %v1201_v21 = vmul.f32 %v427_v16, %v1190_v15  ;;  %v430_v24 = vstv %s922_s28  ;;  %s924_s29 = spop %923  ;;  %v1297_v0 = vld [vmem:[#allocation2 + $0x3a] sm:$0xff] }
  0xc1   : > { %v302_v25 = vmul.f32 %v293_v10, %v1183_v11  ;;  %v1209_v26 = vmul.f32 %v430_v24, %v1203_v22  ;;  %v1212_v27 = vmul.f32 %v430_v24, %v1205_v23  ;;  %v433_v28 = vstv %s924_s29  ;;  %s926_s30 = spop %925  ;;  %v1295_v63 = vld [vmem:[#allocation2 + $0x32] sm:$0xff] }
  0xc2   : > { %324 = vrot.lane.b32.xlu1 %v303_v19, %s990_s18  ;;  %v1216_v29 = vmul.f32 %v256_v14, %v1185_v12  ;;  %v1218_v30 = vld [vmem:[#allocation2 + $0x50] sm:$0xff]  ;;  %v1221_v31 = vmul.f32 %v433_v28, %v1192_v17  ;;  %v1224_v32 = vmul.f32 %v433_v28, %v1194_v18  ;;  %v436_v34 = vstv %s926_s30  ;;  %v1232_v36 = vld [vmem:[#allocation2 + $0x48] sm:$0xff]  ;;  %s1239_s4 = spop %927 }
  0xc3   : > { %v1226_v33 = vld [vmem:[#allocation2 + $0x49] sm:$0xff]  ;;  %322 = vrot.lane.b32.xlu0 %v302_v25, %s990_s18  ;;  %v1230_v35 = vmul.f32 %v256_v14, %v1183_v11  ;;  %v1234_v37 = vld [vmem:[#allocation2 + $0x51] sm:$0xff]  ;;  %s1245_s5 = spop %929  ;;  %v305_v41 = vmul.f32 %v296_v39, %v1218_v30  ;;  %v304_v43 = vmul.f32 %v296_v39, %v1232_v36  ;;  %v371_v58 = vmul.f32 %v361_v49, %v1185_v12 }
  0xc4   : > { %v1237_v38 = vmul.f32 %v436_v34, %v1226_v33  ;;  %v1243_v40 = vmul.f32 %v436_v34, %v1234_v37  ;;  %s1249_s6 = spop %931  ;;  %v370_v2 = vmul.f32 %v361_v49, %v1183_v11  ;;  %v1306_v5 = vld [vmem:[#allocation2 + $0x4a] sm:$0xff]  ;;  %v1308_v6 = vld [vmem:[#allocation2 + $0x52] sm:$0xff]  ;;  %v364_v11 = vstv %s1178_s26 }
  0xc5   : > { %s1253_s7 = spop %933  ;;  %v373_v14 = vmul.f32 %v364_v11, %v1218_v30  ;;  %v372_v16 = vmul.f32 %v364_v11, %v1232_v36  ;;  %v463_v19 = vstv %s1239_s4  ;;  %v466_v28 = vstv %s1245_s5 }
  0xc6   : > { %328 = vrot.lane.b32.xlu1 %v305_v41, %s990_s18  ;;  %v475_v24 = vmul.f32 %v463_v19, %v1190_v15  ;;  %v474_v25 = vmul.f32 %v463_v19, %v1187_v13  ;;  %v477_v34 = vmul.f32 %v466_v28, %v1205_v23  ;;  %v476_v39 = vmul.f32 %v466_v28, %v1203_v22 }
  0xc7   : > { %326 = vrot.lane.b32.xlu0 %v304_v43, %s990_s18  ;;  %v469_v41 = vstv %s1249_s6 }
  0xc8   : > { %s1257_s8 = spop %935  ;;  %v479_v42 = vmul.f32 %v469_v41, %v1194_v18  ;;  %v478_v43 = vmul.f32 %v469_v41, %v1192_v17 }
  0xc9   : > { %s1261_s9 = spop %937 }
  0xca   : > { %384 = vrot.lane.b32.xlu1 %v367_v44, %s991_s23  ;;  %v472_v44 = vstv %s1253_s7 }
  0xcb   : > { %382 = vrot.lane.b32.xlu0 %v366_v45, %s991_s23  ;;  %v481_v45 = vmul.f32 %v472_v44, %v1234_v37  ;;  %v480_v46 = vmul.f32 %v472_v44, %v1226_v33 }
  0xcc   : > { %s1265_s10 = spop %939 }
  0xcd   : > { %s1268_s11 = spop %941 }
  0xce   : > { %s944_s14 = spop %943  ;;  %388 = vrot.lane.b32.xlu1 %v369_v47, %s991_s23  ;;  %v531_v47 = vstv %s1257_s8 }
  0xcf   : > { %v603_v52 = vstv %s944_s14  ;;  %s946_s15 = spop %945  ;;  %386 = vrot.lane.b32.xlu0 %v368_v48, %s991_s23  ;;  %v543_v48 = vmul.f32 %v531_v47, %v1190_v15  ;;  %v542_v49 = vmul.f32 %v531_v47, %v1187_v13 }
  0xd0   : > { %v1278_v53 = vmul.f32 %v603_v52, %v1272_v50  ;;  %v1281_v54 = vmul.f32 %v603_v52, %v1274_v51  ;;  %v606_v57 = vstv %s946_s15  ;;  %s948_s17 = spop %947  ;;  %v534_v52 = vstv %s1261_s9 }
  0xd1   : > { %v1290_v59 = vmul.f32 %v606_v57, %v1283_v55  ;;  %v1293_v62 = vmul.f32 %v606_v57, %v1285_v56  ;;  %v609_v1 = vstv %s948_s17  ;;  %s950_s19 = spop %949  ;;  %v545_v57 = vmul.f32 %v534_v52, %v1205_v23 }
  0xd2   : > { %v1301_v3 = vmul.f32 %v609_v1, %v1295_v63  ;;  %v1304_v4 = vmul.f32 %v609_v1, %v1297_v0  ;;  %v612_v7 = vstv %s950_s19  ;;  %392 = vrot.lane.b32.xlu1 %v371_v58, %s991_s23  ;;  %v544_v58 = vmul.f32 %v534_v52, %v1203_v22  ;;  %s952_s20 = spop %951 }
  0xd3   : > { %v1311_v10 = vmul.f32 %v612_v7, %v1306_v5  ;;  %v1314_v12 = vmul.f32 %v612_v7, %v1308_v6  ;;  %390 = vrot.lane.b32.xlu0 %v370_v2, %s991_s23  ;;  %v537_v1 = vstv %s1265_s10  ;;  %v540_v7 = vstv %s1268_s11  ;;  %s954_s21 = spop %953 }
  0xd4   : > { %v547_v2 = vmul.f32 %v537_v1, %v1194_v18  ;;  %v546_v15 = vmul.f32 %v537_v1, %v1192_v17  ;;  %v549_v13 = vmul.f32 %v540_v7, %v1234_v37  ;;  %v548_v23 = vmul.f32 %v540_v7, %v1226_v33  ;;  %s956_s22 = spop %955 }
  0xd5   : > { %v639_v22 = vstv %s952_s20  ;;  %v642_v11 = vstv %s954_s21  ;;  %s958_s24 = spop %957 }
  0xd6   : > { %396 = vrot.lane.b32.xlu1 %v373_v14, %s991_s23  ;;  %v650_v18 = vmul.f32 %v639_v22, %v1272_v50  ;;  %v651_v17 = vmul.f32 %v639_v22, %v1274_v51  ;;  %v652_v37 = vmul.f32 %v642_v11, %v1283_v55  ;;  %v653_v33 = vmul.f32 %v642_v11, %v1285_v56 }
  0xd7   : > { %394 = vrot.lane.b32.xlu0 %v372_v16, %s991_s23  ;;  %v645_v14 = vstv %s956_s22  ;;  %v260_v22 = vstv %s1133_s16 }
  0xd8   : > { %v654_v16 = vmul.f32 %v645_v14, %v1295_v63  ;;  %v655_v19 = vmul.f32 %v645_v14, %v1297_v0  ;;  %s960_s25 = spop %959 }
  0xd9   : > { %s962_s26 = spop %961 }
  0xda   : > { %492 = vrot.lane.b32.xlu1 %v475_v24, %s990_s18  ;;  %v648_v24 = vstv %s958_s24 }
  0xdb   : > { %490 = vrot.lane.b32.xlu0 %v474_v25, %s990_s18  ;;  %v656_v25 = vmul.f32 %v648_v24, %v1306_v5  ;;  %v657_v28 = vmul.f32 %v648_v24, %v1308_v6 }
  0xdc   : > { %s964_s27 = spop %963 }
  0xdd   : > { %s966_s28 = spop %965 }
  0xde   : > { %496 = vrot.lane.b32.xlu1 %v477_v34, %s990_s18  ;;  %v707_v34 = vstv %s960_s25 }
  0xdf   : > { %494 = vrot.lane.b32.xlu0 %v476_v39, %s990_s18  ;;  %v718_v39 = vmul.f32 %v707_v34, %v1272_v50  ;;  %v719_v41 = vmul.f32 %v707_v34, %v1274_v51 }
  0xe2   : > { %500 = vrot.lane.b32.xlu1 %v479_v42, %s990_s18  ;;  %v710_v42 = vstv %s962_s26 }
  0xe3   : > { %498 = vrot.lane.b32.xlu0 %v478_v43, %s990_s18  ;;  %v720_v43 = vmul.f32 %v710_v42, %v1283_v55  ;;  %v721_v44 = vmul.f32 %v710_v42, %v1285_v56  ;;  %v1395_v56 = vpop.permute.xlu1 %795 }
  0xe6   : > { %504 = vrot.lane.b32.xlu1 %v481_v45, %s990_s18  ;;  %v713_v45 = vstv %s964_s27 }
  0xe7   : > { %502 = vrot.lane.b32.xlu0 %v480_v46, %s990_s18  ;;  %v722_v50 = vmul.f32 %v713_v45, %v1295_v63  ;;  %v723_v51 = vmul.f32 %v713_v45, %v1297_v0  ;;  %v716_v46 = vstv %s966_s28  ;;  %v1399_v63 = vpop.permute.xlu1 %799 }
  0xe8   : > { %v724_v47 = vmul.f32 %v716_v46, %v1306_v5  ;;  %v725_v55 = vmul.f32 %v716_v46, %v1308_v6 }
  0xea   : > { %560 = vrot.lane.b32.xlu1 %v543_v48, %s991_s23  ;;  %v1397_v48 = vpop.permute.xlu0 %791 }
  0xeb   : > { %558 = vrot.lane.b32.xlu0 %v542_v49, %s991_s23 }
  0xee   : > { %564 = vrot.lane.b32.xlu1 %v545_v57, %s991_s23  ;;  %v1401_v0 = vpop.permute.xlu0 %803 }
  0xef   : > { %562 = vrot.lane.b32.xlu0 %v544_v58, %s991_s23 }
  0xf2   : > { %568 = vrot.lane.b32.xlu1 %v547_v2, %s991_s23 }
  0xf3   : > { %566 = vrot.lane.b32.xlu0 %v546_v15, %s991_s23 }
  0xf6   : > { %572 = vrot.lane.b32.xlu1 %v549_v13, %s991_s23 }
  0xf7   : > { %570 = vrot.lane.b32.xlu0 %v548_v23, %s991_s23 }
  0xfa   : > { %666 = vrot.lane.b32.xlu1 %v650_v18, %s990_s18  ;;  %v269_v18 = vmul.f32 %v260_v22, %v1218_v30 }
  0xfb   : > { %668 = vrot.lane.b32.xlu0 %v651_v17, %s990_s18 }
  0xfe   : > { %670 = vrot.lane.b32.xlu1 %v652_v37, %s990_s18 }
  0xff   : > { %672 = vrot.lane.b32.xlu0 %v653_v33, %s990_s18 }
 0x102   : > { %674 = vrot.lane.b32.xlu1 %v654_v16, %s990_s18 }
 0x103   : > { %676 = vrot.lane.b32.xlu0 %v655_v19, %s990_s18 }
 0x106   : > { %678 = vrot.lane.b32.xlu1 %v656_v25, %s990_s18 }
 0x107   : > { %680 = vrot.lane.b32.xlu0 %v657_v28, %s990_s18  ;;  %s894_s18 = sshll.u32 %s1467_s13, 6 }
 0x108   : > { %s1432_s29 = scalar_lea.vmem %s1464_s3, %s894_s18 }
 0x10a   : > { %734 = vrot.lane.b32.xlu1 %v718_v39, %s991_s23 }
 0x10b   : > { %736 = vrot.lane.b32.xlu0 %v719_v41, %s991_s23 }
 0x10e   : > { %738 = vrot.lane.b32.xlu1 %v720_v43, %s991_s23 }
 0x10f   : > { %740 = vrot.lane.b32.xlu0 %v721_v44, %s991_s23 }
 0x112   : > { %742 = vrot.lane.b32.xlu1 %v722_v50, %s991_s23 }
 0x113   : > { %744 = vrot.lane.b32.xlu0 %v723_v51, %s991_s23 }
 0x116   : > { %746 = vrot.lane.b32.xlu1 %v724_v47, %s991_s23 }
 0x117   : > { %748 = vrot.lane.b32.xlu0 %v725_v55, %s991_s23 }
 0x12b   : > { %v317_v49 = vpop.permute.xlu1 %316  ;;  %v315_v52 = vpop.permute.xlu0 %314 }
 0x12c   : > { %v339_v57 = vadd.f32 %v317_v49, %v1147_v61  ;;  %v338_v5 = vadd.f32 %v315_v52, %v1144_v60  ;;  %v268_v61 = vmul.f32 %v260_v22, %v1232_v36 }
 0x12f   : > { %v321_v6 = vpop.permute.xlu1 %320  ;;  %v319_v58 = vpop.permute.xlu0 %318 }
 0x130   : > { %v341_v1 = vadd.f32 %v321_v6, %v1173_v8  ;;  %v340_v2 = vadd.f32 %v319_v58, %v1176_v9 }
 0x134   : > { %v325_v15 = vpop.permute.xlu1 %324 }
 0x135   : > { %v343_v7 = vadd.f32 %v325_v15, %v1216_v29  ;;  %v323_v13 = vpop.permute.xlu0 %322 }
 0x136   : > { %v342_v23 = vadd.f32 %v323_v13, %v1230_v35 }
 0x138   : > { %v329_v17 = vpop.permute.xlu1 %328 }
 0x139   : > { %v345_v11 = vadd.f32 %v329_v17, %v269_v18  ;;  %v327_v60 = vpop.permute.xlu0 %326 }
 0x13a   : > { %v344_v37 = vadd.f32 %v327_v60, %v268_v61 }
 0x13c   : > { %v385_v33 = vpop.permute.xlu1 %384 }
 0x13d   : > { %v407_v14 = vadd.f32 %v385_v33, %v339_v57  ;;  %v383_v8 = vpop.permute.xlu0 %382 }
 0x13e   : > { %v406_v16 = vadd.f32 %v383_v8, %v338_v5 }
 0x13f   : > { %v447_v9 = vadd.f32 %v1201_v21, %v407_v14 }
 0x140   : > { %v389_v19 = vpop.permute.xlu1 %388  ;;  %v446_v29 = vadd.f32 %v1198_v20, %v406_v16 }
 0x141   : > { %v409_v24 = vadd.f32 %v389_v19, %v341_v1  ;;  %v387_v35 = vpop.permute.xlu0 %386 }
 0x142   : > { %v408_v25 = vadd.f32 %v387_v35, %v340_v2 }
 0x143   : > { %v449_v30 = vadd.f32 %v1212_v27, %v409_v24 }
 0x144   : > { %v393_v28 = vpop.permute.xlu1 %392  ;;  %v448_v36 = vadd.f32 %v1209_v26, %v408_v25 }
 0x145   : > { %v411_v34 = vadd.f32 %v393_v28, %v343_v7  ;;  %v391_v39 = vpop.permute.xlu0 %390 }
 0x146   : > { %v410_v41 = vadd.f32 %v391_v39, %v342_v23 }
 0x147   : > { %v451_v42 = vadd.f32 %v1224_v32, %v411_v34 }
 0x148   : > { %v397_v43 = vpop.permute.xlu1 %396  ;;  %v450_v44 = vadd.f32 %v1221_v31, %v410_v41 }
 0x149   : > { %v413_v21 = vadd.f32 %v397_v43, %v345_v11  ;;  %v395_v45 = vpop.permute.xlu0 %394 }
 0x14a   : > { %v412_v50 = vadd.f32 %v395_v45, %v344_v37 }
 0x14b   : > { %v453_v20 = vadd.f32 %v1243_v40, %v413_v21 }
 0x14c   : > { %v493_v51 = vpop.permute.xlu1 %492  ;;  %v452_v46 = vadd.f32 %v1237_v38, %v412_v50 }
 0x14d   : > { %v491_v27 = vpop.permute.xlu0 %490  ;;  %v515_v5 = vadd.f32 %v493_v51, %v447_v9 }
 0x14e   : > { %v514_v32 = vadd.f32 %v491_v27, %v446_v29 }
 0x150   : > { %v497_v47 = vpop.permute.xlu1 %496 }
 0x151   : > { %v495_v55 = vpop.permute.xlu0 %494  ;;  %v517_v2 = vadd.f32 %v497_v47, %v449_v30 }
 0x152   : > { %v516_v40 = vadd.f32 %v495_v55, %v448_v36 }
 0x154   : > { %v501_v26 = vpop.permute.xlu1 %500 }
 0x155   : > { %v499_v49 = vpop.permute.xlu0 %498  ;;  %v519_v18 = vadd.f32 %v501_v26, %v451_v42 }
 0x156   : > { %v518_v61 = vadd.f32 %v499_v49, %v450_v44 }
 0x158   : > { %v505_v52 = vpop.permute.xlu1 %504 }
 0x159   : > { %v503_v57 = vpop.permute.xlu0 %502  ;;  %v521_v8 = vadd.f32 %v505_v52, %v453_v20 }
 0x15a   : > { %v520_v16 = vadd.f32 %v503_v57, %v452_v46 }
 0x15c   : > { %v561_v6 = vpop.permute.xlu1 %560 }
 0x15d   : > { %v583_v58 = vadd.f32 %v561_v6, %v515_v5  ;;  %v559_v31 = vpop.permute.xlu0 %558 }
 0x15e   : > { %v582_v1 = vadd.f32 %v559_v31, %v514_v32 }
 0x15f   : > { %v623_v15 = vadd.f32 %v1281_v54, %v583_v58 }
 0x160   : > { %v565_v7 = vpop.permute.xlu1 %564  ;;  %v622_v38 = vadd.f32 %v1278_v53, %v582_v1 }
 0x161   : > { %v585_v13 = vadd.f32 %v565_v7, %v517_v2  ;;  %v563_v23 = vpop.permute.xlu0 %562 }
 0x162   : > { %v584_v22 = vadd.f32 %v563_v23, %v516_v40 }
 0x163   : > { %v625_v17 = vadd.f32 %v1293_v62, %v585_v13 }
 0x164   : > { %v569_v11 = vpop.permute.xlu1 %568  ;;  %v624_v60 = vadd.f32 %v1290_v59, %v584_v22 }
 0x165   : > { %v587_v37 = vadd.f32 %v569_v11, %v519_v18  ;;  %v567_v33 = vpop.permute.xlu0 %566 }
 0x166   : > { %v586_v14 = vadd.f32 %v567_v33, %v518_v61 }
 0x167   : > { %v627_v54 = vadd.f32 %v1304_v4, %v587_v37 }
 0x168   : > { %v573_v9 = vpop.permute.xlu1 %572  ;;  %v626_v53 = vadd.f32 %v1301_v3, %v586_v14 }
 0x169   : > { %v589_v19 = vadd.f32 %v573_v9, %v521_v8  ;;  %v571_v29 = vpop.permute.xlu0 %570 }
 0x16a   : > { %v588_v24 = vadd.f32 %v571_v29, %v520_v16 }
 0x16b   : > { %v629_v62 = vadd.f32 %v1314_v12, %v589_v19 }
 0x16c   : > { %v667_v35 = vpop.permute.xlu1 %666  ;;  %v628_v25 = vadd.f32 %v1311_v10, %v588_v24 }
 0x16d   : > { %v669_v59 = vpop.permute.xlu0 %668  ;;  %v690_v41 = vadd.f32 %v667_v35, %v622_v38 }
 0x16e   : > { %v691_v42 = vadd.f32 %v669_v59, %v623_v15 }
 0x170   : > { %v671_v30 = vpop.permute.xlu1 %670 }
 0x171   : > { %v673_v28 = vpop.permute.xlu0 %672  ;;  %v692_v12 = vadd.f32 %v671_v30, %v624_v60 }
 0x172   : > { %v693_v45 = vadd.f32 %v673_v28, %v625_v17 }
 0x174   : > { %v675_v36 = vpop.permute.xlu1 %674 }
 0x175   : > { %v677_v34 = vpop.permute.xlu0 %676  ;;  %v694_v47 = vadd.f32 %v675_v36, %v626_v53 }
 0x176   : > { %v695_v26 = vadd.f32 %v677_v34, %v627_v54 }
 0x178   : > { %v679_v39 = vpop.permute.xlu1 %678 }
 0x179   : > { %v681_v4 = vpop.permute.xlu0 %680  ;;  %v696_v32 = vadd.f32 %v679_v39, %v628_v25 }
 0x17a   : > { %v697_v58 = vadd.f32 %v681_v4, %v629_v62 }
 0x17c   : > { %v735_v43 = vpop.permute.xlu1 %734 }
 0x17d   : > { %v758_v3 = vadd.f32 %v735_v43, %v690_v41  ;;  %v737_v44 = vpop.permute.xlu0 %736 }
 0x17e   : > { %v759_v10 = vadd.f32 %v737_v44, %v691_v42 }
 0x17f   : > { %v806_v21 = vadd.f32 %v1397_v48, %v758_v3 }
 0x180   : > { %v807_v50 = vadd.f32 %v1397_v48, %v759_v10  ;;  %v739_v20 = vpop.permute.xlu1 %738 }
 0x181   : > { %815 = vst.msk [vmem:[%s1432_s29] sm:$0xff] %vm814_vm3, %v806_v21  ;;  %v760_v51 = vadd.f32 %v739_v20, %v692_v12  ;;  %v741_v46 = vpop.permute.xlu0 %740 }
 0x182   : > { %816 = vst.msk [vmem:[%s1432_s29 + $0x8] sm:$0xff] %vm814_vm3, %v807_v50  ;;  %v761_v27 = vadd.f32 %v741_v46, %v693_v45 }
 0x183   : > { %v808_v55 = vadd.f32 %v1395_v56, %v760_v51 }
 0x184   : > { %v809_v49 = vadd.f32 %v1395_v56, %v761_v27  ;;  %v743_v52 = vpop.permute.xlu1 %742 }
 0x185   : > { %817 = vst.msk [vmem:[%s1432_s29 + $0x10] sm:$0xff] %vm814_vm3, %v808_v55  ;;  %v762_v48 = vadd.f32 %v743_v52, %v694_v47  ;;  %v745_v57 = vpop.permute.xlu0 %744 }
 0x186   : > { %818 = vst.msk [vmem:[%s1432_s29 + $0x18] sm:$0xff] %vm814_vm3, %v809_v49  ;;  %v763_v5 = vadd.f32 %v745_v57, %v695_v26 }
 0x187   : > { %v810_v6 = vadd.f32 %v1399_v63, %v762_v48 }
 0x188   : > { %v811_v31 = vadd.f32 %v1399_v63, %v763_v5  ;;  %v747_v1 = vpop.permute.xlu1 %746 }
 0x189   : > { %819 = vst.msk [vmem:[%s1432_s29 + $0x20] sm:$0xff] %vm814_vm3, %v810_v6  ;;  %v764_v56 = vadd.f32 %v747_v1, %v696_v32  ;;  %v749_v2 = vpop.permute.xlu0 %748 }
 0x18a   : > { %820 = vst.msk [vmem:[%s1432_s29 + $0x28] sm:$0xff] %vm814_vm3, %v811_v31  ;;  %v765_v15 = vadd.f32 %v749_v2, %v697_v58 }
 0x18b   : > { %v812_v40 = vadd.f32 %v1401_v0, %v764_v56 }
 0x18c   : > { %v813_v7 = vadd.f32 %v1401_v0, %v765_v15 }
 0x18d   : > { %821 = vst.msk [vmem:[%s1432_s29 + $0x30] sm:$0xff] %vm814_vm3, %v812_v40 }
 0x18e   : > { %822 = vst.msk [vmem:[%s1432_s29 + $0x38] sm:$0xff] %vm814_vm3, %v813_v7 }
 0x18f PF: > { %s13_s12 = sadd.s32 1, %s988_s12  }
 0x190   : > { %p10_p4 = scmp.ge.s32.totalorder %s13_s12, 4  }
 0x192   :  { %12 = sbr.rel (!%p10_p4) target bundleno = 1 (0x1), region = 62 }

// kernel: dafm_forward.6
= control target key start
LH: loop header
LB: loop body
LE: loop exit
PB: predicated region body
PF: predicated region fallthrough
CT: control target
= control target key end

     0   :  { %s1271_s12 = smov 0   ;;  %s1917_s0 = inlined_call_operand.vmem [shape: f32[2,16,16,16], index: 0, kind: input, shape index: {}]   ;;  %s1918_s1 = inlined_call_operand.vmem [shape: f32[4,3,3], index: 1, kind: input, shape index: {}]   ;;  %s1919_s2 = inlined_call_operand.vmem [shape: f32[4,1,1], index: 2, kind: input, shape index: {}]   ;;  %s1920_s3 = inlined_call_operand.vmem [shape: f32[2,4,16,16], index: 3, kind: output, shape index: {}]  }
   0x1   :  { %1923 = sst [smem:[#allocation3_spill]] %s1917_s0 }
   0x2 LB: > { %s1122_s13 = sadd.s32 4294967295, %s1242_s12   ;;  %p1126_p0 = scmp.ge.s32.totalorder %s1242_s12, 1  ;;  %s1242_s12 = sphi %s1271_s12, %s13_s12  }
   0x3   : > { %p138_p1 = scmp.lt.s32.totalorder %s1242_s12, 3 }
   0x5   : > { %p139_p2 = pnand %p1126_p0, %p138_p1 }
   0x6   : > { %p1279_p3 = scmp.lt.s32.totalorder (!%p139_p2), %s1122_s13, 1  ;;  %s1925_s0 = sld [smem:[#allocation3_spill]] (!%p139_p2) }
   0x7   : > { %142 = sbr.rel (%p139_p2) target bundleno = 857 (0x359), region = 32  ;;  %s1245_s19 = smov (!%p139_p2), 2  }
   0x8   : > { %s1246_s20 = smov (!%p139_p2), 125   ;;  %s1247_s21 = smov (!%p139_p2), 127  }
   0x9   : > { %s1921_s30 = smov (!%p139_p2), 126  }
   0xc   : > { %vm174_vm0 = vcmask 162816   ;;  %vm177_vm1 = vcmask 158720   ;;  %v1244_v0 = vmov 0.0   ;;  %s1934_s13 = smov (!%p1279_p3, %s1122_s13), 1  ;;  %vm233_vm2 = vcmask 146448  }
   0xd   : > { %175 = vst.msk [vmem:[#allocation2] sm:$0xff] %vm174_vm0, %v1244_v0  ;;  %176 = vst.msk [vmem:[#allocation2 + $0x8] sm:$0xff] %vm174_vm0, %v1244_v0  ;;  %s1145_s15 = sshll.u32 %s1934_s13, 8  ;;  %v1337_v25 = vld [vmem:[%s1918_s1] sm:$0x7]  ;;  %v196_v30 = vlaneseq  ;;  %vm1052_vm6 = vcmask 130048  }
   0xe   : > { %179 = vst.msk [vmem:[#allocation2 + $0x18] sm:$0xff] %vm174_vm0, %v1244_v0  ;;  %180 = vst.msk [vmem:[#allocation2 + $0x20] sm:$0xff] %vm174_vm0, %v1244_v0  ;;  %s1094_s18 = scalar_lea.vmem %s1925_s0, %s1145_s15  ;;  %v1342_v26 = vld [vmem:[%s1918_s1 + $0x4] sm:$0x7]  ;;  %v1351_v27 = vld [vmem:[%s1918_s1 + $0x8] sm:$0x7] }
   0xf   : > { %182 = vst.msk [vmem:[#allocation2 + $0x30] sm:$0xff] %vm174_vm0, %v1244_v0  ;;  %183 = vst.msk [vmem:[#allocation2 + $0x38] sm:$0xff] %vm174_vm0, %v1244_v0  ;;  %v1291_v1 = vld [vmem:[%s1094_s18 + $0x40] sm:$0xff]  ;;  %v1293_v2 = vld [vmem:[%s1094_s18 + $0x50] sm:$0xff]  ;;  %v197_v33 = vand.u32 127, %v196_v30 }
  0x10   : > { %185 = vst.msk [vmem:[#allocation2 + $0x48] sm:$0xff] %vm174_vm0, %v1244_v0  ;;  %186 = vst.msk [vmem:[#allocation2 + $0x50] sm:$0xff] %vm174_vm0, %v1244_v0  ;;  %209 = vrot.lane.b32.xlu0 %v1291_v1, %s1245_s19  ;;  %213 = vrot.lane.b32.xlu1 %v1293_v2, %s1245_s19  ;;  %v1299_v3 = vld [vmem:[%s1094_s18 + $0x48] sm:$0xff]  ;;  %v1301_v4 = vld [vmem:[%s1094_s18 + $0x58] sm:$0xff] }
  0x11   : > { %178 = vst.msk [vmem:[#allocation2 + $0x10] sm:$0xf] %vm177_vm1, %v1244_v0  ;;  %181 = vst.msk [vmem:[#allocation2 + $0x28] sm:$0xf] %vm177_vm1, %v1244_v0  ;;  %v1307_v5 = vld [vmem:[%s1094_s18 + $0x60] sm:$0xff]  ;;  %v1309_v6 = vld [vmem:[%s1094_s18 + $0x68] sm:$0xff] }
  0x12   : > { %184 = vst.msk [vmem:[#allocation2 + $0x40] sm:$0xf] %vm177_vm1, %v1244_v0  ;;  %187 = vst.msk [vmem:[#allocation2 + $0x58] sm:$0xf] %vm177_vm1, %v1244_v0  ;;  %v1315_v7 = vld [vmem:[%s1094_s18 + $0x70] sm:$0xff]  ;;  %v1317_v8 = vld [vmem:[%s1094_s18 + $0x78] sm:$0xff] }
  0x13   : > { %1147 = vpush %v1337_v25  ;;  %v1356_v28 = vld [vmem:[%s1918_s1 + $0xc] sm:$0x7]  ;;  %v250_v36 = vand.u32 1, %v197_v33 }
  0x14   : > { %211 = vrot.lane.b32.xlu0 %v1299_v3, %s1245_s19  ;;  %215 = vrot.lane.b32.xlu1 %v1301_v4, %s1245_s19  ;;  %1149 = vpush %v1342_v26 }
  0x15   : > { %1151 = vpush %v1351_v27  ;;  %vm1364_vm3 = vcmp.eq.s32.totalorder %v250_v36, 0 }
  0x16   : > { %1153 = vpush %v1356_v28 }
  0x18   : > { %217 = vrot.lane.b32.xlu0 %v1307_v5, %s1245_s19  ;;  %219 = vrot.lane.b32.xlu1 %v1309_v6, %s1245_s19 }
  0x1c   : > { %221 = vrot.lane.b32.xlu0 %v1315_v7, %s1245_s19  ;;  %223 = vrot.lane.b32.xlu1 %v1317_v8, %s1245_s19 }
  0x44   : > { %s1563_s14 = spop %1147 }
  0x45   : > { %s1565_s15 = spop %1149 }
  0x46   : > { %s1567_s16 = spop %1151 }
  0x47   : > { %s1569_s17 = spop %1153 }
  0x82   : > { %v210_v9 = vpop.permute.xlu0 %209  ;;  %v214_v10 = vpop.permute.xlu1 %213 }
  0x83   : > { %234 = vst.msk [vmem:[#allocation2 + $0x2] sm:$0xff] %vm233_vm2, %v210_v9  ;;  %236 = vst.msk [vmem:[#allocation2 + $0x1a] sm:$0xff] %vm233_vm2, %v214_v10 }
  0x86   : > { %v212_v11 = vpop.permute.xlu0 %211  ;;  %v216_v12 = vpop.permute.xlu1 %215 }
  0x87   : > { %235 = vst.msk [vmem:[#allocation2 + $0xa] sm:$0xff] %vm233_vm2, %v212_v11  ;;  %237 = vst.msk [vmem:[#allocation2 + $0x22] sm:$0xff] %vm233_vm2, %v216_v12 }
  0x8a   : > { %v218_v13 = vpop.permute.xlu0 %217  ;;  %v242_v14 = vld [vmem:[#allocation2 + $0x2] sm:$0xff]  ;;  %v220_v15 = vpop.permute.xlu1 %219  ;;  %v244_v16 = vld [vmem:[#allocation2 + $0x1a] sm:$0xff] }
  0x8b   : > { %238 = vst.msk [vmem:[#allocation2 + $0x32] sm:$0xff] %vm233_vm2, %v218_v13  ;;  %260 = vrot.lane.b32.xlu0 %v242_v14, %s1246_s20  ;;  %239 = vst.msk [vmem:[#allocation2 + $0x3a] sm:$0xff] %vm233_vm2, %v220_v15 }
  0x8e   : > { %v222_v17 = vpop.permute.xlu0 %221  ;;  %v243_v18 = vld [vmem:[#allocation2 + $0xa] sm:$0xff]  ;;  %v224_v19 = vpop.permute.xlu1 %223  ;;  %v245_v20 = vld [vmem:[#allocation2 + $0x22] sm:$0xff] }
  0x8f   : > { %240 = vst.msk [vmem:[#allocation2 + $0x4a] sm:$0xff] %vm233_vm2, %v222_v17  ;;  %264 = vrot.lane.b32.xlu0 %v244_v16, %s1246_s20  ;;  %262 = vrot.lane.b32.xlu1 %v243_v18, %s1246_s20  ;;  %241 = vst.msk [vmem:[#allocation2 + $0x52] sm:$0xff] %vm233_vm2, %v224_v19 }
  0x92   : > { %v246_v21 = vld [vmem:[#allocation2 + $0x32] sm:$0xff]  ;;  %v247_v22 = vld [vmem:[#allocation2 + $0x3a] sm:$0xff] }
  0x93   : > { %266 = vrot.lane.b32.xlu1 %v245_v20, %s1246_s20  ;;  %268 = vrot.lane.b32.xlu0 %v246_v21, %s1246_s20 }
  0x96   : > { %v248_v23 = vld [vmem:[#allocation2 + $0x4a] sm:$0xff]  ;;  %v249_v24 = vld [vmem:[#allocation2 + $0x52] sm:$0xff] }
  0x97   : > { %270 = vrot.lane.b32.xlu1 %v247_v22, %s1246_s20  ;;  %272 = vrot.lane.b32.xlu0 %v248_v23, %s1246_s20 }
  0x9b   : > { %274 = vrot.lane.b32.xlu1 %v249_v24, %s1246_s20  ;;  %284 = vrot.lane.b32.xlu0 %v242_v14, %s1247_s21 }
  0x9f   : > { %286 = vrot.lane.b32.xlu1 %v243_v18, %s1247_s21  ;;  %288 = vrot.lane.b32.xlu0 %v244_v16, %s1247_s21 }
  0xa3   : > { %290 = vrot.lane.b32.xlu1 %v245_v20, %s1247_s21  ;;  %292 = vrot.lane.b32.xlu0 %v246_v21, %s1247_s21 }
  0xa7   : > { %294 = vrot.lane.b32.xlu1 %v247_v22, %s1247_s21  ;;  %296 = vrot.lane.b32.xlu0 %v248_v23, %s1247_s21 }
  0xab   : > { %298 = vrot.lane.b32.xlu1 %v249_v24, %s1247_s21 }
  0xfd   : > { %v261_v29 = vpop.permute.xlu0 %260 }
 0x101   : > { %v263_v31 = vpop.permute.xlu1 %262  ;;  %v265_v32 = vpop.permute.xlu0 %264 }
 0x105   : > { %v267_v34 = vpop.permute.xlu1 %266  ;;  %v269_v35 = vpop.permute.xlu0 %268 }
 0x109   : > { %v271_v37 = vpop.permute.xlu1 %270  ;;  %v273_v38 = vpop.permute.xlu0 %272 }
 0x10d   : > { %v275_v40 = vpop.permute.xlu1 %274  ;;  %v285_v41 = vpop.permute.xlu0 %284 }
 0x10e   : > { %v308_v42 = vsel %vm1364_vm3, %v261_v29, %v285_v41 }
 0x10f   : > { %v1371_v43 = vmax.f32 %v1291_v1, %v308_v42  ;;  %v1439_v1 = vrot.slane %v1337_v25, 1 }
 0x111   : > { %v287_v44 = vpop.permute.xlu1 %286  ;;  %332 = vrot.lane.b32.xlu0 %v1371_v43, %s1245_s19  ;;  %v289_v45 = vpop.permute.xlu0 %288 }
 0x112   : > { %v309_v46 = vsel %vm1364_vm3, %v263_v31, %v287_v44  ;;  %v310_v47 = vsel %vm1364_vm3, %v265_v32, %v289_v45 }
 0x113   : > { %v1380_v48 = vmax.f32 %v1299_v3, %v309_v46  ;;  %v1383_v49 = vmax.f32 %v1293_v2, %v310_v47  ;;  %v1446_v2 = vrot.slane %v1342_v26, 1  ;;  %v1449_v3 = vrot.slane %v1351_v27, 1 }
 0x115   : > { %334 = vrot.lane.b32.xlu1 %v1380_v48, %s1245_s19  ;;  %v291_v50 = vpop.permute.xlu1 %290  ;;  %336 = vrot.lane.b32.xlu0 %v1383_v49, %s1245_s19  ;;  %v293_v51 = vpop.permute.xlu0 %292 }
 0x116   : > { %v311_v52 = vsel %vm1364_vm3, %v267_v34, %v291_v50  ;;  %v312_v53 = vsel %vm1364_vm3, %v269_v35, %v293_v51 }
 0x117   : > { %v1394_v54 = vmax.f32 %v1301_v4, %v311_v52  ;;  %v1397_v55 = vmax.f32 %v1307_v5, %v312_v53  ;;  %v1456_v4 = vrot.slane %v1356_v28, 1  ;;  %v1249_v5 = vmov 0  }
 0x118   : > { %1235 = vset.pattern.permute.xlu1 %v1249_v5  ;;  %1234 = vset.pattern.permute.xlu0 %v1249_v5 }
 0x119   : > { %338 = vrot.lane.b32.xlu1 %v1394_v54, %s1245_s19  ;;  %v295_v56 = vpop.permute.xlu1 %294  ;;  %340 = vrot.lane.b32.xlu0 %v1397_v55, %s1245_s19  ;;  %v297_v57 = vpop.permute.xlu0 %296 }
 0x11a   : > { %v313_v58 = vsel %vm1364_vm3, %v271_v37, %v295_v56  ;;  %v314_v59 = vsel %vm1364_vm3, %v273_v38, %v297_v57 }
 0x11b   : > { %v1408_v60 = vmax.f32 %v1309_v6, %v313_v58  ;;  %v1411_v61 = vmax.f32 %v1315_v7, %v314_v59  ;;  %v199_v6 = vshrl.u32 %v196_v30, 7 }
 0x11d   : > { %342 = vrot.lane.b32.xlu1 %v1408_v60, %s1245_s19  ;;  %v299_v62 = vpop.permute.xlu1 %298  ;;  %344 = vrot.lane.b32.xlu0 %v1411_v61, %s1245_s19  ;;  %v380_v12 = vand.u32 1, %v199_v6 }
 0x11e   : > { %v315_v63 = vsel %vm1364_vm3, %v275_v40, %v299_v62  ;;  %v1508_v62 = vrot.slane %v1337_v25, 2 }
 0x11f   : > { %v1420_v0 = vmax.f32 %v1317_v8, %v315_v63  ;;  %v200_v8 = vadd.s32 8, %v199_v6  ;;  %vm1472_vm5 = vcmp.eq.s32.totalorder %v380_v12, 0  ;;  %v837_v6 = vrot.slane %v1342_v26, 2 }
 0x121   : > { %346 = vrot.lane.b32.xlu1 %v1420_v0, %s1245_s19  ;;  %516 = vrot.lane.b32.xlu0 %v1337_v25, %s1247_s21  ;;  %v381_v11 = vand.u32 1, %v200_v8 }
 0x123   : > { %vm1468_vm4 = vcmp.eq.s32.totalorder %v381_v11, 0 }
 0x125   : > { %518 = vrot.lane.b32.xlu1 %v1342_v26, %s1247_s21  ;;  %520 = vrot.lane.b32.xlu0 %v1351_v27, %s1247_s21 }
 0x129   : > { %522 = vrot.lane.b32.xlu1 %v1356_v28, %s1247_s21  ;;  %584 = vrot.lane.b32.xlu0 %v1337_v25, %s1921_s30 }
 0x12d   : > { %586 = vrot.lane.b32.xlu1 %v1342_v26, %s1921_s30  ;;  %588 = vrot.lane.b32.xlu0 %v1351_v27, %s1921_s30  ;;  %v839_v26 = vrot.slane %v1356_v28, 2 }
 0x131   : > { %590 = vrot.lane.b32.xlu1 %v1356_v28, %s1921_s30  ;;  %692 = vrot.lane.b32.xlu0 %v1439_v1, %s1247_s21  ;;  %v1139_v28 = vld [vmem:[%s1919_s2] ss:$0 sm:$0xff] }
 0x135   : > { %694 = vrot.lane.b32.xlu1 %v1446_v2, %s1247_s21  ;;  %696 = vrot.lane.b32.xlu0 %v1449_v3, %s1247_s21 }
 0x139   : > { %698 = vrot.lane.b32.xlu1 %v1456_v4, %s1247_s21  ;;  %760 = vrot.lane.b32.xlu0 %v1439_v1, %s1921_s30 }
 0x183   : > { %v333_v7 = vpop.permute.xlu0 %332 }
 0x184   : > { %356 = vst.msk [vmem:[#allocation2 + $0x2] sm:$0xff] %vm233_vm2, %v333_v7  ;;  %v1516_v7 = vrot.slane %v1351_v27, 2 }
 0x187   : > { %v335_v9 = vpop.permute.xlu1 %334  ;;  %v337_v10 = vpop.permute.xlu0 %336 }
 0x188   : > { %357 = vst.msk [vmem:[#allocation2 + $0xa] sm:$0xff] %vm233_vm2, %v335_v9  ;;  %358 = vst.msk [vmem:[#allocation2 + $0x1a] sm:$0xff] %vm233_vm2, %v337_v10 }
 0x18b   : > { %v339_v13 = vpop.permute.xlu1 %338  ;;  %v341_v14 = vpop.permute.xlu0 %340  ;;  %v372_v17 = vld [vmem:[#allocation2 + $0x1] sm:$0xff] }
 0x18c   : > { %359 = vst.msk [vmem:[#allocation2 + $0x22] sm:$0xff] %vm233_vm2, %v339_v13  ;;  %360 = vst.msk [vmem:[#allocation2 + $0x32] sm:$0xff] %vm233_vm2, %v341_v14 }
 0x18f   : > { %v343_v18 = vpop.permute.xlu1 %342  ;;  %v345_v19 = vpop.permute.xlu0 %344  ;;  %v365_v20 = vld [vmem:[#allocation2 + $0xb] sm:$0xff]  ;;  %v364_v22 = vld [vmem:[#allocation2 + $0x3] sm:$0xff]  ;;  %v374_v29 = vld [vmem:[#allocation2 + $0x19] sm:$0xff] }
 0x190   : > { %v373_v21 = vld [vmem:[#allocation2 + $0x9] sm:$0xff]  ;;  %361 = vst.msk [vmem:[#allocation2 + $0x3a] sm:$0xff] %vm233_vm2, %v343_v18  ;;  %362 = vst.msk [vmem:[#allocation2 + $0x4a] sm:$0xff] %vm233_vm2, %v345_v19  ;;  %v384_v24 = vsel %vm1472_vm5, %v364_v22, %v372_v17 }
 0x191   : > { %v385_v23 = vsel %vm1468_vm4, %v365_v20, %v373_v21  ;;  %400 = vrot.lane.b32.xlu0 %v384_v24, %s1921_s30 }
 0x192   : > { %402 = vrot.lane.b32.xlu1 %v385_v23, %s1921_s30 }
 0x193   : > { %v347_v30 = vpop.permute.xlu1 %346  ;;  %v367_v31 = vld [vmem:[#allocation2 + $0x23] sm:$0xff]  ;;  %v366_v33 = vld [vmem:[#allocation2 + $0x1b] sm:$0xff]  ;;  %v517_v34 = vpop.permute.xlu0 %516  ;;  %v376_v37 = vld [vmem:[#allocation2 + $0x31] sm:$0xff] }
 0x194   : > { %v375_v32 = vld [vmem:[#allocation2 + $0x21] sm:$0xff]  ;;  %363 = vst.msk [vmem:[#allocation2 + $0x52] sm:$0xff] %vm233_vm2, %v347_v30  ;;  %v386_v36 = vsel %vm1472_vm5, %v366_v33, %v374_v29 }
 0x195   : > { %v387_v35 = vsel %vm1468_vm4, %v367_v31, %v375_v32  ;;  %1155 = vpush %v517_v34  ;;  %404 = vrot.lane.b32.xlu0 %v386_v36, %s1921_s30 }
 0x196   : > { %406 = vrot.lane.b32.xlu1 %v387_v35, %s1921_s30 }
 0x197   : > { %v369_v38 = vld [vmem:[#allocation2 + $0x3b] sm:$0xff]  ;;  %v368_v40 = vld [vmem:[#allocation2 + $0x33] sm:$0xff]  ;;  %v519_v41 = vpop.permute.xlu1 %518  ;;  %v521_v42 = vpop.permute.xlu0 %520  ;;  %v378_v46 = vld [vmem:[#allocation2 + $0x49] sm:$0xff] }
 0x198   : > { %v377_v39 = vld [vmem:[#allocation2 + $0x39] sm:$0xff]  ;;  %v388_v45 = vsel %vm1472_vm5, %v368_v40, %v376_v37  ;;  %1157 = vpush %v519_v41 }
 0x199   : > { %v389_v44 = vsel %vm1468_vm4, %v369_v38, %v377_v39  ;;  %408 = vrot.lane.b32.xlu0 %v388_v45, %s1921_s30  ;;  %1159 = vpush %v521_v42 }
 0x19a   : > { %410 = vrot.lane.b32.xlu1 %v389_v44, %s1921_s30 }
 0x19b   : > { %v371_v47 = vld [vmem:[#allocation2 + $0x53] sm:$0xff]  ;;  %v370_v51 = vld [vmem:[#allocation2 + $0x4b] sm:$0xff]  ;;  %v523_v52 = vpop.permute.xlu1 %522  ;;  %v585_v53 = vpop.permute.xlu0 %584 }
 0x19c   : > { %v379_v50 = vld [vmem:[#allocation2 + $0x51] sm:$0xff]  ;;  %v390_v57 = vsel %vm1472_vm5, %v370_v51, %v378_v46  ;;  %1161 = vpush %v523_v52 }
 0x19d   : > { %v391_v56 = vsel %vm1468_vm4, %v371_v47, %v379_v50  ;;  %412 = vrot.lane.b32.xlu0 %v390_v57, %s1921_s30  ;;  %1163 = vpush %v585_v53  ;;  %v486_v47 = vstv %s1563_s14 }
 0x19e   : > { %414 = vrot.lane.b32.xlu1 %v391_v56, %s1921_s30 }
 0x19f   : > { %v587_v58 = vpop.permute.xlu1 %586  ;;  %v589_v59 = vpop.permute.xlu0 %588 }
 0x1a0   : > { %1165 = vpush %v587_v58 }
 0x1a1   : > { %764 = vrot.lane.b32.xlu0 %v1449_v3, %s1921_s30  ;;  %1167 = vpush %v589_v59 }
 0x1a2   : > { %762 = vrot.lane.b32.xlu1 %v1446_v2, %s1921_s30 }
 0x1a3   : > { %v591_v63 = vpop.permute.xlu1 %590  ;;  %v693_v5 = vpop.permute.xlu0 %692 }
 0x1a4   : > { %1169 = vpush %v591_v63 }
 0x1a5   : > { %868 = vrot.lane.b32.xlu0 %v1508_v62, %s1247_s21  ;;  %1171 = vpush %v1439_v1 }
 0x1a6   : > { %766 = vrot.lane.b32.xlu1 %v1456_v4, %s1921_s30  ;;  %1173 = vpush %v1446_v2  ;;  %v1140_v2 = vld [vmem:[%s1919_s2 + $0x1] ss:$0 sm:$0xff] }
 0x1a7   : > { %1175 = vpush %v1449_v3  ;;  %v695_v25 = vpop.permute.xlu1 %694  ;;  %v697_v8 = vpop.permute.xlu0 %696  ;;  %v1142_v3 = vld [vmem:[%s1919_s2 + $0x3] ss:$0 sm:$0xff] }
 0x1a8   : > { %1177 = vpush %v1456_v4  ;;  %v1141_v4 = vld [vmem:[%s1919_s2 + $0x2] ss:$0 sm:$0xff] }
 0x1a9   : > { %872 = vrot.lane.b32.xlu0 %v1516_v7, %s1247_s21  ;;  %1179 = vpush %v693_v5 }
 0x1aa   : > { %870 = vrot.lane.b32.xlu1 %v837_v6, %s1247_s21  ;;  %1181 = vpush %v695_v25 }
 0x1ab   : > { %1183 = vpush %v697_v8  ;;  %v699_v27 = vpop.permute.xlu1 %698  ;;  %v761_v1 = vpop.permute.xlu0 %760 }
 0x1ac   : > { %1185 = vpush %v699_v27 }
 0x1ad   : > { %936 = vrot.lane.b32.xlu0 %v1508_v62, %s1921_s30  ;;  %1187 = vpush %v761_v1  ;;  %v490_v1 = vstv %s1565_s15  ;;  %s1250_s15 = smov 124  }
 0x1ae   : > { %874 = vrot.lane.b32.xlu1 %v839_v26, %s1247_s21 }
 0x1b1   : > { %940 = vrot.lane.b32.xlu0 %v1516_v7, %s1921_s30 }
 0x1b2   : > { %938 = vrot.lane.b32.xlu1 %v837_v6, %s1921_s30 }
 0x1b5   : > { %1029 = vperm.xlu0 %1234, %v1139_v28  }
 0x1b6   : > { %942 = vrot.lane.b32.xlu1 %v839_v26, %s1921_s30 }
 0x1b9   : > { %1041 = vperm.xlu0 %1234, %v1142_v3  }
 0x1ba   : > { %1033 = vperm.xlu1 %1235, %v1140_v2  }
 0x1be   : > { %1037 = vperm.xlu1 %1235, %v1141_v4  }
 0x1c6   : > { %s1571_s18 = spop %1155 }
 0x1c7   : > { %v525_v50 = vstv %s1571_s18 }
 0x203   : > { %v401_v10 = vpop.permute.xlu0 %400 }
 0x204   : > { %v403_v9 = vpop.permute.xlu1 %402  ;;  %v424_v12 = vmax.f32 %v1371_v43, %v401_v10 }
 0x205   : > { %v425_v11 = vmax.f32 %v1380_v48, %v403_v9 }
 0x206   : > { %440 = vrot.lane.b32.xlu0 %v424_v12, %s1245_s19 }
 0x207   : > { %442 = vrot.lane.b32.xlu1 %v425_v11, %s1245_s19  ;;  %v405_v14 = vpop.permute.xlu0 %404 }
 0x208   : > { %v407_v13 = vpop.permute.xlu1 %406  ;;  %v426_v16 = vmax.f32 %v1383_v49, %v405_v14 }
 0x209   : > { %v427_v15 = vmax.f32 %v1394_v54, %v407_v13 }
 0x20a   : > { %444 = vrot.lane.b32.xlu0 %v426_v16, %s1245_s19  ;;  %v494_v16 = vstv %s1567_s16 }
 0x20b   : > { %446 = vrot.lane.b32.xlu1 %v427_v15, %s1245_s19  ;;  %v409_v18 = vpop.permute.xlu0 %408 }
 0x20c   : > { %v411_v17 = vpop.permute.xlu1 %410  ;;  %v428_v43 = vmax.f32 %v1397_v55, %v409_v18 }
 0x20d   : > { %v429_v48 = vmax.f32 %v1408_v60, %v411_v17 }
 0x20e   : > { %448 = vrot.lane.b32.xlu0 %v428_v43, %s1245_s19 }
 0x20f   : > { %450 = vrot.lane.b32.xlu1 %v429_v48, %s1245_s19  ;;  %v413_v20 = vpop.permute.xlu0 %412 }
 0x210   : > { %v415_v19 = vpop.permute.xlu1 %414  ;;  %v430_v49 = vmax.f32 %v1411_v61, %v413_v20 }
 0x211   : > { %v431_v54 = vmax.f32 %v1420_v0, %v415_v19 }
 0x212   : > { %452 = vrot.lane.b32.xlu0 %v430_v49, %s1245_s19 }
 0x213   : > { %454 = vrot.lane.b32.xlu1 %v431_v54, %s1245_s19  ;;  %v765_v22 = vpop.permute.xlu0 %764  ;;  %s1573_s19 = spop %1157 }
 0x214   : > { %v763_v21 = vpop.permute.xlu1 %762  ;;  %s1575_s20 = spop %1159 }
 0x215   : > { %1189 = vpush %v763_v21  ;;  %s1577_s21 = spop %1161  ;;  %v531_v10 = vstv %s1575_s20 }
 0x216   : > { %1191 = vpush %v765_v22  ;;  %s1579_s22 = spop %1163  ;;  %v534_v49 = vstv %s1577_s21 }
 0x217   : > { %v869_v55 = vpop.permute.xlu0 %868  ;;  %s1581_s23 = spop %1165 }
 0x218   : > { %v767_v60 = vpop.permute.xlu1 %766  ;;  %s1583_s24 = spop %1167 }
 0x219   : > { %1193 = vpush %v767_v60  ;;  %s1585_s25 = spop %1169 }
 0x21a   : > { %1195 = vpush %v1508_v62  ;;  %s1587_s26 = spop %1171 }
 0x21b   : > { %1197 = vpush %v837_v6  ;;  %v873_v24 = vpop.permute.xlu0 %872  ;;  %s1589_s27 = spop %1173  ;;  %v665_v11 = vstv %s1587_s26 }
 0x21c   : > { %v871_v23 = vpop.permute.xlu1 %870  ;;  %1199 = vpush %v1516_v7  ;;  %s1591_s28 = spop %1175  ;;  %v668_v21 = vstv %s1589_s27 }
 0x21d   : > { %1201 = vpush %v839_v26  ;;  %s1593_s29 = spop %1177  ;;  %v528_v26 = vstv %s1573_s19 }
 0x21e   : > { %1203 = vpush %v869_v55  ;;  %s1595_s4 = spop %1179 }
 0x21f   : > { %1205 = vpush %v871_v23  ;;  %v937_v0 = vpop.permute.xlu0 %936  ;;  %s1601_s5 = spop %1181  ;;  %v671_v23 = vstv %s1591_s28 }
 0x220   : > { %v875_v61 = vpop.permute.xlu1 %874  ;;  %1207 = vpush %v873_v24  ;;  %s1603_s6 = spop %1183  ;;  %v674_v24 = vstv %s1593_s29 }
 0x221   : > { %1209 = vpush %v875_v61  ;;  %s1605_s7 = spop %1185 }
 0x222   : > { %1211 = vpush %v937_v0  ;;  %s1607_s8 = spop %1187 }
 0x223   : > { %v941_v30 = vpop.permute.xlu0 %940 }
 0x224   : > { %v939_v29 = vpop.permute.xlu1 %938 }
 0x225   : > { %1213 = vpush %v939_v29 }
 0x226   : > { %1215 = vpush %v941_v30 }
 0x228   : > { %v943_v31 = vpop.permute.xlu1 %942 }
 0x229   : > { %1217 = vpush %v943_v31 }
 0x230   : > { %v1599_v33 = vpop.permute.xlu0 %1029 }
 0x234   : > { %v1611_v35 = vpop.permute.xlu0 %1041 }
 0x235   : > { %v1597_v32 = vpop.permute.xlu1 %1033 }
 0x239   : > { %v1609_v34 = vpop.permute.xlu1 %1037 }
 0x246   : > { %s1613_s9 = spop %1189 }
 0x247   : > { %s1615_s10 = spop %1191 }
 0x24a   : > { %s1619_s11 = spop %1193 }
 0x24b   : > { %s1196_s30 = spop %1195 }
 0x24c   : > { %v841_v40 = vstv %s1196_s30  ;;  %s1198_s0 = spop %1197  ;;  %s1932_s30 = smov 126  }
 0x24d   : > { %v844_v56 = vstv %s1198_s0  ;;  %s1689_s0 = spop %1199 }
 0x24e   : > { %s1202_s14 = spop %1201 }
 0x24f   : > { %s1204_s16 = spop %1203 }
 0x278   : > { %v441_v37 = vpop.permute.xlu0 %440 }
 0x279   : > { %v443_v36 = vpop.permute.xlu1 %442  ;;  %464 = vst.msk [vmem:[#allocation2 + $0x2] sm:$0xff] %vm233_vm2, %v441_v37  ;;  %v593_v37 = vstv %s1579_s22 }
 0x27a   : > { %465 = vst.msk [vmem:[#allocation2 + $0xa] sm:$0xff] %vm233_vm2, %v443_v36  ;;  %v498_v36 = vstv %s1569_s17  ;;  %s1206_s17 = spop %1205 }
 0x27b   : > { %s1208_s18 = spop %1207 }
 0x27c   : > { %v445_v39 = vpop.permute.xlu0 %444  ;;  %s1210_s19 = spop %1209 }
 0x27d   : > { %v447_v38 = vpop.permute.xlu1 %446  ;;  %466 = vst.msk [vmem:[#allocation2 + $0x1a] sm:$0xff] %vm233_vm2, %v445_v39  ;;  %v850_v39 = vstv %s1202_s14  ;;  %s1212_s20 = spop %1211 }
 0x27e   : > { %467 = vst.msk [vmem:[#allocation2 + $0x22] sm:$0xff] %vm233_vm2, %v447_v38  ;;  %v847_v38 = vstv %s1689_s0  ;;  %s1214_s21 = spop %1213 }
 0x27f   : > { %s1216_s22 = spop %1215 }
 0x280   : > { %v449_v45 = vpop.permute.xlu0 %448  ;;  %v1639_v53 = vld [vmem:[#allocation2] sm:$0xff] }
 0x281   : > { %v1623_v41 = vld [vmem:[#allocation2 + $0x4] sm:$0xff]  ;;  %v1625_v42 = vld [vmem:[#allocation2 + $0xc] sm:$0xff]  ;;  %v451_v44 = vpop.permute.xlu1 %450  ;;  %468 = vst.msk [vmem:[#allocation2 + $0x32] sm:$0xff] %vm233_vm2, %v449_v45  ;;  %v536_v58 = vmul.f32 %v525_v50, %v1639_v53  ;;  %v1671_v4 = vmul.f32 %v486_v47, %v1639_v53 }
 0x282   : > { %v1627_v46 = vld [vmem:[#allocation2 + $0x8] sm:$0xff]  ;;  %v1632_v51 = vmul.f32 %v841_v40, %v1623_v41  ;;  %v1635_v52 = vmul.f32 %v841_v40, %v1625_v42  ;;  %469 = vst.msk [vmem:[#allocation2 + $0x3a] sm:$0xff] %vm233_vm2, %v451_v44 }
 0x283   : > { %v537_v57 = vmul.f32 %v525_v50, %v1627_v46  ;;  %552 = vrot.lane.b32.xlu0 %v536_v58, %s1932_s30  ;;  %v1648_v5 = vmul.f32 %v486_v47, %v1627_v46  ;;  %v1681_v13 = vld [vmem:[#allocation2 + $0xa] sm:$0xff]  ;;  %v1691_v48 = vld [vmem:[#allocation2 + $0x2] sm:$0xff] }
 0x284   : > { %v453_v63 = vpop.permute.xlu0 %452  ;;  %v1659_v8 = vld [vmem:[#allocation2 + $0x18] sm:$0xff]  ;;  %v1703_v54 = vmul.f32 %v665_v11, %v1681_v13 }
 0x285   : > { %v1643_v59 = vld [vmem:[#allocation2 + $0x1c] sm:$0xff]  ;;  %554 = vrot.lane.b32.xlu1 %v537_v57, %s1932_s30  ;;  %v455_v62 = vpop.permute.xlu1 %454  ;;  %v1650_v6 = vld [vmem:[#allocation2 + $0x24] sm:$0xff]  ;;  %470 = vst.msk [vmem:[#allocation2 + $0x4a] sm:$0xff] %vm233_vm2, %v453_v63  ;;  %v538_v2 = vmul.f32 %v528_v26, %v1659_v8  ;;  %v1694_v43 = vmul.f32 %v490_v1, %v1659_v8  ;;  %v1737_v57 = vmul.f32 %v665_v11, %v1691_v48 }
 0x286   : > { %v1653_v7 = vmul.f32 %v844_v56, %v1643_v59  ;;  %471 = vst.msk [vmem:[#allocation2 + $0x52] sm:$0xff] %vm233_vm2, %v455_v62  ;;  %v1657_v25 = vld [vmem:[#allocation2 + $0x20] sm:$0xff]  ;;  %v1663_v27 = vmul.f32 %v844_v56, %v1650_v6 }
 0x287   : > { %v539_v28 = vmul.f32 %v528_v26, %v1657_v25  ;;  %v1674_v9 = vmul.f32 %v490_v1, %v1657_v25  ;;  %556 = vrot.lane.b32.xlu0 %v538_v2, %s1932_s30  ;;  %v1687_v17 = vld [vmem:[#allocation2 + $0x1a] sm:$0xff]  ;;  %v1707_v22 = vld [vmem:[#allocation2 + $0x22] sm:$0xff] }
 0x288   : > { %v1679_v12 = vld [vmem:[#allocation2 + $0x30] sm:$0xff]  ;;  %v1740_v58 = vmul.f32 %v668_v21, %v1707_v22  ;;  %v1744_v62 = vmul.f32 %v668_v21, %v1687_v17 }
 0x289   : > { %v1668_v3 = vld [vmem:[#allocation2 + $0x38] sm:$0xff]  ;;  %558 = vrot.lane.b32.xlu1 %v539_v28, %s1932_s30  ;;  %v540_v15 = vmul.f32 %v531_v10, %v1679_v12  ;;  %v1700_v20 = vmul.f32 %v494_v16, %v1679_v12 }
 0x28a   : > { %v541_v14 = vmul.f32 %v531_v10, %v1668_v3  ;;  %v1697_v19 = vmul.f32 %v494_v16, %v1668_v3  ;;  %v1709_v60 = vld [vmem:[#allocation2 + $0x34] sm:$0xff]  ;;  %v1724_v40 = vld [vmem:[#allocation2 + $0x3c] sm:$0xff]  ;;  %v604_v16 = vmul.f32 %v593_v37, %v1639_v53 }
 0x28b   : > { %560 = vrot.lane.b32.xlu0 %v540_v15, %s1932_s30  ;;  %v1715_v29 = vld [vmem:[#allocation2 + $0x3a] sm:$0xff]  ;;  %v1717_v30 = vld [vmem:[#allocation2 + $0x32] sm:$0xff]  ;;  %v1760_v2 = vmul.f32 %v847_v38, %v1709_v60  ;;  %v1763_v10 = vmul.f32 %v847_v38, %v1724_v40 }
 0x28c   : > { %v482_v55 = vld [vmem:[#allocation2 + $0x48] sm:$0xff]  ;;  %v1747_v63 = vmul.f32 %v671_v23, %v1715_v29  ;;  %v1750_v26 = vmul.f32 %v671_v23, %v1717_v30 }
 0x28d   : > { %v483_v18 = vld [vmem:[#allocation2 + $0x50] sm:$0xff]  ;;  %562 = vrot.lane.b32.xlu1 %v541_v14, %s1932_s30  ;;  %v542_v0 = vmul.f32 %v534_v49, %v482_v55  ;;  %v1734_v56 = vmul.f32 %v498_v36, %v482_v55  ;;  %v605_v14 = vmul.f32 %v593_v37, %v1627_v46  ;;  %v599_v46 = vstv %s1583_s24  ;;  %s1146_s24 = sshll.u32 %s1934_s13, 6 }
 0x28e   : > { %v543_v61 = vmul.f32 %v534_v49, %v483_v18  ;;  %v1719_v31 = vld [vmem:[#allocation2 + $0x52] sm:$0xff]  ;;  %v1728_v45 = vld [vmem:[#allocation2 + $0x4a] sm:$0xff]  ;;  %v1732_v50 = vmul.f32 %v498_v36, %v483_v18  ;;  %v596_v49 = vstv %s1581_s23  ;;  %v608_v53 = vmul.f32 %v599_v46, %v1679_v12  ;;  %s1218_s23 = spop %1217  ;;  %s1888_s27 = scalar_lea.vmem %s1920_s3, %s1146_s24 }
 0x28f   : > { %v1726_v44 = vld [vmem:[#allocation2 + $0x4c] sm:$0xff]  ;;  %v1730_v47 = vld [vmem:[#allocation2 + $0x54] sm:$0xff]  ;;  %v1753_v1 = vmul.f32 %v674_v24, %v1719_v31  ;;  %564 = vrot.lane.b32.xlu0 %v542_v0, %s1932_s30  ;;  %v1757_v28 = vmul.f32 %v674_v24, %v1728_v45  ;;  %v607_v21 = vmul.f32 %v596_v49, %v1657_v25  ;;  %v606_v23 = vmul.f32 %v596_v49, %v1659_v8 }
 0x290   : > { %v1766_v11 = vmul.f32 %v850_v39, %v1726_v44  ;;  %v1770_v15 = vmul.f32 %v850_v39, %v1730_v47  ;;  %v609_v24 = vmul.f32 %v599_v46, %v1668_v3  ;;  %v701_v8 = vstv %s1595_s4 }
 0x291   : > { %566 = vrot.lane.b32.xlu1 %v543_v61, %s1932_s30  ;;  %v602_v61 = vstv %s1585_s25  ;;  %v713_v36 = vmul.f32 %v701_v8, %v1681_v13  ;;  %v712_v3 = vmul.f32 %v701_v8, %v1691_v48  ;;  %v704_v12 = vstv %s1601_s5 }
 0x292   : > { %v611_v0 = vmul.f32 %v602_v61, %v483_v18  ;;  %v610_v25 = vmul.f32 %v602_v61, %v482_v55  ;;  %v715_v37 = vmul.f32 %v704_v12, %v1707_v22  ;;  %v714_v18 = vmul.f32 %v704_v12, %v1687_v17 }
 0x293   : > { %620 = vrot.lane.b32.xlu0 %v604_v16, %s1250_s15  ;;  %v707_v55 = vstv %s1603_s6 }
 0x294   : > { %v717_v38 = vmul.f32 %v707_v55, %v1715_v29  ;;  %v716_v39 = vmul.f32 %v707_v55, %v1717_v30 }
 0x295   : > { %622 = vrot.lane.b32.xlu1 %v605_v14, %s1250_s15  ;;  %v710_v14 = vstv %s1605_s7 }
 0x296   : > { %v719_v16 = vmul.f32 %v710_v14, %v1719_v31  ;;  %v718_v49 = vmul.f32 %v710_v14, %v1728_v45 }
 0x297   : > { %624 = vrot.lane.b32.xlu0 %v606_v23, %s1250_s15 }
 0x299   : > { %626 = vrot.lane.b32.xlu1 %v607_v21, %s1250_s15  ;;  %v769_v21 = vstv %s1607_s8 }
 0x29a   : > { %v781_v23 = vmul.f32 %v769_v21, %v1681_v13  ;;  %v780_v46 = vmul.f32 %v769_v21, %v1691_v48  ;;  %v778_v48 = vstv %s1619_s11 }
 0x29b   : > { %628 = vrot.lane.b32.xlu0 %v608_v53, %s1250_s15  ;;  %v787_v8 = vmul.f32 %v778_v48, %v1719_v31 }
 0x29d   : > { %630 = vrot.lane.b32.xlu1 %v609_v24, %s1250_s15  ;;  %v772_v24 = vstv %s1613_s9 }
 0x29e   : > { %v783_v53 = vmul.f32 %v772_v24, %v1707_v22  ;;  %v782_v61 = vmul.f32 %v772_v24, %v1687_v17  ;;  %v877_v22 = vstv %s1204_s16  ;;  %v786_v17 = vmul.f32 %v778_v48, %v1728_v45 }
 0x29f   : > { %632 = vrot.lane.b32.xlu0 %v610_v25, %s1250_s15  ;;  %v883_v45 = vstv %s1208_s18  ;;  %v954_v24 = vstv %s1218_s23 }
 0x2a0   : > { %v892_v12 = vmul.f32 %v883_v45, %v1709_v60 }
 0x2a1   : > { %634 = vrot.lane.b32.xlu1 %v611_v0, %s1250_s15  ;;  %v775_v0 = vstv %s1615_s10 }
 0x2a2   : > { %v785_v25 = vmul.f32 %v775_v0, %v1715_v29  ;;  %v784_v13 = vmul.f32 %v775_v0, %v1717_v30  ;;  %v889_v29 = vmul.f32 %v877_v22, %v1625_v42  ;;  %v880_v30 = vstv %s1206_s17 }
 0x2a3   : > { %728 = vrot.lane.b32.xlu0 %v712_v3, %s1932_s30  ;;  %v890_v3 = vmul.f32 %v880_v30, %v1643_v59  ;;  %v891_v31 = vmul.f32 %v880_v30, %v1650_v6 }
 0x2a5   : > { %730 = vrot.lane.b32.xlu1 %v713_v36, %s1932_s30  ;;  %v888_v36 = vmul.f32 %v877_v22, %v1623_v41 }
 0x2a7   : > { %732 = vrot.lane.b32.xlu0 %v714_v18, %s1932_s30  ;;  %v893_v18 = vmul.f32 %v883_v45, %v1724_v40 }
 0x2a9   : > { %734 = vrot.lane.b32.xlu1 %v715_v37, %s1932_s30  ;;  %v886_v37 = vstv %s1210_s19 }
 0x2aa   : > { %v894_v55 = vmul.f32 %v886_v37, %v1726_v44 }
 0x2ab   : > { %736 = vrot.lane.b32.xlu0 %v716_v39, %s1932_s30  ;;  %v895_v39 = vmul.f32 %v886_v37, %v1730_v47 }
 0x2ad   : > { %738 = vrot.lane.b32.xlu1 %v717_v38, %s1932_s30  ;;  %v945_v38 = vstv %s1212_s20 }
 0x2ae   : > { %v956_v14 = vmul.f32 %v945_v38, %v1623_v41 }
 0x2af   : > { %740 = vrot.lane.b32.xlu0 %v718_v49, %s1932_s30  ;;  %v948_v49 = vstv %s1214_s21 }
 0x2b0   : > { %v958_v21 = vmul.f32 %v948_v49, %v1643_v59  ;;  %v963_v59 = vmul.f32 %v954_v24, %v1730_v47 }
 0x2b1   : > { %742 = vrot.lane.b32.xlu1 %v719_v16, %s1932_s30  ;;  %v957_v16 = vmul.f32 %v945_v38, %v1625_v42 }
 0x2b3   : > { %796 = vrot.lane.b32.xlu0 %v780_v46, %s1250_s15  ;;  %v951_v46 = vstv %s1216_s22 }
 0x2b4   : > { %v960_v41 = vmul.f32 %v951_v46, %v1709_v60  ;;  %v961_v42 = vmul.f32 %v951_v46, %v1724_v40 }
 0x2b5   : > { %798 = vrot.lane.b32.xlu1 %v781_v23, %s1250_s15  ;;  %v959_v23 = vmul.f32 %v948_v49, %v1650_v6 }
 0x2b7   : > { %800 = vrot.lane.b32.xlu0 %v782_v61, %s1250_s15 }
 0x2b9   : > { %802 = vrot.lane.b32.xlu1 %v783_v53, %s1250_s15  ;;  %v962_v53 = vmul.f32 %v954_v24, %v1726_v44 }
 0x2bb   : > { %804 = vrot.lane.b32.xlu0 %v784_v13, %s1250_s15 }
 0x2bd   : > { %806 = vrot.lane.b32.xlu1 %v785_v25, %s1250_s15 }
 0x2bf   : > { %808 = vrot.lane.b32.xlu0 %v786_v17, %s1250_s15 }
 0x2c1   : > { %810 = vrot.lane.b32.xlu1 %v787_v8, %s1250_s15 }
 0x2c3   : > { %906 = vrot.lane.b32.xlu0 %v889_v29, %s1932_s30 }
 0x2c5   : > { %904 = vrot.lane.b32.xlu1 %v888_v36, %s1932_s30 }
 0x2c7   : > { %910 = vrot.lane.b32.xlu0 %v891_v31, %s1932_s30 }
 0x2c9   : > { %908 = vrot.lane.b32.xlu1 %v890_v3, %s1932_s30 }
 0x2cb   : > { %914 = vrot.lane.b32.xlu0 %v893_v18, %s1932_s30 }
 0x2cd   : > { %912 = vrot.lane.b32.xlu1 %v892_v12, %s1932_s30 }
 0x2cf   : > { %918 = vrot.lane.b32.xlu0 %v895_v39, %s1932_s30 }
 0x2d1   : > { %916 = vrot.lane.b32.xlu1 %v894_v55, %s1932_s30 }
 0x2d3   : > { %974 = vrot.lane.b32.xlu0 %v957_v16, %s1250_s15 }
 0x2d5   : > { %972 = vrot.lane.b32.xlu1 %v956_v14, %s1250_s15 }
 0x2d7   : > { %978 = vrot.lane.b32.xlu0 %v959_v23, %s1250_s15 }
 0x2d9   : > { %976 = vrot.lane.b32.xlu1 %v958_v21, %s1250_s15 }
 0x2db   : > { %982 = vrot.lane.b32.xlu0 %v961_v42, %s1250_s15 }
 0x2dd   : > { %980 = vrot.lane.b32.xlu1 %v960_v41, %s1250_s15 }
 0x2df   : > { %986 = vrot.lane.b32.xlu0 %v963_v59, %s1250_s15 }
 0x2e1   : > { %984 = vrot.lane.b32.xlu1 %v962_v53, %s1250_s15 }
 0x2f5   : > { %v553_v61 = vpop.permute.xlu0 %552 }
 0x2f6   : > { %v576_v60 = vadd.f32 %v553_v61, %v1671_v4 }
 0x2f7   : > { %v555_v6 = vpop.permute.xlu1 %554 }
 0x2f8   : > { %v577_v0 = vadd.f32 %v555_v6, %v1648_v5 }
 0x2f9   : > { %v557_v13 = vpop.permute.xlu0 %556 }
 0x2fa   : > { %v578_v48 = vadd.f32 %v557_v13, %v1694_v43 }
 0x2fb   : > { %v559_v40 = vpop.permute.xlu1 %558 }
 0x2fc   : > { %v579_v25 = vadd.f32 %v559_v40, %v1674_v9 }
 0x2fd   : > { %v561_v47 = vpop.permute.xlu0 %560 }
 0x2fe   : > { %v580_v22 = vadd.f32 %v561_v47, %v1700_v20 }
 0x2ff   : > { %v563_v8 = vpop.permute.xlu1 %562 }
 0x300   : > { %v581_v44 = vadd.f32 %v563_v8, %v1697_v19 }
 0x301   : > { %v565_v29 = vpop.permute.xlu0 %564 }
 0x302   : > { %v582_v5 = vadd.f32 %v565_v29, %v1734_v56 }
 0x303   : > { %v567_v17 = vpop.permute.xlu1 %566 }
 0x304   : > { %v583_v36 = vadd.f32 %v567_v17, %v1732_v50 }
 0x305   : > { %v621_v3 = vpop.permute.xlu0 %620 }
 0x306   : > { %v644_v31 = vadd.f32 %v621_v3, %v576_v60 }
 0x307   : > { %v623_v30 = vpop.permute.xlu1 %622 }
 0x308   : > { %v645_v4 = vadd.f32 %v623_v30, %v577_v0  ;;  %v684_v43 = vadd.f32 %v1737_v57, %v644_v31 }
 0x309   : > { %v625_v19 = vpop.permute.xlu0 %624 }
 0x30a   : > { %v685_v9 = vadd.f32 %v1703_v54, %v645_v4  ;;  %v646_v37 = vadd.f32 %v625_v19, %v578_v48 }
 0x30b   : > { %v627_v45 = vpop.permute.xlu1 %626 }
 0x30c   : > { %v647_v12 = vadd.f32 %v627_v45, %v579_v25  ;;  %v686_v50 = vadd.f32 %v1744_v62, %v646_v37 }
 0x30d   : > { %v629_v38 = vpop.permute.xlu0 %628 }
 0x30e   : > { %v687_v20 = vadd.f32 %v1740_v58, %v647_v12  ;;  %v648_v56 = vadd.f32 %v629_v38, %v580_v22 }
 0x30f   : > { %v631_v18 = vpop.permute.xlu1 %630 }
 0x310   : > { %v649_v55 = vadd.f32 %v631_v18, %v581_v44  ;;  %v688_v16 = vadd.f32 %v1750_v26, %v648_v56 }
 0x311   : > { %v633_v49 = vpop.permute.xlu0 %632 }
 0x312   : > { %v689_v39 = vadd.f32 %v1747_v63, %v649_v55  ;;  %v650_v21 = vadd.f32 %v633_v49, %v582_v5 }
 0x313   : > { %v635_v14 = vpop.permute.xlu1 %634 }
 0x314   : > { %v651_v54 = vadd.f32 %v635_v14, %v583_v36  ;;  %v690_v46 = vadd.f32 %v1757_v28, %v650_v21 }
 0x315   : > { %v729_v58 = vpop.permute.xlu0 %728 }
 0x316   : > { %v691_v57 = vadd.f32 %v1753_v1, %v651_v54  ;;  %v752_v63 = vadd.f32 %v729_v58, %v684_v43 }
 0x317   : > { %v731_v23 = vpop.permute.xlu1 %730 }
 0x318   : > { %v753_v6 = vadd.f32 %v731_v23, %v685_v9 }
 0x319   : > { %v733_v42 = vpop.permute.xlu0 %732 }
 0x31a   : > { %v754_v1 = vadd.f32 %v733_v42, %v686_v50 }
 0x31b   : > { %v735_v41 = vpop.permute.xlu1 %734 }
 0x31c   : > { %v755_v40 = vadd.f32 %v735_v41, %v687_v20 }
 0x31d   : > { %v737_v24 = vpop.permute.xlu0 %736 }
 0x31e   : > { %v756_v17 = vadd.f32 %v737_v24, %v688_v16 }
 0x31f   : > { %v739_v62 = vpop.permute.xlu1 %738 }
 0x320   : > { %v757_v47 = vadd.f32 %v739_v62, %v689_v39 }
 0x321   : > { %v741_v59 = vpop.permute.xlu0 %740 }
 0x322   : > { %v758_v31 = vadd.f32 %v741_v59, %v690_v46 }
 0x323   : > { %v743_v53 = vpop.permute.xlu1 %742 }
 0x324   : > { %v759_v3 = vadd.f32 %v743_v53, %v691_v57 }
 0x325   : > { %v797_v26 = vpop.permute.xlu0 %796 }
 0x326   : > { %v820_v60 = vadd.f32 %v797_v26, %v752_v63 }
 0x327   : > { %v799_v61 = vpop.permute.xlu1 %798 }
 0x328   : > { %v821_v0 = vadd.f32 %v799_v61, %v753_v6  ;;  %v860_v28 = vadd.f32 %v1632_v51, %v820_v60 }
 0x329   : > { %v801_v8 = vpop.permute.xlu0 %800 }
 0x32a   : > { %v861_v25 = vadd.f32 %v1635_v52, %v821_v0  ;;  %v822_v44 = vadd.f32 %v801_v8, %v754_v1 }
 0x32b   : > { %v803_v13 = vpop.permute.xlu1 %802 }
 0x32c   : > { %v823_v48 = vadd.f32 %v803_v13, %v755_v40  ;;  %v862_v29 = vadd.f32 %v1653_v7, %v822_v44 }
 0x32d   : > { %v805_v30 = vpop.permute.xlu0 %804 }
 0x32e   : > { %v863_v22 = vadd.f32 %v1663_v27, %v823_v48  ;;  %v824_v4 = vadd.f32 %v805_v30, %v756_v17 }
 0x32f   : > { %v807_v36 = vpop.permute.xlu1 %806 }
 0x330   : > { %v825_v5 = vadd.f32 %v807_v36, %v757_v47  ;;  %v864_v51 = vadd.f32 %v1760_v2, %v824_v4 }
 0x331   : > { %v809_v43 = vpop.permute.xlu0 %808 }
 0x332   : > { %v865_v52 = vadd.f32 %v1763_v10, %v825_v5  ;;  %v826_v12 = vadd.f32 %v809_v43, %v758_v31 }
 0x333   : > { %v811_v9 = vpop.permute.xlu1 %810 }
 0x334   : > { %v827_v45 = vadd.f32 %v811_v9, %v759_v3  ;;  %v866_v37 = vadd.f32 %v1766_v11, %v826_v12 }
 0x335   : > { %v907_v7 = vpop.permute.xlu0 %906 }
 0x336   : > { %v867_v27 = vadd.f32 %v1770_v15, %v827_v45  ;;  %v929_v39 = vadd.f32 %v907_v7, %v861_v25 }
 0x337   : > { %v905_v19 = vpop.permute.xlu1 %904 }
 0x338   : > { %v928_v56 = vadd.f32 %v905_v19, %v860_v28 }
 0x339   : > { %v911_v18 = vpop.permute.xlu0 %910 }
 0x33a   : > { %v931_v49 = vadd.f32 %v911_v18, %v863_v22 }
 0x33b   : > { %v909_v20 = vpop.permute.xlu1 %908 }
 0x33c   : > { %v930_v15 = vadd.f32 %v909_v20, %v862_v29 }
 0x33d   : > { %v915_v55 = vpop.permute.xlu0 %914 }
 0x33e   : > { %v933_v62 = vadd.f32 %v915_v55, %v865_v52 }
 0x33f   : > { %v913_v50 = vpop.permute.xlu1 %912 }
 0x340   : > { %v932_v41 = vadd.f32 %v913_v50, %v864_v51 }
 0x341   : > { %v919_v10 = vpop.permute.xlu0 %918 }
 0x342   : > { %v935_v0 = vadd.f32 %v919_v10, %v867_v27 }
 0x343   : > { %v917_v38 = vpop.permute.xlu1 %916 }
 0x344   : > { %v934_v63 = vadd.f32 %v917_v38, %v866_v37 }
 0x345   : > { %v975_v16 = vpop.permute.xlu0 %974 }
 0x346   : > { %v997_v11 = vadd.f32 %v975_v16, %v929_v39 }
 0x347   : > { %v973_v14 = vpop.permute.xlu1 %972 }
 0x348   : > { %v996_v2 = vadd.f32 %v973_v14, %v928_v56  ;;  %v1045_v21 = vadd.f32 %v1599_v33, %v997_v11 }
 0x349   : > { %v979_v46 = vpop.permute.xlu0 %978 }
 0x34a   : > { %v1044_v54 = vadd.f32 %v1599_v33, %v996_v2  ;;  %1054 = vst.msk [vmem:[%s1888_s27 + $0x8] sm:$0xff] %vm1052_vm6, %v1045_v21  ;;  %v999_v58 = vadd.f32 %v979_v46, %v931_v49 }
 0x34b   : > { %v977_v57 = vpop.permute.xlu1 %976 }
 0x34c   : > { %1053 = vst.msk [vmem:[%s1888_s27] sm:$0xff] %vm1052_vm6, %v1044_v54  ;;  %v998_v23 = vadd.f32 %v977_v57, %v930_v15  ;;  %v1047_v24 = vadd.f32 %v1597_v32, %v999_v58 }
 0x34d   : > { %v983_v59 = vpop.permute.xlu0 %982 }
 0x34e   : > { %v1046_v42 = vadd.f32 %v1597_v32, %v998_v23  ;;  %1056 = vst.msk [vmem:[%s1888_s27 + $0x18] sm:$0xff] %vm1052_vm6, %v1047_v24  ;;  %v1001_v6 = vadd.f32 %v983_v59, %v933_v62 }
 0x34f   : > { %v981_v53 = vpop.permute.xlu1 %980 }
 0x350   : > { %1055 = vst.msk [vmem:[%s1888_s27 + $0x10] sm:$0xff] %vm1052_vm6, %v1046_v42  ;;  %v1000_v33 = vadd.f32 %v981_v53, %v932_v41  ;;  %v1049_v26 = vadd.f32 %v1609_v34, %v1001_v6 }
 0x351   : > { %v987_v40 = vpop.permute.xlu0 %986 }
 0x352   : > { %v1048_v61 = vadd.f32 %v1609_v34, %v1000_v33  ;;  %1058 = vst.msk [vmem:[%s1888_s27 + $0x28] sm:$0xff] %vm1052_vm6, %v1049_v26  ;;  %v1003_v25 = vadd.f32 %v987_v40, %v935_v0 }
 0x353   : > { %v985_v60 = vpop.permute.xlu1 %984 }
 0x354   : > { %1057 = vst.msk [vmem:[%s1888_s27 + $0x20] sm:$0xff] %vm1052_vm6, %v1048_v61  ;;  %v1002_v32 = vadd.f32 %v985_v60, %v934_v63  ;;  %v1051_v13 = vadd.f32 %v1611_v35, %v1003_v25 }
 0x356   : > { %v1050_v1 = vadd.f32 %v1611_v35, %v1002_v32  ;;  %1060 = vst.msk [vmem:[%s1888_s27 + $0x38] sm:$0xff] %vm1052_vm6, %v1051_v13 }
 0x358   : > { %1059 = vst.msk [vmem:[%s1888_s27 + $0x30] sm:$0xff] %vm1052_vm6, %v1050_v1 }
 0x359 PF: > { %s13_s12 = sadd.s32 1, %s1242_s12  }
 0x35a   : > { %p10_p4 = scmp.ge.s32.totalorder %s13_s12, 4  }
 0x35c   :  { %12 = sbr.rel (!%p10_p4) target bundleno = 2 (0x2), region = 62 }

// kernel: dafm_forward.8
= control target key start
LH: loop header
LB: loop body
LE: loop exit
PB: predicated region body
PF: predicated region fallthrough
CT: control target
= control target key end

     0   :  { %s1734_s12 = smov 0   ;;  %s2793_s0 = inlined_call_operand.vmem [shape: f32[2,16,16,16], index: 0, kind: input, shape index: {}]   ;;  %s2794_s1 = inlined_call_operand.vmem [shape: f32[4,3,3], index: 1, kind: input, shape index: {}]   ;;  %s2795_s2 = inlined_call_operand.vmem [shape: f32[4,1,1], index: 2, kind: input, shape index: {}]   ;;  %s2796_s3 = inlined_call_operand.vmem [shape: f32[2,4,16,16], index: 3, kind: output, shape index: {}]  }
   0x1   :  { %2808 = sst [smem:[#allocation12_spill]] %s2793_s0 }
   0x2   :  { %2809 = sst [smem:[#allocation13_spill]] %s2794_s1 }
   0x3   :  { %2810 = sst [smem:[#allocation14_spill]] %s2796_s3 }
   0x4 LB: > { %2811 = sst [smem:[#allocation3_spill]] %s1699_s12  ;;  %s1573_s13 = sadd.s32 4294967295, %s1699_s12   ;;  %s1699_s12 = sphi %s1734_s12, %s13_s12  }
   0x5   : > { %p1577_p0 = scmp.ge.s32.totalorder %s1699_s12, 1  ;;  %p138_p1 = scmp.lt.s32.totalorder %s1699_s12, 3 }
   0x7   : > { %p139_p2 = pnand %p1577_p0, %p138_p1 }
   0x9   : > { %142 = sbr.rel (%p139_p2) target bundleno = 1859 (0x743), region = 32 }
   0xe   : > { %p1742_p3 = scmp.lt.s32.totalorder %s1573_s13, 1  ;;  %vm174_vm0 = vcmask 261120   ;;  %v1701_v0 = vmov 0.0   ;;  %s2814_s0 = sld [smem:[#allocation12_spill]]  ;;  %vm236_vm1 = vcmask 195648   ;;  %v199_v26 = vlaneseq }
   0xf   : > { %176 = vst.msk [vmem:[#allocation2 + $0x8] sm:$0xff] %vm174_vm0, %v1701_v0  ;;  %175 = vst.msk [vmem:[#allocation2] sm:$0xff] %vm174_vm0, %v1701_v0  ;;  %s2806_s19 = smov 8   ;;  %s1703_s20 = smov 119   ;;  %vm1503_vm11 = vcmask 130048  }
  0x10   : > { %177 = vst.msk [vmem:[#allocation2 + $0x10] sm:$0xff] %vm174_vm0, %v1701_v0  ;;  %178 = vst.msk [vmem:[#allocation2 + $0x18] sm:$0xff] %vm174_vm0, %v1701_v0  ;;  %s2855_s13 = smov (!%p1742_p3, %s1573_s13), 1  ;;  %s1704_s21 = smov 121   ;;  %v1811_v29 = vand.u32 127, %v199_v26 }
  0x11   : > { %179 = vst.msk [vmem:[#allocation2 + $0x20] sm:$0xff] %vm174_vm0, %v1701_v0  ;;  %180 = vst.msk [vmem:[#allocation2 + $0x28] sm:$0xff] %vm174_vm0, %v1701_v0  ;;  %2813 = sst [smem:[#allocation4_spill]] %s2855_s13  ;;  %s1596_s15 = sshll.u32 %s2855_s13, 8 }
  0x12   : > { %181 = vst.msk [vmem:[#allocation2 + $0x30] sm:$0xff] %vm174_vm0, %v1701_v0  ;;  %182 = vst.msk [vmem:[#allocation2 + $0x38] sm:$0xff] %vm174_vm0, %v1701_v0  ;;  %v253_v32 = vand.u32 1, %v1811_v29  ;;  %s1705_s22 = smov 118   ;;  %s1706_s23 = smov 122  }
  0x13   : > { %183 = vst.msk [vmem:[#allocation2 + $0x40] sm:$0xff] %vm174_vm0, %v1701_v0  ;;  %184 = vst.msk [vmem:[#allocation2 + $0x48] sm:$0xff] %vm174_vm0, %v1701_v0  ;;  %s1707_s24 = smov 116   ;;  %s1708_s25 = smov 124  }
  0x14   : > { %185 = vst.msk [vmem:[#allocation2 + $0x50] sm:$0xff] %vm174_vm0, %v1701_v0  ;;  %186 = vst.msk [vmem:[#allocation2 + $0x58] sm:$0xff] %vm174_vm0, %v1701_v0  ;;  %s1545_s18 = scalar_lea.vmem %s2814_s0, %s1596_s15  ;;  %vm1814_vm2 = vcmp.eq.s32.totalorder %v253_v32, 0  ;;  %s2799_s26 = smov 120  }
  0x15   : > { %187 = vst.msk [vmem:[#allocation2 + $0x60] sm:$0xff] %vm174_vm0, %v1701_v0  ;;  %188 = vst.msk [vmem:[#allocation2 + $0x68] sm:$0xff] %vm174_vm0, %v1701_v0  ;;  %v1770_v1 = vld [vmem:[%s1545_s18 + $0xc0] sm:$0xff]  ;;  %v1772_v2 = vld [vmem:[%s1545_s18 + $0xd0] sm:$0xff]  ;;  %s2829_s1 = sld [smem:[#allocation13_spill]]  ;;  %s1710_s8 = smov 127  }
  0x16   : > { %189 = vst.msk [vmem:[#allocation2 + $0x70] sm:$0xff] %vm174_vm0, %v1701_v0  ;;  %190 = vst.msk [vmem:[#allocation2 + $0x78] sm:$0xff] %vm174_vm0, %v1701_v0  ;;  %212 = vrot.lane.b32.xlu0 %v1770_v1, %s2806_s19  ;;  %216 = vrot.lane.b32.xlu1 %v1772_v2, %s2806_s19  ;;  %v1778_v3 = vld [vmem:[%s1545_s18 + $0xc8] sm:$0xff]  ;;  %v1780_v4 = vld [vmem:[%s1545_s18 + $0xd8] sm:$0xff]  ;;  %s1711_s9 = smov 126   ;;  %s2842_s13 = smov 120  }
  0x17   : > { %v1786_v5 = vld [vmem:[%s1545_s18 + $0xe0] sm:$0xff]  ;;  %v1788_v6 = vld [vmem:[%s1545_s18 + $0xe8] sm:$0xff]  ;;  %v1794_v7 = vld [vmem:[%s1545_s18 + $0xf0] sm:$0xff] }
  0x18   : > { %v1796_v8 = vld [vmem:[%s1545_s18 + $0xf8] sm:$0xff] }
  0x1a   : > { %214 = vrot.lane.b32.xlu0 %v1778_v3, %s2806_s19  ;;  %218 = vrot.lane.b32.xlu1 %v1780_v4, %s2806_s19 }
  0x1e   : > { %220 = vrot.lane.b32.xlu0 %v1786_v5, %s2806_s19  ;;  %222 = vrot.lane.b32.xlu1 %v1788_v6, %s2806_s19 }
  0x22   : > { %224 = vrot.lane.b32.xlu0 %v1794_v7, %s2806_s19  ;;  %226 = vrot.lane.b32.xlu1 %v1796_v8, %s2806_s19 }
  0x88   : > { %v213_v9 = vpop.permute.xlu0 %212  ;;  %v217_v10 = vpop.permute.xlu1 %216 }
  0x89   : > { %237 = vst.msk [vmem:[#allocation2 + $0x8] sm:$0xff] %vm236_vm1, %v213_v9  ;;  %239 = vst.msk [vmem:[#allocation2 + $0x28] sm:$0xff] %vm236_vm1, %v217_v10 }
  0x8c   : > { %v215_v11 = vpop.permute.xlu0 %214  ;;  %v219_v12 = vpop.permute.xlu1 %218 }
  0x8d   : > { %238 = vst.msk [vmem:[#allocation2 + $0x10] sm:$0xff] %vm236_vm1, %v215_v11  ;;  %240 = vst.msk [vmem:[#allocation2 + $0x30] sm:$0xff] %vm236_vm1, %v219_v12 }
  0x90   : > { %v221_v13 = vpop.permute.xlu0 %220  ;;  %v245_v14 = vld [vmem:[#allocation2 + $0x8] sm:$0xff]  ;;  %v223_v15 = vpop.permute.xlu1 %222 }
  0x91   : > { %241 = vst.msk [vmem:[#allocation2 + $0x48] sm:$0xff] %vm236_vm1, %v221_v13  ;;  %263 = vrot.lane.b32.xlu0 %v245_v14, %s1703_s20  ;;  %242 = vst.msk [vmem:[#allocation2 + $0x50] sm:$0xff] %vm236_vm1, %v223_v15  ;;  %v247_v16 = vld [vmem:[#allocation2 + $0x28] sm:$0xff] }
  0x94   : > { %v225_v17 = vpop.permute.xlu0 %224  ;;  %v246_v18 = vld [vmem:[#allocation2 + $0x10] sm:$0xff]  ;;  %v227_v19 = vpop.permute.xlu1 %226 }
  0x95   : > { %243 = vst.msk [vmem:[#allocation2 + $0x68] sm:$0xff] %vm236_vm1, %v225_v17  ;;  %267 = vrot.lane.b32.xlu0 %v247_v16, %s1703_s20  ;;  %265 = vrot.lane.b32.xlu1 %v246_v18, %s1703_s20  ;;  %244 = vst.msk [vmem:[#allocation2 + $0x70] sm:$0xff] %vm236_vm1, %v227_v19  ;;  %v248_v20 = vld [vmem:[#allocation2 + $0x30] sm:$0xff] }
  0x98   : > { %v249_v21 = vld [vmem:[#allocation2 + $0x48] sm:$0xff]  ;;  %v250_v22 = vld [vmem:[#allocation2 + $0x50] sm:$0xff] }
  0x99   : > { %269 = vrot.lane.b32.xlu1 %v248_v20, %s1703_s20  ;;  %271 = vrot.lane.b32.xlu0 %v249_v21, %s1703_s20 }
  0x9c   : > { %v251_v23 = vld [vmem:[#allocation2 + $0x68] sm:$0xff]  ;;  %v252_v24 = vld [vmem:[#allocation2 + $0x70] sm:$0xff] }
  0x9d   : > { %273 = vrot.lane.b32.xlu1 %v250_v22, %s1703_s20  ;;  %275 = vrot.lane.b32.xlu0 %v251_v23, %s1703_s20 }
  0xa1   : > { %277 = vrot.lane.b32.xlu1 %v252_v24, %s1703_s20  ;;  %287 = vrot.lane.b32.xlu0 %v245_v14, %s1704_s21 }
  0xa5   : > { %289 = vrot.lane.b32.xlu1 %v246_v18, %s1704_s21  ;;  %291 = vrot.lane.b32.xlu0 %v247_v16, %s1704_s21  ;;  %v375_v18 = vand.u32 2, %v1811_v29 }
  0xa7   : > { %vm1883_vm3 = vcmp.eq.s32.totalorder %v375_v18, 0 }
  0xa9   : > { %293 = vrot.lane.b32.xlu1 %v248_v20, %s1704_s21  ;;  %295 = vrot.lane.b32.xlu0 %v249_v21, %s1704_s21 }
  0xad   : > { %297 = vrot.lane.b32.xlu1 %v250_v22, %s1704_s21  ;;  %299 = vrot.lane.b32.xlu0 %v251_v23, %s1704_s21 }
  0xb1   : > { %301 = vrot.lane.b32.xlu1 %v252_v24, %s1704_s21 }
 0x103   : > { %v264_v25 = vpop.permute.xlu0 %263 }
 0x107   : > { %v266_v27 = vpop.permute.xlu1 %265  ;;  %v268_v28 = vpop.permute.xlu0 %267 }
 0x10b   : > { %v270_v30 = vpop.permute.xlu1 %269  ;;  %v272_v31 = vpop.permute.xlu0 %271 }
 0x10f   : > { %v274_v33 = vpop.permute.xlu1 %273  ;;  %v276_v34 = vpop.permute.xlu0 %275 }
 0x113   : > { %v278_v36 = vpop.permute.xlu1 %277  ;;  %v288_v37 = vpop.permute.xlu0 %287 }
 0x114   : > { %v311_v38 = vsel %vm1814_vm2, %v264_v25, %v288_v37 }
 0x115   : > { %v1821_v39 = vmax.f32 %v1770_v1, %v311_v38 }
 0x117   : > { %v290_v40 = vpop.permute.xlu1 %289  ;;  %335 = vrot.lane.b32.xlu0 %v1821_v39, %s2806_s19  ;;  %v292_v41 = vpop.permute.xlu0 %291 }
 0x118   : > { %v312_v42 = vsel %vm1814_vm2, %v266_v27, %v290_v40  ;;  %v313_v43 = vsel %vm1814_vm2, %v268_v28, %v292_v41 }
 0x119   : > { %v1830_v44 = vmax.f32 %v1778_v3, %v312_v42  ;;  %v1833_v45 = vmax.f32 %v1772_v2, %v313_v43 }
 0x11b   : > { %337 = vrot.lane.b32.xlu1 %v1830_v44, %s2806_s19  ;;  %v294_v46 = vpop.permute.xlu1 %293  ;;  %339 = vrot.lane.b32.xlu0 %v1833_v45, %s2806_s19  ;;  %v296_v47 = vpop.permute.xlu0 %295 }
 0x11c   : > { %v314_v48 = vsel %vm1814_vm2, %v270_v30, %v294_v46  ;;  %v315_v49 = vsel %vm1814_vm2, %v272_v31, %v296_v47 }
 0x11d   : > { %v1844_v50 = vmax.f32 %v1780_v4, %v314_v48  ;;  %v1847_v51 = vmax.f32 %v1786_v5, %v315_v49 }
 0x11f   : > { %341 = vrot.lane.b32.xlu1 %v1844_v50, %s2806_s19  ;;  %v298_v52 = vpop.permute.xlu1 %297  ;;  %343 = vrot.lane.b32.xlu0 %v1847_v51, %s2806_s19  ;;  %v300_v53 = vpop.permute.xlu0 %299 }
 0x120   : > { %v316_v54 = vsel %vm1814_vm2, %v274_v33, %v298_v52  ;;  %v317_v55 = vsel %vm1814_vm2, %v276_v34, %v300_v53 }
 0x121   : > { %v1858_v56 = vmax.f32 %v1788_v6, %v316_v54  ;;  %v1861_v57 = vmax.f32 %v1794_v7, %v317_v55 }
 0x123   : > { %345 = vrot.lane.b32.xlu1 %v1858_v56, %s2806_s19  ;;  %v302_v58 = vpop.permute.xlu1 %301  ;;  %347 = vrot.lane.b32.xlu0 %v1861_v57, %s2806_s19 }
 0x124   : > { %v318_v59 = vsel %vm1814_vm2, %v278_v36, %v302_v58 }
 0x125   : > { %v1870_v60 = vmax.f32 %v1796_v8, %v318_v59 }
 0x127   : > { %349 = vrot.lane.b32.xlu1 %v1870_v60, %s2806_s19 }
 0x189   : > { %v336_v61 = vpop.permute.xlu0 %335 }
 0x18a   : > { %359 = vst.msk [vmem:[#allocation2 + $0x8] sm:$0xff] %vm236_vm1, %v336_v61 }
 0x18d   : > { %v338_v62 = vpop.permute.xlu1 %337  ;;  %v340_v63 = vpop.permute.xlu0 %339 }
 0x18e   : > { %360 = vst.msk [vmem:[#allocation2 + $0x10] sm:$0xff] %vm236_vm1, %v338_v62  ;;  %361 = vst.msk [vmem:[#allocation2 + $0x28] sm:$0xff] %vm236_vm1, %v340_v63 }
 0x191   : > { %v342_v0 = vpop.permute.xlu1 %341  ;;  %v344_v1 = vpop.permute.xlu0 %343  ;;  %v367_v2 = vld [vmem:[#allocation2 + $0x8] sm:$0xff] }
 0x192   : > { %362 = vst.msk [vmem:[#allocation2 + $0x30] sm:$0xff] %vm236_vm1, %v342_v0  ;;  %363 = vst.msk [vmem:[#allocation2 + $0x48] sm:$0xff] %vm236_vm1, %v344_v1  ;;  %385 = vrot.lane.b32.xlu0 %v367_v2, %s1705_s22 }
 0x195   : > { %v346_v3 = vpop.permute.xlu1 %345  ;;  %v348_v4 = vpop.permute.xlu0 %347  ;;  %v368_v5 = vld [vmem:[#allocation2 + $0x10] sm:$0xff]  ;;  %v369_v6 = vld [vmem:[#allocation2 + $0x28] sm:$0xff] }
 0x196   : > { %364 = vst.msk [vmem:[#allocation2 + $0x50] sm:$0xff] %vm236_vm1, %v346_v3  ;;  %365 = vst.msk [vmem:[#allocation2 + $0x68] sm:$0xff] %vm236_vm1, %v348_v4  ;;  %387 = vrot.lane.b32.xlu1 %v368_v5, %s1705_s22  ;;  %389 = vrot.lane.b32.xlu0 %v369_v6, %s1705_s22 }
 0x199   : > { %v350_v7 = vpop.permute.xlu1 %349  ;;  %v370_v8 = vld [vmem:[#allocation2 + $0x30] sm:$0xff]  ;;  %v371_v9 = vld [vmem:[#allocation2 + $0x48] sm:$0xff] }
 0x19a   : > { %366 = vst.msk [vmem:[#allocation2 + $0x70] sm:$0xff] %vm236_vm1, %v350_v7  ;;  %391 = vrot.lane.b32.xlu1 %v370_v8, %s1705_s22  ;;  %393 = vrot.lane.b32.xlu0 %v371_v9, %s1705_s22 }
 0x19d   : > { %v372_v10 = vld [vmem:[#allocation2 + $0x50] sm:$0xff]  ;;  %v373_v11 = vld [vmem:[#allocation2 + $0x68] sm:$0xff] }
 0x19e   : > { %395 = vrot.lane.b32.xlu1 %v372_v10, %s1705_s22  ;;  %397 = vrot.lane.b32.xlu0 %v373_v11, %s1705_s22 }
 0x1a1   : > { %v374_v12 = vld [vmem:[#allocation2 + $0x70] sm:$0xff] }
 0x1a2   : > { %399 = vrot.lane.b32.xlu1 %v374_v12, %s1705_s22  ;;  %409 = vrot.lane.b32.xlu0 %v367_v2, %s1706_s23 }
 0x1a6   : > { %411 = vrot.lane.b32.xlu1 %v368_v5, %s1706_s23  ;;  %413 = vrot.lane.b32.xlu0 %v369_v6, %s1706_s23  ;;  %v497_v6 = vand.u32 4, %v1811_v29 }
 0x1a8   : > { %vm1952_vm4 = vcmp.eq.s32.totalorder %v497_v6, 0 }
 0x1aa   : > { %415 = vrot.lane.b32.xlu1 %v370_v8, %s1706_s23  ;;  %417 = vrot.lane.b32.xlu0 %v371_v9, %s1706_s23 }
 0x1ae   : > { %419 = vrot.lane.b32.xlu1 %v372_v10, %s1706_s23  ;;  %421 = vrot.lane.b32.xlu0 %v373_v11, %s1706_s23 }
 0x1b2   : > { %423 = vrot.lane.b32.xlu1 %v374_v12, %s1706_s23 }
 0x204   : > { %v386_v13 = vpop.permute.xlu0 %385 }
 0x208   : > { %v388_v14 = vpop.permute.xlu1 %387  ;;  %v390_v15 = vpop.permute.xlu0 %389 }
 0x20c   : > { %v392_v16 = vpop.permute.xlu1 %391  ;;  %v394_v17 = vpop.permute.xlu0 %393 }
 0x210   : > { %v396_v19 = vpop.permute.xlu1 %395  ;;  %v398_v20 = vpop.permute.xlu0 %397 }
 0x214   : > { %v400_v22 = vpop.permute.xlu1 %399  ;;  %v410_v23 = vpop.permute.xlu0 %409 }
 0x215   : > { %v433_v24 = vsel %vm1883_vm3, %v386_v13, %v410_v23 }
 0x216   : > { %v1890_v25 = vmax.f32 %v1821_v39, %v433_v24 }
 0x218   : > { %v412_v27 = vpop.permute.xlu1 %411  ;;  %457 = vrot.lane.b32.xlu0 %v1890_v25, %s2806_s19  ;;  %v414_v28 = vpop.permute.xlu0 %413 }
 0x219   : > { %v434_v30 = vsel %vm1883_vm3, %v388_v14, %v412_v27  ;;  %v435_v31 = vsel %vm1883_vm3, %v390_v15, %v414_v28 }
 0x21a   : > { %v1899_v32 = vmax.f32 %v1830_v44, %v434_v30  ;;  %v1902_v33 = vmax.f32 %v1833_v45, %v435_v31 }
 0x21c   : > { %459 = vrot.lane.b32.xlu1 %v1899_v32, %s2806_s19  ;;  %v416_v34 = vpop.permute.xlu1 %415  ;;  %461 = vrot.lane.b32.xlu0 %v1902_v33, %s2806_s19  ;;  %v418_v35 = vpop.permute.xlu0 %417 }
 0x21d   : > { %v436_v36 = vsel %vm1883_vm3, %v392_v16, %v416_v34  ;;  %v437_v37 = vsel %vm1883_vm3, %v394_v17, %v418_v35 }
 0x21e   : > { %v1913_v38 = vmax.f32 %v1844_v50, %v436_v36  ;;  %v1916_v39 = vmax.f32 %v1847_v51, %v437_v37  ;;  %v2013_v36 = vshrl.u32 %v199_v26, 7 }
 0x220   : > { %463 = vrot.lane.b32.xlu1 %v1913_v38, %s2806_s19  ;;  %v420_v40 = vpop.permute.xlu1 %419  ;;  %465 = vrot.lane.b32.xlu0 %v1916_v39, %s2806_s19  ;;  %v422_v41 = vpop.permute.xlu0 %421 }
 0x221   : > { %v438_v42 = vsel %vm1883_vm3, %v396_v19, %v420_v40  ;;  %v439_v43 = vsel %vm1883_vm3, %v398_v20, %v422_v41 }
 0x222   : > { %v1927_v44 = vmax.f32 %v1858_v56, %v438_v42  ;;  %v1930_v45 = vmax.f32 %v1861_v57, %v439_v43  ;;  %v627_v42 = vand.u32 1, %v2013_v36 }
 0x224   : > { %467 = vrot.lane.b32.xlu1 %v1927_v44, %s2806_s19  ;;  %v424_v46 = vpop.permute.xlu1 %423  ;;  %469 = vrot.lane.b32.xlu0 %v1930_v45, %s2806_s19  ;;  %vm2029_vm6 = vcmp.eq.s32.totalorder %v627_v42, 0 }
 0x225   : > { %v440_v47 = vsel %vm1883_vm3, %v400_v22, %v424_v46 }
 0x226   : > { %v1939_v48 = vmax.f32 %v1870_v60, %v440_v47 }
 0x228   : > { %471 = vrot.lane.b32.xlu1 %v1939_v48, %s2806_s19 }
 0x28a   : > { %v458_v49 = vpop.permute.xlu0 %457 }
 0x28b   : > { %481 = vst.msk [vmem:[#allocation2 + $0x8] sm:$0xff] %vm236_vm1, %v458_v49 }
 0x28e   : > { %v460_v50 = vpop.permute.xlu1 %459  ;;  %v462_v51 = vpop.permute.xlu0 %461 }
 0x28f   : > { %482 = vst.msk [vmem:[#allocation2 + $0x10] sm:$0xff] %vm236_vm1, %v460_v50  ;;  %483 = vst.msk [vmem:[#allocation2 + $0x28] sm:$0xff] %vm236_vm1, %v462_v51 }
 0x292   : > { %v464_v52 = vpop.permute.xlu1 %463  ;;  %v466_v53 = vpop.permute.xlu0 %465  ;;  %v489_v54 = vld [vmem:[#allocation2 + $0x8] sm:$0xff] }
 0x293   : > { %484 = vst.msk [vmem:[#allocation2 + $0x30] sm:$0xff] %vm236_vm1, %v464_v52  ;;  %485 = vst.msk [vmem:[#allocation2 + $0x48] sm:$0xff] %vm236_vm1, %v466_v53  ;;  %507 = vrot.lane.b32.xlu0 %v489_v54, %s1707_s24 }
 0x296   : > { %v468_v55 = vpop.permute.xlu1 %467  ;;  %v470_v56 = vpop.permute.xlu0 %469  ;;  %v490_v57 = vld [vmem:[#allocation2 + $0x10] sm:$0xff]  ;;  %v491_v58 = vld [vmem:[#allocation2 + $0x28] sm:$0xff] }
 0x297   : > { %486 = vst.msk [vmem:[#allocation2 + $0x50] sm:$0xff] %vm236_vm1, %v468_v55  ;;  %487 = vst.msk [vmem:[#allocation2 + $0x68] sm:$0xff] %vm236_vm1, %v470_v56  ;;  %509 = vrot.lane.b32.xlu1 %v490_v57, %s1707_s24  ;;  %511 = vrot.lane.b32.xlu0 %v491_v58, %s1707_s24 }
 0x29a   : > { %v472_v59 = vpop.permute.xlu1 %471  ;;  %v492_v60 = vld [vmem:[#allocation2 + $0x30] sm:$0xff]  ;;  %v493_v61 = vld [vmem:[#allocation2 + $0x48] sm:$0xff] }
 0x29b   : > { %488 = vst.msk [vmem:[#allocation2 + $0x70] sm:$0xff] %vm236_vm1, %v472_v59  ;;  %513 = vrot.lane.b32.xlu1 %v492_v60, %s1707_s24  ;;  %515 = vrot.lane.b32.xlu0 %v493_v61, %s1707_s24 }
 0x29e   : > { %v494_v62 = vld [vmem:[#allocation2 + $0x50] sm:$0xff]  ;;  %v495_v63 = vld [vmem:[#allocation2 + $0x68] sm:$0xff] }
 0x29f   : > { %517 = vrot.lane.b32.xlu1 %v494_v62, %s1707_s24  ;;  %519 = vrot.lane.b32.xlu0 %v495_v63, %s1707_s24 }
 0x2a2   : > { %v496_v0 = vld [vmem:[#allocation2 + $0x70] sm:$0xff] }
 0x2a3   : > { %521 = vrot.lane.b32.xlu1 %v496_v0, %s1707_s24  ;;  %531 = vrot.lane.b32.xlu0 %v489_v54, %s1708_s25  ;;  %s2797_s24 = smov 112  }
 0x2a7   : > { %533 = vrot.lane.b32.xlu1 %v490_v57, %s1708_s25  ;;  %535 = vrot.lane.b32.xlu0 %v491_v58, %s1708_s25 }
 0x2ab   : > { %537 = vrot.lane.b32.xlu1 %v492_v60, %s1708_s25  ;;  %539 = vrot.lane.b32.xlu0 %v493_v61, %s1708_s25 }
 0x2af   : > { %541 = vrot.lane.b32.xlu1 %v494_v62, %s1708_s25  ;;  %543 = vrot.lane.b32.xlu0 %v495_v63, %s1708_s25 }
 0x2b3   : > { %545 = vrot.lane.b32.xlu1 %v496_v0, %s1708_s25 }
 0x305   : > { %v508_v1 = vpop.permute.xlu0 %507 }
 0x309   : > { %v510_v2 = vpop.permute.xlu1 %509  ;;  %v512_v3 = vpop.permute.xlu0 %511 }
 0x30d   : > { %v514_v4 = vpop.permute.xlu1 %513  ;;  %v516_v5 = vpop.permute.xlu0 %515 }
 0x311   : > { %v518_v7 = vpop.permute.xlu1 %517  ;;  %v520_v8 = vpop.permute.xlu0 %519 }
 0x315   : > { %v522_v10 = vpop.permute.xlu1 %521  ;;  %v532_v11 = vpop.permute.xlu0 %531 }
 0x316   : > { %v555_v12 = vsel %vm1952_vm4, %v508_v1, %v532_v11 }
 0x317   : > { %v1959_v13 = vmax.f32 %v1890_v25, %v555_v12 }
 0x319   : > { %v534_v14 = vpop.permute.xlu1 %533  ;;  %579 = vrot.lane.b32.xlu0 %v1959_v13, %s2806_s19  ;;  %v536_v15 = vpop.permute.xlu0 %535 }
 0x31a   : > { %v556_v29 = vsel %vm1952_vm4, %v510_v2, %v534_v14  ;;  %v557_v16 = vsel %vm1952_vm4, %v512_v3, %v536_v15 }
 0x31b   : > { %v1968_v17 = vmax.f32 %v1899_v32, %v556_v29  ;;  %v1971_v18 = vmax.f32 %v1902_v33, %v557_v16 }
 0x31d   : > { %581 = vrot.lane.b32.xlu1 %v1968_v17, %s2806_s19  ;;  %v538_v19 = vpop.permute.xlu1 %537  ;;  %583 = vrot.lane.b32.xlu0 %v1971_v18, %s2806_s19  ;;  %v540_v20 = vpop.permute.xlu0 %539 }
 0x31e   : > { %v558_v21 = vsel %vm1952_vm4, %v514_v4, %v538_v19  ;;  %v559_v22 = vsel %vm1952_vm4, %v516_v5, %v540_v20 }
 0x31f   : > { %v1982_v23 = vmax.f32 %v1913_v38, %v558_v21  ;;  %v1985_v24 = vmax.f32 %v1916_v39, %v559_v22  ;;  %v2017_v38 = vadd.s32 8, %v2013_v36 }
 0x321   : > { %585 = vrot.lane.b32.xlu1 %v1982_v23, %s2806_s19  ;;  %v542_v25 = vpop.permute.xlu1 %541  ;;  %587 = vrot.lane.b32.xlu0 %v1985_v24, %s2806_s19  ;;  %v544_v27 = vpop.permute.xlu0 %543  ;;  %v628_v41 = vand.u32 1, %v2017_v38 }
 0x322   : > { %v560_v28 = vsel %vm1952_vm4, %v518_v7, %v542_v25  ;;  %v561_v30 = vsel %vm1952_vm4, %v520_v8, %v544_v27  ;;  %v736_v27 = vand.u32 2, %v2017_v38 }
 0x323   : > { %v1996_v31 = vmax.f32 %v1927_v44, %v560_v28  ;;  %v1999_v32 = vmax.f32 %v1930_v45, %v561_v30  ;;  %vm2025_vm5 = vcmp.eq.s32.totalorder %v628_v41, 0  ;;  %v735_v28 = vand.u32 2, %v2013_v36 }
 0x324   : > { %vm2106_vm7 = vcmp.eq.s32.totalorder %v736_v27, 0 }
 0x325   : > { %589 = vrot.lane.b32.xlu1 %v1996_v31, %s2806_s19  ;;  %v546_v33 = vpop.permute.xlu1 %545  ;;  %591 = vrot.lane.b32.xlu0 %v1999_v32, %s2806_s19  ;;  %vm2110_vm8 = vcmp.eq.s32.totalorder %v735_v28, 0 }
 0x326   : > { %v562_v34 = vsel %vm1952_vm4, %v522_v10, %v546_v33 }
 0x327   : > { %v2008_v35 = vmax.f32 %v1939_v48, %v562_v34 }
 0x329   : > { %593 = vrot.lane.b32.xlu1 %v2008_v35, %s2806_s19 }
 0x38b   : > { %v580_v37 = vpop.permute.xlu0 %579 }
 0x38c   : > { %603 = vst.msk [vmem:[#allocation2 + $0x8] sm:$0xff] %vm236_vm1, %v580_v37 }
 0x38f   : > { %v582_v39 = vpop.permute.xlu1 %581  ;;  %v584_v40 = vpop.permute.xlu0 %583 }
 0x390   : > { %604 = vst.msk [vmem:[#allocation2 + $0x10] sm:$0xff] %vm236_vm1, %v582_v39  ;;  %605 = vst.msk [vmem:[#allocation2 + $0x28] sm:$0xff] %vm236_vm1, %v584_v40 }
 0x393   : > { %v586_v43 = vpop.permute.xlu1 %585  ;;  %v588_v44 = vpop.permute.xlu0 %587  ;;  %v619_v46 = vld [vmem:[#allocation2 + $0x7] sm:$0xff] }
 0x394   : > { %606 = vst.msk [vmem:[#allocation2 + $0x30] sm:$0xff] %vm236_vm1, %v586_v43  ;;  %607 = vst.msk [vmem:[#allocation2 + $0x48] sm:$0xff] %vm236_vm1, %v588_v44 }
 0x397   : > { %v590_v47 = vpop.permute.xlu1 %589  ;;  %v592_v48 = vpop.permute.xlu0 %591  ;;  %v612_v49 = vld [vmem:[#allocation2 + $0x11] sm:$0xff]  ;;  %v611_v51 = vld [vmem:[#allocation2 + $0x9] sm:$0xff] }
 0x398   : > { %v620_v50 = vld [vmem:[#allocation2 + $0xf] sm:$0xff]  ;;  %608 = vst.msk [vmem:[#allocation2 + $0x50] sm:$0xff] %vm236_vm1, %v590_v47  ;;  %609 = vst.msk [vmem:[#allocation2 + $0x68] sm:$0xff] %vm236_vm1, %v592_v48  ;;  %v631_v53 = vsel %vm2029_vm6, %v611_v51, %v619_v46  ;;  %v621_v54 = vld [vmem:[#allocation2 + $0x27] sm:$0xff] }
 0x399   : > { %v632_v52 = vsel %vm2025_vm5, %v612_v49, %v620_v50  ;;  %647 = vrot.lane.b32.xlu0 %v631_v53, %s2799_s26  ;;  %v2129_v50 = vld [vmem:[%s2829_s1] sm:$0x7] }
 0x39a   : > { %649 = vrot.lane.b32.xlu1 %v632_v52, %s2799_s26  ;;  %1598 = vpush %v2129_v50 }
 0x39b   : > { %v594_v55 = vpop.permute.xlu1 %593  ;;  %v614_v56 = vld [vmem:[#allocation2 + $0x31] sm:$0xff]  ;;  %v613_v58 = vld [vmem:[#allocation2 + $0x29] sm:$0xff] }
 0x39c   : > { %v622_v57 = vld [vmem:[#allocation2 + $0x2f] sm:$0xff]  ;;  %610 = vst.msk [vmem:[#allocation2 + $0x70] sm:$0xff] %vm236_vm1, %v594_v55  ;;  %v633_v60 = vsel %vm2029_vm6, %v613_v58, %v621_v54  ;;  %v623_v61 = vld [vmem:[#allocation2 + $0x47] sm:$0xff] }
 0x39d   : > { %v634_v59 = vsel %vm2025_vm5, %v614_v56, %v622_v57  ;;  %651 = vrot.lane.b32.xlu0 %v633_v60, %s2799_s26  ;;  %v2141_v57 = vld [vmem:[%s2829_s1 + $0x4] sm:$0x7] }
 0x39e   : > { %653 = vrot.lane.b32.xlu1 %v634_v59, %s2799_s26  ;;  %v2149_v59 = vld [vmem:[%s2829_s1 + $0x8] sm:$0x7]  ;;  %1600 = vpush %v2141_v57 }
 0x39f   : > { %v616_v62 = vld [vmem:[#allocation2 + $0x51] sm:$0xff]  ;;  %v615_v0 = vld [vmem:[#allocation2 + $0x49] sm:$0xff]  ;;  %1602 = vpush %v2149_v59 }
 0x3a0   : > { %v624_v63 = vld [vmem:[#allocation2 + $0x4f] sm:$0xff]  ;;  %v635_v2 = vsel %vm2029_vm6, %v615_v0, %v623_v61  ;;  %v625_v3 = vld [vmem:[#allocation2 + $0x67] sm:$0xff] }
 0x3a1   : > { %v636_v1 = vsel %vm2025_vm5, %v616_v62, %v624_v63  ;;  %655 = vrot.lane.b32.xlu0 %v635_v2, %s2799_s26 }
 0x3a2   : > { %657 = vrot.lane.b32.xlu1 %v636_v1, %s2799_s26  ;;  %v2159_v1 = vld [vmem:[%s2829_s1 + $0xc] sm:$0x7] }
 0x3a3   : > { %v618_v4 = vld [vmem:[#allocation2 + $0x71] sm:$0xff]  ;;  %v617_v6 = vld [vmem:[#allocation2 + $0x69] sm:$0xff]  ;;  %1604 = vpush %v2159_v1 }
 0x3a4   : > { %v626_v5 = vld [vmem:[#allocation2 + $0x6f] sm:$0xff]  ;;  %v637_v8 = vsel %vm2029_vm6, %v617_v6, %v625_v3 }
 0x3a5   : > { %v638_v7 = vsel %vm2025_vm5, %v618_v4, %v626_v5  ;;  %659 = vrot.lane.b32.xlu0 %v637_v8, %s2799_s26 }
 0x3a6   : > { %661 = vrot.lane.b32.xlu1 %v638_v7, %s2799_s26 }
 0x3cb   : > { %s2313_s10 = spop %1598 }
 0x3cf   : > { %s2315_s11 = spop %1600 }
 0x3d0   : > { %s2317_s14 = spop %1602 }
 0x3d4   : > { %s2319_s15 = spop %1604 }
 0x40b   : > { %v648_v10 = vpop.permute.xlu0 %647 }
 0x40c   : > { %v650_v9 = vpop.permute.xlu1 %649  ;;  %v2064_v12 = vmax.f32 %v1959_v13, %v648_v10 }
 0x40d   : > { %v2061_v11 = vmax.f32 %v1968_v17, %v650_v9 }
 0x40e   : > { %687 = vrot.lane.b32.xlu0 %v2064_v12, %s2806_s19 }
 0x40f   : > { %689 = vrot.lane.b32.xlu1 %v2061_v11, %s2806_s19  ;;  %v652_v15 = vpop.permute.xlu0 %651 }
 0x410   : > { %v654_v14 = vpop.permute.xlu1 %653  ;;  %v2074_v16 = vmax.f32 %v1971_v18, %v652_v15 }
 0x411   : > { %v2071_v29 = vmax.f32 %v1982_v23, %v654_v14 }
 0x412   : > { %691 = vrot.lane.b32.xlu0 %v2074_v16, %s2806_s19 }
 0x413   : > { %693 = vrot.lane.b32.xlu1 %v2071_v29, %s2806_s19  ;;  %v656_v17 = vpop.permute.xlu0 %655 }
 0x414   : > { %v658_v13 = vpop.permute.xlu1 %657  ;;  %v2084_v20 = vmax.f32 %v1985_v24, %v656_v17 }
 0x415   : > { %v2081_v19 = vmax.f32 %v1996_v31, %v658_v13 }
 0x416   : > { %695 = vrot.lane.b32.xlu0 %v2084_v20, %s2806_s19 }
 0x417   : > { %697 = vrot.lane.b32.xlu1 %v2081_v19, %s2806_s19  ;;  %v660_v21 = vpop.permute.xlu0 %659 }
 0x418   : > { %v662_v18 = vpop.permute.xlu1 %661  ;;  %v2094_v23 = vmax.f32 %v1999_v32, %v660_v21  ;;  %v2236_v21 = vrot.slane %v2149_v59, 1 }
 0x419   : > { %v2091_v22 = vmax.f32 %v2008_v35, %v662_v18  ;;  %v2231_v18 = vrot.slane %v2159_v1, 1 }
 0x41a   : > { %699 = vrot.lane.b32.xlu0 %v2094_v23, %s2806_s19 }
 0x41b   : > { %701 = vrot.lane.b32.xlu1 %v2091_v22, %s2806_s19 }
 0x480   : > { %v688_v25 = vpop.permute.xlu0 %687 }
 0x481   : > { %v690_v24 = vpop.permute.xlu1 %689  ;;  %711 = vst.msk [vmem:[#allocation2 + $0x8] sm:$0xff] %vm236_vm1, %v688_v25  ;;  %v839_v25 = vand.u32 4, %v2013_v36 }
 0x482   : > { %712 = vst.msk [vmem:[#allocation2 + $0x10] sm:$0xff] %vm236_vm1, %v690_v24 }
 0x483   : > { %vm2260_vm9 = vcmp.eq.s32.totalorder %v839_v25, 0 }
 0x484   : > { %v692_v31 = vpop.permute.xlu0 %691 }
 0x485   : > { %v694_v30 = vpop.permute.xlu1 %693  ;;  %713 = vst.msk [vmem:[#allocation2 + $0x28] sm:$0xff] %vm236_vm1, %v692_v31 }
 0x486   : > { %714 = vst.msk [vmem:[#allocation2 + $0x30] sm:$0xff] %vm236_vm1, %v694_v30 }
 0x488   : > { %v696_v35 = vpop.permute.xlu0 %695  ;;  %v727_v42 = vld [vmem:[#allocation2 + $0x6] sm:$0xff] }
 0x489   : > { %v698_v34 = vpop.permute.xlu1 %697  ;;  %v720_v37 = vld [vmem:[#allocation2 + $0x12] sm:$0xff]  ;;  %v719_v40 = vld [vmem:[#allocation2 + $0xa] sm:$0xff]  ;;  %715 = vst.msk [vmem:[#allocation2 + $0x48] sm:$0xff] %vm236_vm1, %v696_v35 }
 0x48a   : > { %v728_v39 = vld [vmem:[#allocation2 + $0xe] sm:$0xff]  ;;  %716 = vst.msk [vmem:[#allocation2 + $0x50] sm:$0xff] %vm236_vm1, %v698_v34  ;;  %v739_v43 = vsel %vm2110_vm8, %v719_v40, %v727_v42  ;;  %v840_v42 = vand.u32 4, %v2017_v38 }
 0x48b   : > { %v740_v41 = vsel %vm2106_vm7, %v720_v37, %v728_v39  ;;  %755 = vrot.lane.b32.xlu0 %v739_v43, %s2799_s26 }
 0x48c   : > { %757 = vrot.lane.b32.xlu1 %v740_v41, %s2799_s26  ;;  %v700_v26 = vpop.permute.xlu0 %699  ;;  %v729_v49 = vld [vmem:[#allocation2 + $0x26] sm:$0xff]  ;;  %vm2278_vm10 = vcmp.eq.s32.totalorder %v840_v42, 0 }
 0x48d   : > { %v702_v44 = vpop.permute.xlu1 %701  ;;  %v722_v45 = vld [vmem:[#allocation2 + $0x32] sm:$0xff]  ;;  %v721_v47 = vld [vmem:[#allocation2 + $0x2a] sm:$0xff]  ;;  %717 = vst.msk [vmem:[#allocation2 + $0x68] sm:$0xff] %vm236_vm1, %v700_v26 }
 0x48e   : > { %v730_v46 = vld [vmem:[#allocation2 + $0x2e] sm:$0xff]  ;;  %718 = vst.msk [vmem:[#allocation2 + $0x70] sm:$0xff] %vm236_vm1, %v702_v44  ;;  %v741_v51 = vsel %vm2110_vm8, %v721_v47, %v729_v49  ;;  %v1712_v49 = vmov 0  }
 0x48f   : > { %v742_v48 = vsel %vm2106_vm7, %v722_v45, %v730_v46  ;;  %759 = vrot.lane.b32.xlu0 %v741_v51, %s2799_s26  ;;  %1692 = vset.pattern.permute.xlu1 %v1712_v49 }
 0x490   : > { %761 = vrot.lane.b32.xlu1 %v742_v48, %s2799_s26  ;;  %v731_v56 = vld [vmem:[#allocation2 + $0x46] sm:$0xff]  ;;  %1691 = vset.pattern.permute.xlu0 %v1712_v49 }
 0x491   : > { %v724_v52 = vld [vmem:[#allocation2 + $0x52] sm:$0xff]  ;;  %v723_v54 = vld [vmem:[#allocation2 + $0x4a] sm:$0xff] }
 0x492   : > { %v732_v53 = vld [vmem:[#allocation2 + $0x4e] sm:$0xff]  ;;  %v743_v58 = vsel %vm2110_vm8, %v723_v54, %v731_v56 }
 0x493   : > { %v744_v55 = vsel %vm2106_vm7, %v724_v52, %v732_v53  ;;  %763 = vrot.lane.b32.xlu0 %v743_v58, %s2799_s26 }
 0x494   : > { %765 = vrot.lane.b32.xlu1 %v744_v55, %s2799_s26  ;;  %v733_v0 = vld [vmem:[#allocation2 + $0x66] sm:$0xff] }
 0x495   : > { %v726_v60 = vld [vmem:[#allocation2 + $0x72] sm:$0xff]  ;;  %v725_v62 = vld [vmem:[#allocation2 + $0x6a] sm:$0xff] }
 0x496   : > { %v734_v61 = vld [vmem:[#allocation2 + $0x6e] sm:$0xff]  ;;  %v745_v2 = vsel %vm2110_vm8, %v725_v62, %v733_v0  ;;  %v1289_v0 = vrot.slane %v2149_v59, 2 }
 0x497   : > { %v746_v63 = vsel %vm2106_vm7, %v726_v60, %v734_v61  ;;  %767 = vrot.lane.b32.xlu0 %v745_v2, %s2799_s26 }
 0x498   : > { %769 = vrot.lane.b32.xlu1 %v746_v63, %s2799_s26 }
 0x4fd   : > { %v756_v5 = vpop.permute.xlu0 %755 }
 0x4fe   : > { %v758_v3 = vpop.permute.xlu1 %757  ;;  %v2170_v6 = vmax.f32 %v2064_v12, %v756_v5 }
 0x4ff   : > { %v2167_v4 = vmax.f32 %v2061_v11, %v758_v3 }
 0x500   : > { %795 = vrot.lane.b32.xlu0 %v2170_v6, %s2806_s19 }
 0x501   : > { %797 = vrot.lane.b32.xlu1 %v2167_v4, %s2806_s19  ;;  %v760_v9 = vpop.permute.xlu0 %759 }
 0x502   : > { %v762_v7 = vpop.permute.xlu1 %761  ;;  %v2180_v10 = vmax.f32 %v2074_v16, %v760_v9 }
 0x503   : > { %v2177_v8 = vmax.f32 %v2071_v29, %v762_v7  ;;  %v1288_v7 = vrot.slane %v2141_v57, 2 }
 0x504   : > { %799 = vrot.lane.b32.xlu0 %v2180_v10, %s2806_s19 }
 0x505   : > { %801 = vrot.lane.b32.xlu1 %v2177_v8, %s2806_s19  ;;  %v764_v14 = vpop.permute.xlu0 %763 }
 0x506   : > { %v766_v11 = vpop.permute.xlu1 %765  ;;  %v2190_v15 = vmax.f32 %v2084_v20, %v764_v14  ;;  %v2226_v20 = vrot.slane %v2129_v50, 1 }
 0x507   : > { %v2187_v12 = vmax.f32 %v2081_v19, %v766_v11  ;;  %v2221_v19 = vrot.slane %v2141_v57, 1 }
 0x508   : > { %803 = vrot.lane.b32.xlu0 %v2190_v15, %s2806_s19 }
 0x509   : > { %805 = vrot.lane.b32.xlu1 %v2187_v12, %s2806_s19  ;;  %v768_v13 = vpop.permute.xlu0 %767 }
 0x50a   : > { %v770_v29 = vpop.permute.xlu1 %769  ;;  %v2200_v17 = vmax.f32 %v2094_v23, %v768_v13 }
 0x50b   : > { %v2197_v16 = vmax.f32 %v2091_v22, %v770_v29  ;;  %v2251_v22 = vrot.slane %v2129_v50, 2 }
 0x50c   : > { %807 = vrot.lane.b32.xlu0 %v2200_v17, %s2806_s19 }
 0x50d   : > { %809 = vrot.lane.b32.xlu1 %v2197_v16, %s2806_s19 }
 0x510   : > { %975 = vrot.lane.b32.xlu0 %v2129_v50, %s1710_s8 }
 0x511   : > { %977 = vrot.lane.b32.xlu1 %v2141_v57, %s1710_s8 }
 0x514   : > { %979 = vrot.lane.b32.xlu0 %v2149_v59, %s1710_s8 }
 0x515   : > { %981 = vrot.lane.b32.xlu1 %v2159_v1, %s1710_s8 }
 0x518   : > { %1043 = vrot.lane.b32.xlu0 %v2129_v50, %s1711_s9 }
 0x519   : > { %1045 = vrot.lane.b32.xlu1 %v2141_v57, %s1711_s9 }
 0x51c   : > { %1047 = vrot.lane.b32.xlu0 %v2149_v59, %s1711_s9  ;;  %v1290_v59 = vrot.slane %v2159_v1, 2 }
 0x51d   : > { %1049 = vrot.lane.b32.xlu1 %v2159_v1, %s1711_s9 }
 0x520   : > { %1147 = vrot.lane.b32.xlu0 %v2226_v20, %s1710_s8 }
 0x521   : > { %1149 = vrot.lane.b32.xlu1 %v2221_v19, %s1710_s8 }
 0x524   : > { %1151 = vrot.lane.b32.xlu0 %v2236_v21, %s1710_s8 }
 0x525   : > { %1153 = vrot.lane.b32.xlu1 %v2231_v18, %s1710_s8 }
 0x528   : > { %1215 = vrot.lane.b32.xlu0 %v2226_v20, %s1711_s9 }
 0x529   : > { %1217 = vrot.lane.b32.xlu1 %v2221_v19, %s1711_s9 }
 0x52c   : > { %1219 = vrot.lane.b32.xlu0 %v2236_v21, %s1711_s9 }
 0x52d   : > { %1221 = vrot.lane.b32.xlu1 %v2231_v18, %s1711_s9 }
 0x530   : > { %1319 = vrot.lane.b32.xlu0 %v2251_v22, %s1710_s8 }
 0x572   : > { %v796_v24 = vpop.permute.xlu0 %795 }
 0x573   : > { %v798_v23 = vpop.permute.xlu1 %797  ;;  %819 = vst.msk [vmem:[#allocation2 + $0x8] sm:$0xff] %vm236_vm1, %v796_v24 }
 0x574   : > { %820 = vst.msk [vmem:[#allocation2 + $0x10] sm:$0xff] %vm236_vm1, %v798_v23 }
 0x576   : > { %v800_v28 = vpop.permute.xlu0 %799 }
 0x577   : > { %v802_v27 = vpop.permute.xlu1 %801  ;;  %821 = vst.msk [vmem:[#allocation2 + $0x28] sm:$0xff] %vm236_vm1, %v800_v28 }
 0x578   : > { %822 = vst.msk [vmem:[#allocation2 + $0x30] sm:$0xff] %vm236_vm1, %v802_v27  ;;  %v2340_v27 = vld [vmem:[#allocation2 + $0x40] sm:$0xff] }
 0x57a   : > { %v804_v32 = vpop.permute.xlu0 %803  ;;  %v835_v34 = vld [vmem:[#allocation2 + $0x4] sm:$0xff] }
 0x57b   : > { %v806_v31 = vpop.permute.xlu1 %805  ;;  %v827_v33 = vld [vmem:[#allocation2 + $0xc] sm:$0xff]  ;;  %823 = vst.msk [vmem:[#allocation2 + $0x48] sm:$0xff] %vm236_vm1, %v804_v32  ;;  %v828_v47 = vld [vmem:[#allocation2 + $0x14] sm:$0xff] }
 0x57c   : > { %824 = vst.msk [vmem:[#allocation2 + $0x50] sm:$0xff] %vm236_vm1, %v806_v31  ;;  %v843_v36 = vsel %vm2260_vm9, %v827_v33, %v835_v34  ;;  %v844_v53 = vsel %vm2278_vm10, %v828_v47, %v827_v33  ;;  %v2349_v31 = vld [vmem:[#allocation2 + $0x60] sm:$0xff] }
 0x57d   : > { %859 = vrot.lane.b32.xlu0 %v843_v36, %s2799_s26 }
 0x57e   : > { %v808_v37 = vpop.permute.xlu0 %807  ;;  %v836_v40 = vld [vmem:[#allocation2 + $0x24] sm:$0xff] }
 0x57f   : > { %v810_v35 = vpop.permute.xlu1 %809  ;;  %v829_v39 = vld [vmem:[#allocation2 + $0x2c] sm:$0xff]  ;;  %825 = vst.msk [vmem:[#allocation2 + $0x68] sm:$0xff] %vm236_vm1, %v808_v37  ;;  %v830_v56 = vld [vmem:[#allocation2 + $0x34] sm:$0xff] }
 0x580   : > { %826 = vst.msk [vmem:[#allocation2 + $0x70] sm:$0xff] %vm236_vm1, %v810_v35  ;;  %v845_v41 = vsel %vm2260_vm9, %v829_v39, %v836_v40  ;;  %v846_v62 = vsel %vm2278_vm10, %v830_v56, %v829_v39 }
 0x581   : > { %863 = vrot.lane.b32.xlu1 %v845_v41, %s2799_s26 }
 0x582   : > { %v976_v44 = vpop.permute.xlu0 %975  ;;  %v837_v45 = vld [vmem:[#allocation2 + $0x44] sm:$0xff] }
 0x583   : > { %v978_v43 = vpop.permute.xlu1 %977  ;;  %v831_v26 = vld [vmem:[#allocation2 + $0x4c] sm:$0xff]  ;;  %1606 = vpush %v976_v44  ;;  %v832_v55 = vld [vmem:[#allocation2 + $0x54] sm:$0xff] }
 0x584   : > { %v847_v46 = vsel %vm2260_vm9, %v831_v26, %v837_v45  ;;  %1608 = vpush %v978_v43  ;;  %v848_v61 = vsel %vm2278_vm10, %v832_v55, %v831_v26 }
 0x585   : > { %867 = vrot.lane.b32.xlu0 %v847_v46, %s2799_s26 }
 0x586   : > { %v838_v51 = vld [vmem:[#allocation2 + $0x64] sm:$0xff]  ;;  %v980_v52 = vpop.permute.xlu0 %979 }
 0x587   : > { %v982_v50 = vpop.permute.xlu1 %981  ;;  %v833_v38 = vld [vmem:[#allocation2 + $0x6c] sm:$0xff]  ;;  %1610 = vpush %v980_v52  ;;  %v834_v63 = vld [vmem:[#allocation2 + $0x74] sm:$0xff]  ;;  %v1590_v52 = vld [vmem:[%s2795_s2] ss:$0 sm:$0xff] }
 0x588   : > { %v849_v54 = vsel %vm2260_vm9, %v833_v38, %v838_v51  ;;  %1612 = vpush %v982_v50  ;;  %v850_v5 = vsel %vm2278_vm10, %v834_v63, %v833_v38 }
 0x589   : > { %861 = vrot.lane.b32.xlu0 %v844_v53, %s2799_s26  ;;  %871 = vrot.lane.b32.xlu1 %v849_v54, %s2799_s26  ;;  %v1593_v53 = vld [vmem:[%s2795_s2 + $0x3] ss:$0 sm:$0xff]  ;;  %v2445_v54 = vld [vmem:[#allocation2 + $0x18] sm:$0xff] }
 0x58a   : > { %v1044_v60 = vpop.permute.xlu0 %1043 }
 0x58b   : > { %v1046_v58 = vpop.permute.xlu1 %1045  ;;  %1614 = vpush %v1044_v60 }
 0x58c   : > { %1616 = vpush %v1046_v58 }
 0x58d   : > { %869 = vrot.lane.b32.xlu0 %v848_v61, %s2799_s26  ;;  %865 = vrot.lane.b32.xlu1 %v846_v62, %s2799_s26 }
 0x58e   : > { %v1048_v3 = vpop.permute.xlu0 %1047 }
 0x58f   : > { %v1050_v2 = vpop.permute.xlu1 %1049  ;;  %1618 = vpush %v1048_v3  ;;  %v945_v3 = vstv %s2313_s10 }
 0x590   : > { %1620 = vpush %v1050_v2 }
 0x591   : > { %873 = vrot.lane.b32.xlu1 %v850_v5, %s2799_s26  ;;  %1323 = vrot.lane.b32.xlu0 %v1289_v0, %s1710_s8  ;;  %1622 = vpush %v2226_v20 }
 0x592   : > { %v1148_v11 = vpop.permute.xlu0 %1147  ;;  %1624 = vpush %v2221_v19 }
 0x593   : > { %v1150_v9 = vpop.permute.xlu1 %1149  ;;  %1626 = vpush %v2236_v21  ;;  %v2325_v21 = vld [vmem:[#allocation2 + $0x20] sm:$0xff] }
 0x594   : > { %1628 = vpush %v2231_v18  ;;  %v2321_v18 = vld [vmem:[#allocation2] sm:$0xff] }
 0x595   : > { %1387 = vrot.lane.b32.xlu0 %v2251_v22, %s1711_s9  ;;  %1321 = vrot.lane.b32.xlu1 %v1288_v7, %s1710_s8  ;;  %1630 = vpush %v1148_v11  ;;  %v959_v5 = vmul.f32 %v945_v3, %v2321_v18 }
 0x596   : > { %v1152_v57 = vpop.permute.xlu0 %1151  ;;  %1632 = vpush %v1150_v9 }
 0x597   : > { %v1154_v14 = vpop.permute.xlu1 %1153  ;;  %1634 = vpush %v1152_v57 }
 0x598   : > { %1636 = vpush %v1154_v14 }
 0x599   : > { %1391 = vrot.lane.b32.xlu0 %v1289_v0, %s1711_s9  ;;  %1325 = vrot.lane.b32.xlu1 %v1290_v59, %s1710_s8 }
 0x59a   : > { %v1216_v13 = vpop.permute.xlu0 %1215 }
 0x59b   : > { %v1218_v29 = vpop.permute.xlu1 %1217  ;;  %1638 = vpush %v1216_v13 }
 0x59c   : > { %1640 = vpush %v1218_v29 }
 0x59d   : > { %1389 = vrot.lane.b32.xlu1 %v1288_v7, %s1711_s9 }
 0x59e   : > { %v1220_v1 = vpop.permute.xlu0 %1219 }
 0x59f   : > { %v1222_v19 = vpop.permute.xlu1 %1221  ;;  %1642 = vpush %v1220_v1 }
 0x5a0   : > { %1644 = vpush %v1222_v19 }
 0x5a1   : > { %1393 = vrot.lane.b32.xlu1 %v1290_v59, %s1711_s9  ;;  %1646 = vpush %v2251_v22 }
 0x5a2   : > { %v1320_v20 = vpop.permute.xlu0 %1319  ;;  %1648 = vpush %v1288_v7  ;;  %v949_v7 = vstv %s2315_s11 }
 0x5a3   : > { %1650 = vpush %v1289_v0  ;;  %v961_v11 = vmul.f32 %v949_v7, %v2325_v21 }
 0x5a4   : > { %1652 = vpush %v1290_v59  ;;  %v953_v59 = vstv %s2317_s14 }
 0x5a5   : > { %1654 = vpush %v1320_v20  ;;  %v963_v29 = vmul.f32 %v953_v59, %v2340_v27  ;;  %v2464_v20 = vld [vmem:[#allocation2 + $0x38] sm:$0xff] }
 0x5b4   : > { %s2323_s16 = spop %1606 }
 0x5b5   : > { %v984_v22 = vstv %s2323_s16  ;;  %s2328_s17 = spop %1608 }
 0x5b6   : > { %v995_v23 = vmul.f32 %v984_v22, %v2321_v18  ;;  %v987_v24 = vstv %s2328_s17 }
 0x5b7   : > { %v997_v25 = vmul.f32 %v987_v24, %v2325_v21 }
 0x5b8   : > { %1011 = vrot.lane.b32.xlu0 %v995_v23, %s2799_s26  ;;  %s2338_s18 = spop %1610 }
 0x5b9   : > { %v990_v28 = vstv %s2338_s18  ;;  %s2343_s20 = spop %1612 }
 0x5ba   : > { %v999_v30 = vmul.f32 %v990_v28, %v2340_v27  ;;  %v993_v32 = vstv %s2343_s20 }
 0x5bb   : > { %v1001_v33 = vmul.f32 %v993_v32, %v2349_v31 }
 0x5bc   : > { %1015 = vrot.lane.b32.xlu0 %v997_v25, %s2799_s26  ;;  %s2352_s21 = spop %1614 }
 0x5bd   : > { %v1052_v34 = vstv %s2352_s21  ;;  %s2359_s22 = spop %1616 }
 0x5be   : > { %2834 = sst [smem:[#allocation5_spill]] %s2359_s22  ;;  %v1063_v36 = vmul.f32 %v1052_v34, %v2321_v18  ;;  %v1055_v35 = vstv %s2359_s22  ;;  %v2468_v18 = vld [vmem:[#allocation2 + $0x58] sm:$0xff] }
 0x5bf   : > { %v1065_v37 = vmul.f32 %v1055_v35, %v2325_v21 }
 0x5c0   : > { %1019 = vrot.lane.b32.xlu0 %v999_v30, %s2799_s26  ;;  %s2366_s23 = spop %1618 }
 0x5c1   : > { %2835 = sst [smem:[#allocation6_spill]] %s2366_s23  ;;  %v1058_v39 = vstv %s2366_s23  ;;  %s2373_s25 = spop %1620 }
 0x5c2   : > { %2836 = sst [smem:[#allocation7_spill]] %s2373_s25  ;;  %v1067_v40 = vmul.f32 %v1058_v39, %v2340_v27  ;;  %v1061_v41 = vstv %s2373_s25  ;;  %s2385_s27 = spop %1622 }
 0x5c3   : > { %v1069_v42 = vmul.f32 %v1061_v41, %v2349_v31  ;;  %s2387_s28 = spop %1624  ;;  %s2843_s25 = smov 112  }
 0x5c4   : > { %1023 = vrot.lane.b32.xlu0 %v1001_v33, %s2799_s26  ;;  %s2389_s29 = spop %1626 }
 0x5c5   : > { %s2391_s30 = spop %1628 }
 0x5c6   : > { %s2394_s4 = spop %1630 }
 0x5c7   : > { %s2396_s5 = spop %1632 }
 0x5c8   : > { %1079 = vrot.lane.b32.xlu0 %v1063_v36, %s2797_s24  ;;  %s2399_s6 = spop %1634  ;;  %v2483_v36 = vld [vmem:[#allocation2 + $0x78] sm:$0xff] }
 0x5c9   : > { %s2402_s7 = spop %1636 }
 0x5cc   : > { %1083 = vrot.lane.b32.xlu0 %v1065_v37, %s2797_s24  ;;  %s2405_s8 = spop %1638 }
 0x5cd   : > { %s2407_s9 = spop %1640 }
 0x5ce   : > { %2837 = sst [smem:[#allocation8_spill]] %s2407_s9 }
 0x5cf   : > { %s2844_s11 = sld [smem:[#allocation8_spill]] }
 0x5d0   : > { %1087 = vrot.lane.b32.xlu0 %v1067_v40, %s2797_s24 }
 0x5d4   : > { %1091 = vrot.lane.b32.xlu0 %v1069_v42, %s2797_s24  ;;  %s2410_s24 = spop %1642 }
 0x5d5   : > { %2838 = sst [smem:[#allocation9_spill]] %s2410_s24  ;;  %s2413_s26 = spop %1644 }
 0x5d6   : > { %2839 = sst [smem:[#allocation10_spill]] %s2413_s26  ;;  %s2417_s0 = spop %1646 }
 0x5d7   : > { %s2421_s1 = spop %1648  ;;  %s2846_s16 = sld [smem:[#allocation9_spill]] }
 0x5d8   : > { %s2425_s12 = spop %1650  ;;  %s2848_s18 = sld [smem:[#allocation10_spill]] }
 0x5d9   : > { %s2429_s3 = spop %1652 }
 0x5da   : > { %2840 = sst [smem:[#allocation11_spill]] %s2429_s3  ;;  %s2437_s24 = spop %1654 }
 0x5db   : > { %v1328_v55 = vstv %s2437_s24  ;;  %s2841_s3 = smov 8   ;;  %s2851_s24 = sld [smem:[#allocation4_spill]] }
 0x5dc   : > { %v1340_v58 = vmul.f32 %v1328_v55, %v2445_v54 }
 0x5ef   : > { %v860_v43 = vpop.permute.xlu0 %859 }
 0x5f0   : > { %v883_v44 = vmax.f32 %v2170_v6, %v860_v43  ;;  %v957_v43 = vstv %s2319_s15  ;;  %s1597_s15 = sshll.u32 %s2851_s24, 6 }
 0x5f2   : > { %899 = vrot.lane.b32.xlu0 %v883_v44, %s2806_s19 }
 0x5f3   : > { %v864_v26 = vpop.permute.xlu1 %863 }
 0x5f4   : > { %v885_v45 = vmax.f32 %v2180_v10, %v864_v26 }
 0x5f6   : > { %903 = vrot.lane.b32.xlu1 %v885_v45, %s2806_s19 }
 0x5f7   : > { %v868_v46 = vpop.permute.xlu0 %867 }
 0x5f8   : > { %v887_v6 = vmax.f32 %v2190_v15, %v868_v46  ;;  %v965_v46 = vmul.f32 %v957_v43, %v2349_v31 }
 0x5fa   : > { %907 = vrot.lane.b32.xlu0 %v887_v6, %s2806_s19 }
 0x5fb   : > { %v872_v47 = vpop.permute.xlu1 %871  ;;  %v862_v48 = vpop.permute.xlu0 %861 }
 0x5fc   : > { %v889_v10 = vmax.f32 %v2200_v17, %v872_v47  ;;  %v884_v49 = vmax.f32 %v2167_v4, %v862_v48  ;;  %v1591_v17 = vld [vmem:[%s2795_s2 + $0x1] ss:$0 sm:$0xff] }
 0x5fe   : > { %911 = vrot.lane.b32.xlu1 %v889_v10, %s2806_s19  ;;  %901 = vrot.lane.b32.xlu0 %v884_v49, %s2806_s19 }
 0x5ff   : > { %v866_v15 = vpop.permute.xlu1 %865  ;;  %v870_v50 = vpop.permute.xlu0 %869 }
 0x600   : > { %v886_v38 = vmax.f32 %v2177_v8, %v866_v15  ;;  %v888_v51 = vmax.f32 %v2187_v12, %v870_v50  ;;  %v1592_v12 = vld [vmem:[%s2795_s2 + $0x2] ss:$0 sm:$0xff] }
 0x602   : > { %905 = vrot.lane.b32.xlu1 %v886_v38, %s2806_s19  ;;  %909 = vrot.lane.b32.xlu0 %v888_v51, %s2806_s19  ;;  %v1120_v51 = vstv %s2385_s27  ;;  %s2850_s27 = sld [smem:[#allocation11_spill]] }
 0x603   : > { %v874_v4 = vpop.permute.xlu1 %873  ;;  %v1324_v8 = vpop.permute.xlu0 %1323 }
 0x604   : > { %v890_v62 = vmax.f32 %v2197_v16, %v874_v4  ;;  %v1156_v4 = vstv %s2394_s4 }
 0x606   : > { %1484 = vperm.xlu1 %1692, %v1591_v17   ;;  %1480 = vperm.xlu0 %1691, %v1590_v52  }
 0x607   : > { %v1322_v56 = vpop.permute.xlu1 %1321  ;;  %v1388_v60 = vpop.permute.xlu0 %1387 }
 0x608   : > { %1656 = vpush %v1322_v56 }
 0x609   : > { %1658 = vpush %v1324_v8 }
 0x60a   : > { %1488 = vperm.xlu1 %1692, %v1592_v12   ;;  %1492 = vperm.xlu0 %1691, %v1593_v53  }
 0x60b   : > { %v1326_v61 = vpop.permute.xlu1 %1325  ;;  %v1392_v0 = vpop.permute.xlu0 %1391 }
 0x60c   : > { %1660 = vpush %v1326_v61 }
 0x60d   : > { %1662 = vpush %v1388_v60  ;;  %v1159_v60 = vstv %s2396_s5 }
 0x60e   : > { %913 = vrot.lane.b32.xlu1 %v890_v62, %s2841_s3  ;;  %1357 = vrot.lane.b32.xlu0 %v1340_v58, %s2842_s13  ;;  %v1123_v58 = vstv %s2387_s28 }
 0x60f   : > { %v1390_v63 = vpop.permute.xlu1 %1389 }
 0x610   : > { %1664 = vpush %v1390_v63 }
 0x611   : > { %1666 = vpush %v1392_v0 }
 0x613   : > { %v1394_v2 = vpop.permute.xlu1 %1393 }
 0x614   : > { %1668 = vpush %v1394_v2 }
 0x62a   : > { %v1012_v16 = vpop.permute.xlu0 %1011 }
 0x62b   : > { %v1035_v9 = vadd.f32 %v1012_v16, %v959_v5  ;;  %v1126_v16 = vstv %s2389_s29 }
 0x62e   : > { %v1016_v14 = vpop.permute.xlu0 %1015 }
 0x62f   : > { %v1037_v57 = vadd.f32 %v1016_v14, %v961_v11 }
 0x632   : > { %v1020_v13 = vpop.permute.xlu0 %1019 }
 0x633   : > { %v1039_v19 = vadd.f32 %v1020_v13, %v963_v29 }
 0x636   : > { %v1024_v1 = vpop.permute.xlu0 %1023 }
 0x637   : > { %v1041_v48 = vadd.f32 %v1024_v1, %v965_v46  ;;  %v1129_v1 = vstv %s2391_s30 }
 0x639   : > { %s2466_s19 = spop %1656 }
 0x63a   : > { %v1331_v23 = vstv %s2466_s19  ;;  %s2471_s26 = spop %1658  ;;  %v1080_v21 = vpop.permute.xlu0 %1079 }
 0x63b   : > { %v1342_v25 = vmul.f32 %v1331_v23, %v2464_v20  ;;  %v1334_v27 = vstv %s2471_s26  ;;  %v1103_v30 = vadd.f32 %v1080_v21, %v1035_v9  ;;  %v1162_v9 = vstv %s2399_s6 }
 0x63c   : > { %v1344_v33 = vmul.f32 %v1334_v27, %v2468_v18  ;;  %v1165_v21 = vstv %s2402_s7 }
 0x63d   : > { %1361 = vrot.lane.b32.xlu0 %v1342_v25, %s2842_s13  ;;  %s2481_s10 = spop %1660 }
 0x63e   : > { %v1337_v37 = vstv %s2481_s10  ;;  %v1084_v40 = vpop.permute.xlu0 %1083  ;;  %s2486_s22 = spop %1662 }
 0x63f   : > { %v1105_v42 = vadd.f32 %v1084_v40, %v1037_v57  ;;  %v1346_v44 = vmul.f32 %v1337_v37, %v2483_v36  ;;  %v1396_v26 = vstv %s2486_s22 }
 0x640   : > { %v1408_v47 = vmul.f32 %v1396_v26, %v2445_v54 }
 0x641   : > { %1365 = vrot.lane.b32.xlu0 %v1344_v33, %s2842_s13  ;;  %s2494_s23 = spop %1664 }
 0x642   : > { %v1088_v45 = vpop.permute.xlu0 %1087  ;;  %v1399_v10 = vstv %s2494_s23  ;;  %s2624_s21 = spop %1666 }
 0x643   : > { %v1107_v6 = vadd.f32 %v1088_v45, %v1039_v19  ;;  %v1410_v50 = vmul.f32 %v1399_v10, %v2464_v20  ;;  %v1224_v45 = vstv %s2405_s8 }
 0x645   : > { %1369 = vrot.lane.b32.xlu0 %v1346_v44, %s2842_s13  ;;  %s2637_s28 = spop %1668 }
 0x646   : > { %v1092_v49 = vpop.permute.xlu0 %1091 }
 0x647   : > { %v2504_v15 = vadd.f32 %v1092_v49, %v1041_v48  ;;  %v1298_v48 = vstv %s2425_s12 }
 0x649   : > { %1425 = vrot.lane.b32.xlu0 %v1408_v47, %s2843_s25  ;;  %v1295_v47 = vstv %s2421_s1 }
 0x64d   : > { %1429 = vrot.lane.b32.xlu0 %v1410_v50, %s2843_s25 }
 0x664   : > { %v900_v31 = vpop.permute.xlu0 %899 }
 0x665   : > { %923 = vst.msk [vmem:[#allocation2 + $0x8] sm:$0xff] %vm236_vm1, %v900_v31 }
 0x668   : > { %v904_v38 = vpop.permute.xlu1 %903 }
 0x669   : > { %925 = vst.msk [vmem:[#allocation2 + $0x28] sm:$0xff] %vm236_vm1, %v904_v38 }
 0x66c   : > { %v908_v17 = vpop.permute.xlu0 %907  ;;  %v936_v52 = vld [vmem:[#allocation2 + $0x8] sm:$0xff] }
 0x66d   : > { %927 = vst.msk [vmem:[#allocation2 + $0x48] sm:$0xff] %vm236_vm1, %v908_v17  ;;  %v1167_v8 = vmul.f32 %v1156_v4, %v936_v52  ;;  %v996_v12 = vmul.f32 %v984_v22, %v936_v52  ;;  %v2520_v53 = vmul.f32 %v945_v3, %v936_v52  ;;  %v1131_v56 = vmul.f32 %v1120_v51, %v936_v52 }
 0x66e   : > { %v1235_v49 = vmul.f32 %v1224_v45, %v936_v52  ;;  %v1064_v50 = vmul.f32 %v1052_v34, %v936_v52  ;;  %v1227_v17 = vstv %s2844_s11 }
 0x66f   : > { %1183 = vrot.lane.b32.xlu0 %v1167_v8, %s2842_s13  ;;  %1013 = vrot.lane.b32.xlu1 %v996_v12, %s2842_s13  ;;  %v2526_v0 = vadd.f32 %v1131_v56, %v1103_v30  ;;  %v1230_v56 = vstv %s2846_s16 }
 0x670   : > { %v912_v61 = vpop.permute.xlu1 %911  ;;  %v902_v62 = vpop.permute.xlu0 %901  ;;  %v938_v63 = vld [vmem:[#allocation2 + $0x28] sm:$0xff] }
 0x671   : > { %929 = vst.msk [vmem:[#allocation2 + $0x68] sm:$0xff] %vm236_vm1, %v912_v61  ;;  %924 = vst.msk [vmem:[#allocation2 + $0x10] sm:$0xff] %vm236_vm1, %v902_v62  ;;  %v1169_v22 = vmul.f32 %v1159_v60, %v938_v63  ;;  %v998_v2 = vmul.f32 %v987_v24, %v938_v63  ;;  %v2536_v3 = vmul.f32 %v949_v7, %v938_v63 }
 0x672   : > { %v1133_v5 = vmul.f32 %v1123_v58, %v938_v63  ;;  %v1066_v12 = vmul.f32 %v1055_v35, %v938_v63 }
 0x673   : > { %1187 = vrot.lane.b32.xlu0 %v1169_v22, %s2842_s13  ;;  %1017 = vrot.lane.b32.xlu1 %v998_v2, %s2842_s13  ;;  %v1233_v22 = vstv %s2848_s18 }
 0x674   : > { %v906_v11 = vpop.permute.xlu1 %905  ;;  %v910_v14 = vpop.permute.xlu0 %909  ;;  %v940_v57 = vld [vmem:[#allocation2 + $0x48] sm:$0xff]  ;;  %v2542_v29 = vadd.f32 %v1133_v5, %v1105_v42  ;;  %v1402_v5 = vstv %s2624_s21 }
 0x675   : > { %926 = vst.msk [vmem:[#allocation2 + $0x30] sm:$0xff] %vm236_vm1, %v906_v11  ;;  %928 = vst.msk [vmem:[#allocation2 + $0x50] sm:$0xff] %vm236_vm1, %v910_v14  ;;  %v1171_v24 = vmul.f32 %v1162_v9, %v940_v57  ;;  %v1000_v7 = vmul.f32 %v990_v28, %v940_v57  ;;  %v2552_v13 = vmul.f32 %v953_v59, %v940_v57  ;;  %v1292_v59 = vstv %s2417_s0  ;;  %s2852_s0 = sld [smem:[#allocation14_spill]] }
 0x676   : > { %v1135_v19 = vmul.f32 %v1126_v16, %v940_v57  ;;  %v1239_v61 = vmul.f32 %v1230_v56, %v940_v57  ;;  %v1068_v62 = vmul.f32 %v1058_v39, %v940_v57  ;;  %v1412_v39 = vmul.f32 %v1402_v5, %v2468_v18 }
 0x677   : > { %1191 = vrot.lane.b32.xlu0 %v1171_v24, %s2842_s13  ;;  %1021 = vrot.lane.b32.xlu1 %v1000_v7, %s2842_s13  ;;  %v1405_v11 = vstv %s2637_s28  ;;  %v1301_v24 = vstv %s2850_s27 }
 0x678   : > { %v2558_v25 = vld [vmem:[#allocation2 + $0x68] sm:$0xff]  ;;  %v2560_v30 = vld [vmem:[#allocation2 + $0x10] sm:$0xff]  ;;  %v2562_v28 = vadd.f32 %v1135_v19, %v1107_v6 }
 0x679   : > { %v1173_v33 = vmul.f32 %v1165_v21, %v2558_v25  ;;  %v1002_v40 = vmul.f32 %v993_v32, %v2558_v25  ;;  %v1137_v42 = vmul.f32 %v1129_v1, %v2558_v25  ;;  %v2575_v44 = vmul.f32 %v1120_v51, %v2560_v30 }
 0x67a   : > { %v2585_v32 = vmul.f32 %v1292_v59, %v2560_v30  ;;  %v1070_v2 = vmul.f32 %v1061_v41, %v2558_v25  ;;  %v1414_v41 = vmul.f32 %v1405_v11, %v2483_v36 }
 0x67b   : > { %1195 = vrot.lane.b32.xlu0 %v1173_v33, %s2842_s13  ;;  %1025 = vrot.lane.b32.xlu1 %v1002_v40, %s2842_s13  ;;  %v2594_v31 = vadd.f32 %v1137_v42, %v2504_v15  ;;  %v1237_v15 = vmul.f32 %v1227_v17, %v938_v63  ;;  %v1241_v63 = vmul.f32 %v1233_v22, %v2558_v25  ;;  %s2750_s4 = scalar_lea.vmem %s2852_s0, %s1597_s15 }
 0x67c   : > { %v2578_v46 = vld [vmem:[#allocation2 + $0x30] sm:$0xff]  ;;  %v1236_v33 = vmul.f32 %v1224_v45, %v2560_v30 }
 0x67d   : > { %v2580_v6 = vld [vmem:[#allocation2 + $0x50] sm:$0xff]  ;;  %v2597_v38 = vmul.f32 %v1123_v58, %v2578_v46  ;;  %v2606_v8 = vmul.f32 %v1295_v47, %v2578_v46  ;;  %v1170_v57 = vmul.f32 %v1159_v60, %v2578_v46  ;;  %v1341_v42 = vmul.f32 %v1331_v23, %v2578_v46 }
 0x67e   : > { %v2600_v51 = vmul.f32 %v1126_v16, %v2580_v6  ;;  %v2611_v34 = vmul.f32 %v1298_v48, %v2580_v6  ;;  %v1168_v16 = vmul.f32 %v1156_v4, %v2560_v30  ;;  %v1172_v19 = vmul.f32 %v1162_v9, %v2580_v6 }
 0x67f   : > { %1251 = vrot.lane.b32.xlu0 %v1235_v49, %s2843_s25  ;;  %1081 = vrot.lane.b32.xlu1 %v1064_v50, %s2843_s25  ;;  %v1240_v40 = vmul.f32 %v1230_v56, %v2580_v6  ;;  %v1343_v49 = vmul.f32 %v1334_v27, %v2580_v6  ;;  %v1409_v23 = vmul.f32 %v1399_v10, %v2578_v46 }
 0x681   : > { %v2613_v52 = vpop.permute.xlu1 %1484  ;;  %v2680_v45 = vpop.permute.xlu0 %1480 }
 0x683   : > { %1255 = vrot.lane.b32.xlu0 %v1237_v15, %s2843_s25  ;;  %1085 = vrot.lane.b32.xlu1 %v1066_v12, %s2843_s25  ;;  %v1411_v12 = vmul.f32 %v1402_v5, %v2580_v6 }
 0x685   : > { %v2620_v58 = vpop.permute.xlu1 %1488  ;;  %v2687_v50 = vpop.permute.xlu0 %1492 }
 0x687   : > { %1259 = vrot.lane.b32.xlu0 %v1239_v61, %s2843_s25  ;;  %1089 = vrot.lane.b32.xlu1 %v1068_v62, %s2843_s25 }
 0x689   : > { %v914_v35 = vpop.permute.xlu1 %913  ;;  %v2695_v15 = vpop.permute.xlu0 %1357 }
 0x68a   : > { %930 = vst.msk [vmem:[#allocation2 + $0x70] sm:$0xff] %vm236_vm1, %v914_v35 }
 0x68b   : > { %1263 = vrot.lane.b32.xlu0 %v1241_v63, %s2843_s25  ;;  %1093 = vrot.lane.b32.xlu1 %v1070_v2, %s2843_s25 }
 0x68f   : > { %1433 = vrot.lane.b32.xlu0 %v1412_v39, %s2843_s25  ;;  %1185 = vrot.lane.b32.xlu1 %v1168_v16, %s2842_s13 }
 0x691   : > { %v1114_v14 = vld [vmem:[#allocation2 + $0x70] sm:$0xff] }
 0x692   : > { %v2653_v7 = vmul.f32 %v1129_v1, %v1114_v14  ;;  %v2657_v4 = vmul.f32 %v1301_v24, %v1114_v14  ;;  %v1174_v60 = vmul.f32 %v1165_v21, %v1114_v14  ;;  %v1238_v1 = vmul.f32 %v1227_v17, %v2578_v46 }
 0x693   : > { %1189 = vrot.lane.b32.xlu1 %v1170_v57, %s2842_s13  ;;  %1437 = vrot.lane.b32.xlu0 %v1414_v41, %s2843_s25  ;;  %v1242_v9 = vmul.f32 %v1233_v22, %v1114_v14  ;;  %v1339_v21 = vmul.f32 %v1328_v55, %v2560_v30  ;;  %v1345_v17 = vmul.f32 %v1337_v37, %v1114_v14 }
 0x694   : > { %v1407_v55 = vmul.f32 %v1396_v26, %v2560_v30  ;;  %v1413_v37 = vmul.f32 %v1405_v11, %v1114_v14 }
 0x697   : > { %1193 = vrot.lane.b32.xlu1 %v1172_v19, %s2842_s13 }
 0x69b   : > { %1197 = vrot.lane.b32.xlu1 %v1174_v60, %s2842_s13 }
 0x69f   : > { %1253 = vrot.lane.b32.xlu1 %v1236_v33, %s2843_s25 }
 0x6a3   : > { %1257 = vrot.lane.b32.xlu1 %v1238_v1, %s2843_s25 }
 0x6a7   : > { %1261 = vrot.lane.b32.xlu1 %v1240_v40, %s2843_s25 }
 0x6ab   : > { %1265 = vrot.lane.b32.xlu1 %v1242_v9, %s2843_s25 }
 0x6af   : > { %1355 = vrot.lane.b32.xlu1 %v1339_v21, %s2842_s13  ;;  %v2702_v27 = vpop.permute.xlu0 %1361 }
 0x6b3   : > { %1359 = vrot.lane.b32.xlu1 %v1341_v42, %s2842_s13  ;;  %v2706_v56 = vpop.permute.xlu0 %1365 }
 0x6b7   : > { %1363 = vrot.lane.b32.xlu1 %v1343_v49, %s2842_s13  ;;  %v2709_v26 = vpop.permute.xlu0 %1369 }
 0x6bb   : > { %1367 = vrot.lane.b32.xlu1 %v1345_v17, %s2842_s13  ;;  %v1426_v30 = vpop.permute.xlu0 %1425 }
 0x6bf   : > { %1423 = vrot.lane.b32.xlu1 %v1407_v55, %s2843_s25  ;;  %v2711_v61 = vpop.permute.xlu0 %1429 }
 0x6c3   : > { %1427 = vrot.lane.b32.xlu1 %v1409_v23, %s2843_s25 }
 0x6c7   : > { %1431 = vrot.lane.b32.xlu1 %v1411_v12, %s2843_s25 }
 0x6cb   : > { %1435 = vrot.lane.b32.xlu1 %v1413_v37, %s2843_s25 }
 0x6e1   : > { %v1014_v62 = vpop.permute.xlu1 %1013  ;;  %v1184_v10 = vpop.permute.xlu0 %1183 }
 0x6e2   : > { %v1036_v5 = vadd.f32 %v1014_v62, %v2520_v53  ;;  %v1207_v39 = vadd.f32 %v1184_v10, %v2526_v0 }
 0x6e5   : > { %v1018_v46 = vpop.permute.xlu1 %1017  ;;  %v1188_v22 = vpop.permute.xlu0 %1187 }
 0x6e6   : > { %v1038_v57 = vadd.f32 %v1018_v46, %v2536_v3  ;;  %v1209_v19 = vadd.f32 %v1188_v22, %v2542_v29 }
 0x6e9   : > { %v1022_v35 = vpop.permute.xlu1 %1021  ;;  %v1192_v63 = vpop.permute.xlu0 %1191 }
 0x6ea   : > { %v1040_v0 = vadd.f32 %v1022_v35, %v2552_v13  ;;  %v1211_v21 = vadd.f32 %v1192_v63, %v2562_v28 }
 0x6ed   : > { %v1026_v2 = vpop.permute.xlu1 %1025  ;;  %v1196_v6 = vpop.permute.xlu0 %1195 }
 0x6ee   : > { %v1213_v23 = vadd.f32 %v1196_v6, %v2594_v31 }
 0x6f1   : > { %v1082_v16 = vpop.permute.xlu1 %1081  ;;  %v1252_v11 = vpop.permute.xlu0 %1251 }
 0x6f2   : > { %v1104_v41 = vadd.f32 %v1082_v16, %v1036_v5  ;;  %v1275_v14 = vadd.f32 %v1252_v11, %v1207_v39 }
 0x6f4   : > { %v1140_v60 = vadd.f32 %v2575_v44, %v1104_v41  ;;  %v2719_v33 = vadd.f32 %v2585_v32, %v1275_v14  ;;  %v966_v44 = vmul.f32 %v957_v43, %v2558_v25 }
 0x6f5   : > { %v1086_v1 = vpop.permute.xlu1 %1085  ;;  %v1256_v40 = vpop.permute.xlu0 %1255 }
 0x6f6   : > { %v1106_v9 = vadd.f32 %v1086_v1, %v1038_v57  ;;  %v1277_v53 = vadd.f32 %v1256_v40, %v1209_v19  ;;  %v1042_v55 = vadd.f32 %v1026_v2, %v966_v44  ;;  %v1310_v19 = vmul.f32 %v1301_v24, %v2483_v36 }
 0x6f8   : > { %v1142_v42 = vadd.f32 %v2597_v38, %v1106_v9  ;;  %v2725_v49 = vadd.f32 %v2606_v8, %v1277_v53 }
 0x6f9   : > { %v1090_v3 = vpop.permute.xlu1 %1089  ;;  %v1260_v29 = vpop.permute.xlu0 %1259 }
 0x6fa   : > { %v1108_v32 = vadd.f32 %v1090_v3, %v1040_v0  ;;  %v1279_v17 = vadd.f32 %v1260_v29, %v1211_v21 }
 0x6fc   : > { %v1144_v13 = vadd.f32 %v2600_v51, %v1108_v32  ;;  %v2733_v28 = vadd.f32 %v2611_v34, %v1279_v17  ;;  %v1304_v34 = vmul.f32 %v1292_v59, %v2445_v54  ;;  %v1308_v59 = vmul.f32 %v1298_v48, %v2468_v18 }
 0x6fd   : > { %v1094_v38 = vpop.permute.xlu1 %1093  ;;  %v1264_v12 = vpop.permute.xlu0 %1263 }
 0x6fe   : > { %v1110_v8 = vadd.f32 %v1094_v38, %v1042_v55  ;;  %v1281_v37 = vadd.f32 %v1264_v12, %v1213_v23 }
 0x700   : > { %v1146_v62 = vadd.f32 %v2653_v7, %v1110_v8  ;;  %v2737_v43 = vadd.f32 %v2657_v4, %v1281_v37  ;;  %v1306_v7 = vmul.f32 %v1295_v47, %v2464_v20 }
 0x701   : > { %v1186_v25 = vpop.permute.xlu1 %1185  ;;  %v1434_v1 = vpop.permute.xlu0 %1433 }
 0x702   : > { %v1208_v22 = vadd.f32 %v1186_v25, %v1140_v60 }
 0x705   : > { %v1190_v10 = vpop.permute.xlu1 %1189  ;;  %v1438_v0 = vpop.permute.xlu0 %1437 }
 0x706   : > { %v1210_v63 = vadd.f32 %v1190_v10, %v1142_v42 }
 0x709   : > { %v1194_v46 = vpop.permute.xlu1 %1193 }
 0x70a   : > { %v1212_v39 = vadd.f32 %v1194_v46, %v1144_v13 }
 0x70d   : > { %v1198_v31 = vpop.permute.xlu1 %1197 }
 0x70e   : > { %v1214_v41 = vadd.f32 %v1198_v31, %v1146_v62 }
 0x711   : > { %v1254_v51 = vpop.permute.xlu1 %1253 }
 0x712   : > { %v1276_v35 = vadd.f32 %v1254_v51, %v1208_v22 }
 0x714   : > { %v1312_v2 = vadd.f32 %v1304_v34, %v1276_v35 }
 0x715   : > { %v1258_v6 = vpop.permute.xlu1 %1257 }
 0x716   : > { %v1380_v4 = vadd.f32 %v2695_v15, %v1312_v2  ;;  %v1278_v5 = vadd.f32 %v1258_v6, %v1210_v63 }
 0x718   : > { %v1448_v16 = vadd.f32 %v1426_v30, %v1380_v4  ;;  %v1314_v11 = vadd.f32 %v1306_v7, %v1278_v5 }
 0x719   : > { %v1262_v54 = vpop.permute.xlu1 %1261 }
 0x71a   : > { %v1496_v20 = vadd.f32 %v2680_v45, %v1448_v16  ;;  %v1382_v47 = vadd.f32 %v2702_v27, %v1314_v11  ;;  %v1280_v15 = vadd.f32 %v1262_v54, %v1212_v39 }
 0x71c   : > { %1505 = vst.msk [vmem:[%s2750_s4 + $0x8] sm:$0xff] %vm1503_vm11, %v1496_v20  ;;  %v1450_v30 = vadd.f32 %v2711_v61, %v1382_v47  ;;  %v1316_v14 = vadd.f32 %v1308_v59, %v1280_v15 }
 0x71d   : > { %v1266_v57 = vpop.permute.xlu1 %1265 }
 0x71e   : > { %v1498_v60 = vadd.f32 %v2613_v52, %v1450_v30  ;;  %v1384_v18 = vadd.f32 %v2706_v56, %v1316_v14  ;;  %v1282_v48 = vadd.f32 %v1266_v57, %v1214_v41 }
 0x720   : > { %1507 = vst.msk [vmem:[%s2750_s4 + $0x18] sm:$0xff] %vm1503_vm11, %v1498_v60  ;;  %v1452_v27 = vadd.f32 %v1434_v1, %v1384_v18  ;;  %v1318_v40 = vadd.f32 %v1310_v19, %v1282_v48 }
 0x721   : > { %v1356_v9 = vpop.permute.xlu1 %1355 }
 0x722   : > { %v1500_v53 = vadd.f32 %v2620_v58, %v1452_v27  ;;  %v1386_v61 = vadd.f32 %v2709_v26, %v1318_v40  ;;  %v1379_v3 = vadd.f32 %v1356_v9, %v2719_v33 }
 0x724   : > { %1509 = vst.msk [vmem:[%s2750_s4 + $0x28] sm:$0xff] %vm1503_vm11, %v1500_v53  ;;  %v1454_v36 = vadd.f32 %v1438_v0, %v1386_v61 }
 0x725   : > { %v1360_v24 = vpop.permute.xlu1 %1359 }
 0x726   : > { %v1502_v56 = vadd.f32 %v2687_v50, %v1454_v36  ;;  %v1381_v32 = vadd.f32 %v1360_v24, %v2725_v49 }
 0x728   : > { %1511 = vst.msk [vmem:[%s2750_s4 + $0x38] sm:$0xff] %vm1503_vm11, %v1502_v56 }
 0x729   : > { %v1364_v21 = vpop.permute.xlu1 %1363 }
 0x72a   : > { %v1383_v23 = vadd.f32 %v1364_v21, %v2733_v28 }
 0x72d   : > { %v1368_v42 = vpop.permute.xlu1 %1367 }
 0x72e   : > { %v1385_v12 = vadd.f32 %v1368_v42, %v2737_v43 }
 0x731   : > { %v1424_v29 = vpop.permute.xlu1 %1423 }
 0x732   : > { %v1447_v44 = vadd.f32 %v1424_v29, %v1379_v3 }
 0x734   : > { %v1495_v26 = vadd.f32 %v2680_v45, %v1447_v44 }
 0x735   : > { %v1428_v17 = vpop.permute.xlu1 %1427 }
 0x736   : > { %1504 = vst.msk [vmem:[%s2750_s4] sm:$0xff] %vm1503_vm11, %v1495_v26  ;;  %v1449_v55 = vadd.f32 %v1428_v17, %v1381_v32 }
 0x738   : > { %v1497_v13 = vadd.f32 %v2613_v52, %v1449_v55 }
 0x739   : > { %v1432_v38 = vpop.permute.xlu1 %1431 }
 0x73a   : > { %1506 = vst.msk [vmem:[%s2750_s4 + $0x10] sm:$0xff] %vm1503_vm11, %v1497_v13  ;;  %v1451_v33 = vadd.f32 %v1432_v38, %v1383_v23 }
 0x73c   : > { %v1499_v8 = vadd.f32 %v2620_v58, %v1451_v33 }
 0x73d   : > { %v1436_v49 = vpop.permute.xlu1 %1435 }
 0x73e   : > { %1508 = vst.msk [vmem:[%s2750_s4 + $0x20] sm:$0xff] %vm1503_vm11, %v1499_v8  ;;  %v1453_v45 = vadd.f32 %v1436_v49, %v1385_v12 }
 0x740   : > { %v1501_v37 = vadd.f32 %v2687_v50, %v1453_v45 }
 0x742   : > { %1510 = vst.msk [vmem:[%s2750_s4 + $0x30] sm:$0xff] %vm1503_vm11, %v1501_v37 }
 0x743 PF: > { %s2853_s1 = sld [smem:[#allocation3_spill]] }
 0x749   : > { %s13_s12 = sadd.s32 1, %s2853_s1  }
 0x74a   : > { %p10_p4 = scmp.ge.s32.totalorder %s13_s12, 4  }
 0x74c   :  { %12 = sbr.rel (!%p10_p4) target bundleno = 4 (0x4), region = 62 }

// kernel: dafm_forward.7
= control target key start
LH: loop header
LB: loop body
LE: loop exit
PB: predicated region body
PF: predicated region fallthrough
CT: control target
= control target key end

     0   :  { %s1502_s12 = smov 0   ;;  %s2306_s0 = inlined_call_operand.vmem [shape: f32[2,16,16,16], index: 0, kind: input, shape index: {}]   ;;  %s2307_s1 = inlined_call_operand.vmem [shape: f32[4,3,3], index: 1, kind: input, shape index: {}]   ;;  %s2308_s2 = inlined_call_operand.vmem [shape: f32[4,1,1], index: 2, kind: input, shape index: {}]   ;;  %s2309_s3 = inlined_call_operand.vmem [shape: f32[2,4,16,16], index: 3, kind: output, shape index: {}]  }
   0x1   :  { %2312 = sst [smem:[#allocation3_spill]] %s2306_s0 }
   0x2 LB: > { %s1347_s13 = sadd.s32 4294967295, %s1470_s12   ;;  %p1351_p0 = scmp.ge.s32.totalorder %s1470_s12, 1  ;;  %s1470_s12 = sphi %s1502_s12, %s13_s12  }
   0x3   : > { %p138_p1 = scmp.lt.s32.totalorder %s1470_s12, 3 }
   0x5   : > { %p139_p2 = pnand %p1351_p0, %p138_p1 }
   0x6   : > { %p1510_p3 = scmp.lt.s32.totalorder (!%p139_p2), %s1347_s13, 1  ;;  %s2314_s0 = sld [smem:[#allocation3_spill]] (!%p139_p2) }
   0x7   : > { %142 = sbr.rel (%p139_p2) target bundleno = 1355 (0x54b), region = 32  ;;  %s1473_s19 = smov (!%p139_p2), 4  }
   0x8   : > { %s1474_s20 = smov (!%p139_p2), 123   ;;  %s1475_s21 = smov (!%p139_p2), 125  }
   0x9   : > { %s1476_s22 = smov (!%p139_p2), 122   ;;  %s1477_s23 = smov (!%p139_p2), 126  }
   0xa   : > { %s2310_s24 = smov (!%p139_p2), 124   ;;  %s1479_s6 = smov (!%p139_p2), 127  }
   0xc   : > { %vm174_vm0 = vcmask 195584   ;;  %v1472_v0 = vmov 0.0   ;;  %s2329_s13 = smov (!%p1510_p3, %s1347_s13), 1  ;;  %vm232_vm1 = vcmask 162848   ;;  %v195_v26 = vlaneseq }
   0xd   : > { %175 = vst.msk [vmem:[#allocation2] sm:$0xff] %vm174_vm0, %v1472_v0  ;;  %176 = vst.msk [vmem:[#allocation2 + $0x8] sm:$0xff] %vm174_vm0, %v1472_v0  ;;  %s1370_s15 = sshll.u32 %s2329_s13, 8  ;;  %vm1277_vm8 = vcmask 130048  }
   0xe   : > { %177 = vst.msk [vmem:[#allocation2 + $0x10] sm:$0xff] %vm174_vm0, %v1472_v0  ;;  %178 = vst.msk [vmem:[#allocation2 + $0x18] sm:$0xff] %vm174_vm0, %v1472_v0  ;;  %s1319_s18 = scalar_lea.vmem %s2314_s0, %s1370_s15  ;;  %v1563_v29 = vand.u32 127, %v195_v26 }
   0xf   : > { %179 = vst.msk [vmem:[#allocation2 + $0x20] sm:$0xff] %vm174_vm0, %v1472_v0  ;;  %180 = vst.msk [vmem:[#allocation2 + $0x28] sm:$0xff] %vm174_vm0, %v1472_v0  ;;  %v1522_v1 = vld [vmem:[%s1319_s18 + $0x80] sm:$0xff]  ;;  %v1524_v2 = vld [vmem:[%s1319_s18 + $0x90] sm:$0xff] }
  0x10   : > { %181 = vst.msk [vmem:[#allocation2 + $0x30] sm:$0xff] %vm174_vm0, %v1472_v0  ;;  %182 = vst.msk [vmem:[#allocation2 + $0x38] sm:$0xff] %vm174_vm0, %v1472_v0  ;;  %208 = vrot.lane.b32.xlu0 %v1522_v1, %s1473_s19  ;;  %212 = vrot.lane.b32.xlu1 %v1524_v2, %s1473_s19  ;;  %v1530_v3 = vld [vmem:[%s1319_s18 + $0x88] sm:$0xff]  ;;  %v1532_v4 = vld [vmem:[%s1319_s18 + $0x98] sm:$0xff]  ;;  %v249_v32 = vand.u32 1, %v1563_v29 }
  0x11   : > { %183 = vst.msk [vmem:[#allocation2 + $0x40] sm:$0xff] %vm174_vm0, %v1472_v0  ;;  %184 = vst.msk [vmem:[#allocation2 + $0x48] sm:$0xff] %vm174_vm0, %v1472_v0  ;;  %v1538_v5 = vld [vmem:[%s1319_s18 + $0xa0] sm:$0xff]  ;;  %v1540_v6 = vld [vmem:[%s1319_s18 + $0xa8] sm:$0xff] }
  0x12   : > { %185 = vst.msk [vmem:[#allocation2 + $0x50] sm:$0xff] %vm174_vm0, %v1472_v0  ;;  %186 = vst.msk [vmem:[#allocation2 + $0x58] sm:$0xff] %vm174_vm0, %v1472_v0  ;;  %v1546_v7 = vld [vmem:[%s1319_s18 + $0xb0] sm:$0xff]  ;;  %v1548_v8 = vld [vmem:[%s1319_s18 + $0xb8] sm:$0xff]  ;;  %vm1566_vm2 = vcmp.eq.s32.totalorder %v249_v32, 0 }
  0x14   : > { %210 = vrot.lane.b32.xlu0 %v1530_v3, %s1473_s19  ;;  %214 = vrot.lane.b32.xlu1 %v1532_v4, %s1473_s19 }
  0x18   : > { %216 = vrot.lane.b32.xlu0 %v1538_v5, %s1473_s19  ;;  %218 = vrot.lane.b32.xlu1 %v1540_v6, %s1473_s19 }
  0x1c   : > { %220 = vrot.lane.b32.xlu0 %v1546_v7, %s1473_s19  ;;  %222 = vrot.lane.b32.xlu1 %v1548_v8, %s1473_s19 }
  0x82   : > { %v209_v9 = vpop.permute.xlu0 %208  ;;  %v213_v10 = vpop.permute.xlu1 %212 }
  0x83   : > { %233 = vst.msk [vmem:[#allocation2 + $0x4] sm:$0xff] %vm232_vm1, %v209_v9  ;;  %235 = vst.msk [vmem:[#allocation2 + $0x1c] sm:$0xff] %vm232_vm1, %v213_v10 }
  0x86   : > { %v211_v11 = vpop.permute.xlu0 %210  ;;  %v215_v12 = vpop.permute.xlu1 %214 }
  0x87   : > { %234 = vst.msk [vmem:[#allocation2 + $0xc] sm:$0xff] %vm232_vm1, %v211_v11  ;;  %236 = vst.msk [vmem:[#allocation2 + $0x24] sm:$0xff] %vm232_vm1, %v215_v12 }
  0x8a   : > { %v217_v13 = vpop.permute.xlu0 %216  ;;  %v241_v14 = vld [vmem:[#allocation2 + $0x4] sm:$0xff]  ;;  %v219_v15 = vpop.permute.xlu1 %218  ;;  %v243_v16 = vld [vmem:[#allocation2 + $0x1c] sm:$0xff] }
  0x8b   : > { %237 = vst.msk [vmem:[#allocation2 + $0x34] sm:$0xff] %vm232_vm1, %v217_v13  ;;  %259 = vrot.lane.b32.xlu0 %v241_v14, %s1474_s20  ;;  %238 = vst.msk [vmem:[#allocation2 + $0x3c] sm:$0xff] %vm232_vm1, %v219_v15 }
  0x8e   : > { %v221_v17 = vpop.permute.xlu0 %220  ;;  %v242_v18 = vld [vmem:[#allocation2 + $0xc] sm:$0xff]  ;;  %v223_v19 = vpop.permute.xlu1 %222  ;;  %v244_v20 = vld [vmem:[#allocation2 + $0x24] sm:$0xff] }
  0x8f   : > { %239 = vst.msk [vmem:[#allocation2 + $0x4c] sm:$0xff] %vm232_vm1, %v221_v17  ;;  %263 = vrot.lane.b32.xlu0 %v243_v16, %s1474_s20  ;;  %261 = vrot.lane.b32.xlu1 %v242_v18, %s1474_s20  ;;  %240 = vst.msk [vmem:[#allocation2 + $0x54] sm:$0xff] %vm232_vm1, %v223_v19 }
  0x92   : > { %v245_v21 = vld [vmem:[#allocation2 + $0x34] sm:$0xff]  ;;  %v246_v22 = vld [vmem:[#allocation2 + $0x3c] sm:$0xff] }
  0x93   : > { %265 = vrot.lane.b32.xlu1 %v244_v20, %s1474_s20  ;;  %267 = vrot.lane.b32.xlu0 %v245_v21, %s1474_s20 }
  0x96   : > { %v247_v23 = vld [vmem:[#allocation2 + $0x4c] sm:$0xff]  ;;  %v248_v24 = vld [vmem:[#allocation2 + $0x54] sm:$0xff] }
  0x97   : > { %269 = vrot.lane.b32.xlu1 %v246_v22, %s1474_s20  ;;  %271 = vrot.lane.b32.xlu0 %v247_v23, %s1474_s20 }
  0x9b   : > { %273 = vrot.lane.b32.xlu1 %v248_v24, %s1474_s20  ;;  %283 = vrot.lane.b32.xlu0 %v241_v14, %s1475_s21 }
  0x9f   : > { %285 = vrot.lane.b32.xlu1 %v242_v18, %s1475_s21  ;;  %287 = vrot.lane.b32.xlu0 %v243_v16, %s1475_s21  ;;  %v371_v18 = vand.u32 2, %v1563_v29 }
  0xa1   : > { %vm1643_vm3 = vcmp.eq.s32.totalorder %v371_v18, 0 }
  0xa3   : > { %289 = vrot.lane.b32.xlu1 %v244_v20, %s1475_s21  ;;  %291 = vrot.lane.b32.xlu0 %v245_v21, %s1475_s21 }
  0xa7   : > { %293 = vrot.lane.b32.xlu1 %v246_v22, %s1475_s21  ;;  %295 = vrot.lane.b32.xlu0 %v247_v23, %s1475_s21 }
  0xab   : > { %297 = vrot.lane.b32.xlu1 %v248_v24, %s1475_s21 }
  0xfd   : > { %v260_v25 = vpop.permute.xlu0 %259 }
 0x101   : > { %v262_v27 = vpop.permute.xlu1 %261  ;;  %v264_v28 = vpop.permute.xlu0 %263 }
 0x105   : > { %v266_v30 = vpop.permute.xlu1 %265  ;;  %v268_v31 = vpop.permute.xlu0 %267 }
 0x109   : > { %v270_v33 = vpop.permute.xlu1 %269  ;;  %v272_v34 = vpop.permute.xlu0 %271 }
 0x10d   : > { %v274_v36 = vpop.permute.xlu1 %273  ;;  %v284_v37 = vpop.permute.xlu0 %283 }
 0x10e   : > { %v307_v38 = vsel %vm1566_vm2, %v260_v25, %v284_v37 }
 0x10f   : > { %v1573_v39 = vmax.f32 %v1522_v1, %v307_v38 }
 0x111   : > { %v286_v40 = vpop.permute.xlu1 %285  ;;  %331 = vrot.lane.b32.xlu0 %v1573_v39, %s1473_s19  ;;  %v288_v41 = vpop.permute.xlu0 %287 }
 0x112   : > { %v308_v42 = vsel %vm1566_vm2, %v262_v27, %v286_v40  ;;  %v309_v43 = vsel %vm1566_vm2, %v264_v28, %v288_v41 }
 0x113   : > { %v1582_v44 = vmax.f32 %v1530_v3, %v308_v42  ;;  %v1585_v45 = vmax.f32 %v1524_v2, %v309_v43 }
 0x115   : > { %333 = vrot.lane.b32.xlu1 %v1582_v44, %s1473_s19  ;;  %v290_v46 = vpop.permute.xlu1 %289  ;;  %335 = vrot.lane.b32.xlu0 %v1585_v45, %s1473_s19  ;;  %v292_v47 = vpop.permute.xlu0 %291 }
 0x116   : > { %v310_v48 = vsel %vm1566_vm2, %v266_v30, %v290_v46  ;;  %v311_v49 = vsel %vm1566_vm2, %v268_v31, %v292_v47 }
 0x117   : > { %v1596_v50 = vmax.f32 %v1532_v4, %v310_v48  ;;  %v1599_v51 = vmax.f32 %v1538_v5, %v311_v49  ;;  %v1704_v48 = vshrl.u32 %v195_v26, 7 }
 0x119   : > { %337 = vrot.lane.b32.xlu1 %v1596_v50, %s1473_s19  ;;  %v294_v52 = vpop.permute.xlu1 %293  ;;  %339 = vrot.lane.b32.xlu0 %v1599_v51, %s1473_s19  ;;  %v296_v53 = vpop.permute.xlu0 %295 }
 0x11a   : > { %v312_v54 = vsel %vm1566_vm2, %v270_v33, %v294_v52  ;;  %v313_v55 = vsel %vm1566_vm2, %v272_v34, %v296_v53 }
 0x11b   : > { %v1610_v56 = vmax.f32 %v1540_v6, %v312_v54  ;;  %v1613_v57 = vmax.f32 %v1546_v7, %v313_v55  ;;  %v501_v54 = vand.u32 1, %v1704_v48 }
 0x11d   : > { %341 = vrot.lane.b32.xlu1 %v1610_v56, %s1473_s19  ;;  %v298_v58 = vpop.permute.xlu1 %297  ;;  %343 = vrot.lane.b32.xlu0 %v1613_v57, %s1473_s19  ;;  %vm1720_vm5 = vcmp.eq.s32.totalorder %v501_v54, 0 }
 0x11e   : > { %v314_v59 = vsel %vm1566_vm2, %v274_v36, %v298_v58 }
 0x11f   : > { %v1622_v60 = vmax.f32 %v1548_v8, %v314_v59 }
 0x121   : > { %345 = vrot.lane.b32.xlu1 %v1622_v60, %s1473_s19 }
 0x183   : > { %v332_v61 = vpop.permute.xlu0 %331 }
 0x184   : > { %355 = vst.msk [vmem:[#allocation2 + $0x4] sm:$0xff] %vm232_vm1, %v332_v61 }
 0x187   : > { %v334_v62 = vpop.permute.xlu1 %333  ;;  %v336_v63 = vpop.permute.xlu0 %335 }
 0x188   : > { %356 = vst.msk [vmem:[#allocation2 + $0xc] sm:$0xff] %vm232_vm1, %v334_v62  ;;  %357 = vst.msk [vmem:[#allocation2 + $0x1c] sm:$0xff] %vm232_vm1, %v336_v63 }
 0x18b   : > { %v338_v0 = vpop.permute.xlu1 %337  ;;  %v340_v1 = vpop.permute.xlu0 %339  ;;  %v363_v2 = vld [vmem:[#allocation2 + $0x4] sm:$0xff] }
 0x18c   : > { %358 = vst.msk [vmem:[#allocation2 + $0x24] sm:$0xff] %vm232_vm1, %v338_v0  ;;  %359 = vst.msk [vmem:[#allocation2 + $0x34] sm:$0xff] %vm232_vm1, %v340_v1  ;;  %381 = vrot.lane.b32.xlu0 %v363_v2, %s1476_s22 }
 0x18f   : > { %v342_v3 = vpop.permute.xlu1 %341  ;;  %v344_v4 = vpop.permute.xlu0 %343  ;;  %v364_v5 = vld [vmem:[#allocation2 + $0xc] sm:$0xff]  ;;  %v365_v6 = vld [vmem:[#allocation2 + $0x1c] sm:$0xff] }
 0x190   : > { %360 = vst.msk [vmem:[#allocation2 + $0x3c] sm:$0xff] %vm232_vm1, %v342_v3  ;;  %361 = vst.msk [vmem:[#allocation2 + $0x4c] sm:$0xff] %vm232_vm1, %v344_v4  ;;  %383 = vrot.lane.b32.xlu1 %v364_v5, %s1476_s22  ;;  %385 = vrot.lane.b32.xlu0 %v365_v6, %s1476_s22  ;;  %v1735_v3 = vld [vmem:[%s2307_s1] sm:$0x7] }
 0x191   : > { %1372 = vpush %v1735_v3 }
 0x193   : > { %v346_v7 = vpop.permute.xlu1 %345  ;;  %v366_v8 = vld [vmem:[#allocation2 + $0x24] sm:$0xff]  ;;  %v367_v9 = vld [vmem:[#allocation2 + $0x34] sm:$0xff] }
 0x194   : > { %362 = vst.msk [vmem:[#allocation2 + $0x54] sm:$0xff] %vm232_vm1, %v346_v7  ;;  %387 = vrot.lane.b32.xlu1 %v366_v8, %s1476_s22  ;;  %389 = vrot.lane.b32.xlu0 %v367_v9, %s1476_s22 }
 0x197   : > { %v368_v10 = vld [vmem:[#allocation2 + $0x3c] sm:$0xff]  ;;  %v369_v11 = vld [vmem:[#allocation2 + $0x4c] sm:$0xff] }
 0x198   : > { %391 = vrot.lane.b32.xlu1 %v368_v10, %s1476_s22  ;;  %393 = vrot.lane.b32.xlu0 %v369_v11, %s1476_s22 }
 0x19b   : > { %v370_v12 = vld [vmem:[#allocation2 + $0x54] sm:$0xff] }
 0x19c   : > { %395 = vrot.lane.b32.xlu1 %v370_v12, %s1476_s22  ;;  %405 = vrot.lane.b32.xlu0 %v363_v2, %s1477_s23 }
 0x1a0   : > { %407 = vrot.lane.b32.xlu1 %v364_v5, %s1477_s23  ;;  %409 = vrot.lane.b32.xlu0 %v365_v6, %s1477_s23 }
 0x1a4   : > { %411 = vrot.lane.b32.xlu1 %v366_v8, %s1477_s23  ;;  %413 = vrot.lane.b32.xlu0 %v367_v9, %s1477_s23 }
 0x1a8   : > { %415 = vrot.lane.b32.xlu1 %v368_v10, %s1477_s23  ;;  %417 = vrot.lane.b32.xlu0 %v369_v11, %s1477_s23  ;;  %v1748_v11 = vld [vmem:[%s2307_s1 + $0x4] sm:$0x7] }
 0x1a9   : > { %1374 = vpush %v1748_v11 }
 0x1ac   : > { %419 = vrot.lane.b32.xlu1 %v370_v12, %s1477_s23  ;;  %v1753_v12 = vld [vmem:[%s2307_s1 + $0x8] sm:$0x7] }
 0x1ad   : > { %1376 = vpush %v1753_v12 }
 0x1c2   : > { %s1960_s17 = spop %1372 }
 0x1da   : > { %s1962_s18 = spop %1374 }
 0x1fe   : > { %v382_v13 = vpop.permute.xlu0 %381 }
 0x202   : > { %v384_v14 = vpop.permute.xlu1 %383  ;;  %v386_v15 = vpop.permute.xlu0 %385 }
 0x206   : > { %v388_v16 = vpop.permute.xlu1 %387  ;;  %v390_v17 = vpop.permute.xlu0 %389 }
 0x20a   : > { %v392_v19 = vpop.permute.xlu1 %391  ;;  %v394_v20 = vpop.permute.xlu0 %393 }
 0x20e   : > { %v396_v22 = vpop.permute.xlu1 %395  ;;  %v406_v23 = vpop.permute.xlu0 %405 }
 0x20f   : > { %v429_v24 = vsel %vm1643_vm3, %v382_v13, %v406_v23 }
 0x210   : > { %v1650_v25 = vmax.f32 %v1573_v39, %v429_v24 }
 0x212   : > { %v408_v27 = vpop.permute.xlu1 %407  ;;  %453 = vrot.lane.b32.xlu0 %v1650_v25, %s1473_s19  ;;  %v410_v28 = vpop.permute.xlu0 %409 }
 0x213   : > { %v430_v29 = vsel %vm1643_vm3, %v384_v14, %v408_v27  ;;  %v431_v30 = vsel %vm1643_vm3, %v386_v15, %v410_v28 }
 0x214   : > { %v1659_v31 = vmax.f32 %v1582_v44, %v430_v29  ;;  %v1662_v32 = vmax.f32 %v1585_v45, %v431_v30 }
 0x216   : > { %455 = vrot.lane.b32.xlu1 %v1659_v31, %s1473_s19  ;;  %v412_v33 = vpop.permute.xlu1 %411  ;;  %457 = vrot.lane.b32.xlu0 %v1662_v32, %s1473_s19  ;;  %v414_v34 = vpop.permute.xlu0 %413 }
 0x217   : > { %v432_v35 = vsel %vm1643_vm3, %v388_v16, %v412_v33  ;;  %v433_v36 = vsel %vm1643_vm3, %v390_v17, %v414_v34 }
 0x218   : > { %v1673_v37 = vmax.f32 %v1596_v50, %v432_v35  ;;  %v1676_v38 = vmax.f32 %v1599_v51, %v433_v36  ;;  %v1708_v50 = vadd.s32 8, %v1704_v48 }
 0x21a   : > { %459 = vrot.lane.b32.xlu1 %v1673_v37, %s1473_s19  ;;  %v416_v39 = vpop.permute.xlu1 %415  ;;  %461 = vrot.lane.b32.xlu0 %v1676_v38, %s1473_s19  ;;  %v418_v40 = vpop.permute.xlu0 %417  ;;  %v502_v53 = vand.u32 1, %v1708_v50 }
 0x21b   : > { %v434_v41 = vsel %vm1643_vm3, %v392_v19, %v416_v39  ;;  %v435_v42 = vsel %vm1643_vm3, %v394_v20, %v418_v40  ;;  %v1766_v19 = vld [vmem:[%s2307_s1 + $0xc] sm:$0x7] }
 0x21c   : > { %v1687_v43 = vmax.f32 %v1610_v56, %v434_v41  ;;  %v1690_v44 = vmax.f32 %v1613_v57, %v435_v42  ;;  %vm1716_vm4 = vcmp.eq.s32.totalorder %v502_v53, 0  ;;  %1378 = vpush %v1766_v19 }
 0x21e   : > { %463 = vrot.lane.b32.xlu1 %v1687_v43, %s1473_s19  ;;  %v420_v45 = vpop.permute.xlu1 %419  ;;  %465 = vrot.lane.b32.xlu0 %v1690_v44, %s1473_s19 }
 0x21f   : > { %v436_v46 = vsel %vm1643_vm3, %v396_v22, %v420_v45  ;;  %v1845_v45 = vrot.slane %v1766_v19, 1 }
 0x220   : > { %v1699_v47 = vmax.f32 %v1622_v60, %v436_v46  ;;  %v1480_v46 = vmov 0  }
 0x221   : > { %1463 = vset.pattern.permute.xlu1 %v1480_v46  ;;  %1462 = vset.pattern.permute.xlu0 %v1480_v46 }
 0x222   : > { %467 = vrot.lane.b32.xlu1 %v1699_v47, %s1473_s19 }
 0x284   : > { %v454_v49 = vpop.permute.xlu0 %453 }
 0x285   : > { %477 = vst.msk [vmem:[#allocation2 + $0x4] sm:$0xff] %vm232_vm1, %v454_v49 }
 0x288   : > { %v456_v51 = vpop.permute.xlu1 %455  ;;  %v458_v52 = vpop.permute.xlu0 %457 }
 0x289   : > { %478 = vst.msk [vmem:[#allocation2 + $0xc] sm:$0xff] %vm232_vm1, %v456_v51  ;;  %479 = vst.msk [vmem:[#allocation2 + $0x1c] sm:$0xff] %vm232_vm1, %v458_v52  ;;  %v610_v51 = vand.u32 2, %v1708_v50  ;;  %v609_v52 = vand.u32 2, %v1704_v48 }
 0x28b   : > { %vm1859_vm6 = vcmp.eq.s32.totalorder %v610_v51, 0  ;;  %vm1863_vm7 = vcmp.eq.s32.totalorder %v609_v52, 0 }
 0x28c   : > { %v460_v55 = vpop.permute.xlu1 %459  ;;  %v462_v56 = vpop.permute.xlu0 %461  ;;  %v493_v58 = vld [vmem:[#allocation2 + $0x3] sm:$0xff] }
 0x28d   : > { %480 = vst.msk [vmem:[#allocation2 + $0x24] sm:$0xff] %vm232_vm1, %v460_v55  ;;  %481 = vst.msk [vmem:[#allocation2 + $0x34] sm:$0xff] %vm232_vm1, %v462_v56 }
 0x290   : > { %v464_v59 = vpop.permute.xlu1 %463  ;;  %v466_v60 = vpop.permute.xlu0 %465  ;;  %v486_v61 = vld [vmem:[#allocation2 + $0xd] sm:$0xff]  ;;  %v485_v63 = vld [vmem:[#allocation2 + $0x5] sm:$0xff]  ;;  %v495_v2 = vld [vmem:[#allocation2 + $0x1b] sm:$0xff] }
 0x291   : > { %v494_v62 = vld [vmem:[#allocation2 + $0xb] sm:$0xff]  ;;  %482 = vst.msk [vmem:[#allocation2 + $0x3c] sm:$0xff] %vm232_vm1, %v464_v59  ;;  %483 = vst.msk [vmem:[#allocation2 + $0x4c] sm:$0xff] %vm232_vm1, %v466_v60  ;;  %v505_v1 = vsel %vm1720_vm5, %v485_v63, %v493_v58 }
 0x292   : > { %v506_v0 = vsel %vm1716_vm4, %v486_v61, %v494_v62  ;;  %521 = vrot.lane.b32.xlu0 %v505_v1, %s2310_s24 }
 0x293   : > { %523 = vrot.lane.b32.xlu1 %v506_v0, %s2310_s24 }
 0x294   : > { %v468_v4 = vpop.permute.xlu1 %467  ;;  %v488_v5 = vld [vmem:[#allocation2 + $0x25] sm:$0xff]  ;;  %v487_v7 = vld [vmem:[#allocation2 + $0x1d] sm:$0xff]  ;;  %v497_v10 = vld [vmem:[#allocation2 + $0x33] sm:$0xff] }
 0x295   : > { %v496_v6 = vld [vmem:[#allocation2 + $0x23] sm:$0xff]  ;;  %484 = vst.msk [vmem:[#allocation2 + $0x54] sm:$0xff] %vm232_vm1, %v468_v4  ;;  %v507_v9 = vsel %vm1720_vm5, %v487_v7, %v495_v2 }
 0x296   : > { %v508_v8 = vsel %vm1716_vm4, %v488_v5, %v496_v6  ;;  %525 = vrot.lane.b32.xlu0 %v507_v9, %s2310_s24 }
 0x297   : > { %527 = vrot.lane.b32.xlu1 %v508_v8, %s2310_s24 }
 0x298   : > { %v490_v13 = vld [vmem:[#allocation2 + $0x3d] sm:$0xff]  ;;  %v489_v15 = vld [vmem:[#allocation2 + $0x35] sm:$0xff]  ;;  %v499_v18 = vld [vmem:[#allocation2 + $0x4b] sm:$0xff] }
 0x299   : > { %v498_v14 = vld [vmem:[#allocation2 + $0x3b] sm:$0xff]  ;;  %v509_v17 = vsel %vm1720_vm5, %v489_v15, %v497_v10 }
 0x29a   : > { %v510_v16 = vsel %vm1716_vm4, %v490_v13, %v498_v14  ;;  %529 = vrot.lane.b32.xlu0 %v509_v17, %s2310_s24 }
 0x29b   : > { %531 = vrot.lane.b32.xlu1 %v510_v16, %s2310_s24 }
 0x29c   : > { %v492_v20 = vld [vmem:[#allocation2 + $0x55] sm:$0xff]  ;;  %v491_v22 = vld [vmem:[#allocation2 + $0x4d] sm:$0xff] }
 0x29d   : > { %v500_v21 = vld [vmem:[#allocation2 + $0x53] sm:$0xff]  ;;  %v511_v24 = vsel %vm1720_vm5, %v491_v22, %v499_v18 }
 0x29e   : > { %v512_v23 = vsel %vm1716_vm4, %v492_v20, %v500_v21  ;;  %533 = vrot.lane.b32.xlu0 %v511_v24, %s2310_s24 }
 0x29f   : > { %535 = vrot.lane.b32.xlu1 %v512_v23, %s2310_s24 }
 0x304   : > { %v522_v28 = vpop.permute.xlu0 %521 }
 0x305   : > { %v524_v27 = vpop.permute.xlu1 %523  ;;  %v1779_v30 = vmax.f32 %v1650_v25, %v522_v28 }
 0x306   : > { %v1776_v29 = vmax.f32 %v1659_v31, %v524_v27 }
 0x307   : > { %561 = vrot.lane.b32.xlu0 %v1779_v30, %s1473_s19 }
 0x308   : > { %563 = vrot.lane.b32.xlu1 %v1776_v29, %s1473_s19  ;;  %v526_v34 = vpop.permute.xlu0 %525 }
 0x309   : > { %v528_v33 = vpop.permute.xlu1 %527  ;;  %v1789_v36 = vmax.f32 %v1662_v32, %v526_v34  ;;  %v1900_v34 = vrot.slane %v1735_v3, 2 }
 0x30a   : > { %v1786_v35 = vmax.f32 %v1673_v37, %v528_v33 }
 0x30b   : > { %565 = vrot.lane.b32.xlu0 %v1789_v36, %s1473_s19 }
 0x30c   : > { %567 = vrot.lane.b32.xlu1 %v1786_v35, %s1473_s19  ;;  %v530_v31 = vpop.permute.xlu0 %529 }
 0x30d   : > { %v532_v25 = vpop.permute.xlu1 %531  ;;  %v1799_v40 = vmax.f32 %v1676_v38, %v530_v31  ;;  %v1832_v38 = vrot.slane %v1735_v3, 1 }
 0x30e   : > { %v1796_v39 = vmax.f32 %v1687_v43, %v532_v25  ;;  %v1835_v43 = vrot.slane %v1748_v11, 1 }
 0x30f   : > { %569 = vrot.lane.b32.xlu0 %v1799_v40, %s1473_s19 }
 0x310   : > { %571 = vrot.lane.b32.xlu1 %v1796_v39, %s1473_s19  ;;  %v534_v37 = vpop.permute.xlu0 %533 }
 0x311   : > { %v536_v32 = vpop.permute.xlu1 %535  ;;  %v1809_v42 = vmax.f32 %v1690_v44, %v534_v37  ;;  %v1842_v44 = vrot.slane %v1753_v12, 1  ;;  %v1910_v37 = vrot.slane %v1753_v12, 2 }
 0x312   : > { %v1806_v41 = vmax.f32 %v1699_v47, %v536_v32  ;;  %v1905_v32 = vrot.slane %v1748_v11, 2 }
 0x313   : > { %573 = vrot.lane.b32.xlu0 %v1809_v42, %s1473_s19 }
 0x314   : > { %575 = vrot.lane.b32.xlu1 %v1806_v41, %s1473_s19 }
 0x317   : > { %745 = vrot.lane.b32.xlu0 %v1735_v3, %s1479_s6 }
 0x318   : > { %747 = vrot.lane.b32.xlu1 %v1748_v11, %s1479_s6 }
 0x31b   : > { %749 = vrot.lane.b32.xlu0 %v1753_v12, %s1479_s6 }
 0x31c   : > { %751 = vrot.lane.b32.xlu1 %v1766_v19, %s1479_s6 }
 0x31f   : > { %813 = vrot.lane.b32.xlu0 %v1735_v3, %s1477_s23 }
 0x320   : > { %815 = vrot.lane.b32.xlu1 %v1748_v11, %s1477_s23  ;;  %v1064_v11 = vrot.slane %v1766_v19, 2 }
 0x323   : > { %817 = vrot.lane.b32.xlu0 %v1753_v12, %s1477_s23 }
 0x324   : > { %819 = vrot.lane.b32.xlu1 %v1766_v19, %s1477_s23  ;;  %v1364_v19 = vld [vmem:[%s2308_s2] ss:$0 sm:$0xff] }
 0x327   : > { %921 = vrot.lane.b32.xlu0 %v1832_v38, %s1479_s6 }
 0x328   : > { %923 = vrot.lane.b32.xlu1 %v1835_v43, %s1479_s6 }
 0x32b   : > { %925 = vrot.lane.b32.xlu0 %v1842_v44, %s1479_s6 }
 0x32c   : > { %927 = vrot.lane.b32.xlu1 %v1845_v45, %s1479_s6 }
 0x32f   : > { %989 = vrot.lane.b32.xlu0 %v1832_v38, %s1477_s23 }
 0x379   : > { %v562_v49 = vpop.permute.xlu0 %561 }
 0x37a   : > { %v564_v47 = vpop.permute.xlu1 %563  ;;  %585 = vst.msk [vmem:[#allocation2 + $0x4] sm:$0xff] %vm232_vm1, %v562_v49 }
 0x37b   : > { %586 = vst.msk [vmem:[#allocation2 + $0xc] sm:$0xff] %vm232_vm1, %v564_v47  ;;  %v1366_v47 = vld [vmem:[%s2308_s2 + $0x2] ss:$0 sm:$0xff] }
 0x37d   : > { %v566_v54 = vpop.permute.xlu0 %565 }
 0x37e   : > { %v568_v53 = vpop.permute.xlu1 %567  ;;  %587 = vst.msk [vmem:[#allocation2 + $0x1c] sm:$0xff] %vm232_vm1, %v566_v54 }
 0x37f   : > { %588 = vst.msk [vmem:[#allocation2 + $0x24] sm:$0xff] %vm232_vm1, %v568_v53 }
 0x381   : > { %v570_v57 = vpop.permute.xlu0 %569  ;;  %v601_v60 = vld [vmem:[#allocation2 + $0x2] sm:$0xff] }
 0x382   : > { %v572_v26 = vpop.permute.xlu1 %571  ;;  %v594_v58 = vld [vmem:[#allocation2 + $0xe] sm:$0xff]  ;;  %v593_v59 = vld [vmem:[#allocation2 + $0x6] sm:$0xff]  ;;  %589 = vst.msk [vmem:[#allocation2 + $0x34] sm:$0xff] %vm232_vm1, %v570_v57 }
 0x383   : > { %v602_v50 = vld [vmem:[#allocation2 + $0xa] sm:$0xff]  ;;  %590 = vst.msk [vmem:[#allocation2 + $0x3c] sm:$0xff] %vm232_vm1, %v572_v26  ;;  %v613_v61 = vsel %vm1863_vm7, %v593_v59, %v601_v60 }
 0x384   : > { %v614_v48 = vsel %vm1859_vm6, %v594_v58, %v602_v50  ;;  %629 = vrot.lane.b32.xlu0 %v613_v61, %s2310_s24 }
 0x385   : > { %631 = vrot.lane.b32.xlu1 %v614_v48, %s2310_s24  ;;  %v574_v63 = vpop.permute.xlu0 %573  ;;  %v603_v5 = vld [vmem:[#allocation2 + $0x1a] sm:$0xff] }
 0x386   : > { %v576_v62 = vpop.permute.xlu1 %575  ;;  %v596_v0 = vld [vmem:[#allocation2 + $0x26] sm:$0xff]  ;;  %v595_v2 = vld [vmem:[#allocation2 + $0x1e] sm:$0xff]  ;;  %591 = vst.msk [vmem:[#allocation2 + $0x4c] sm:$0xff] %vm232_vm1, %v574_v63 }
 0x387   : > { %v604_v1 = vld [vmem:[#allocation2 + $0x22] sm:$0xff]  ;;  %592 = vst.msk [vmem:[#allocation2 + $0x54] sm:$0xff] %vm232_vm1, %v576_v62  ;;  %v615_v6 = vsel %vm1863_vm7, %v595_v2, %v603_v5 }
 0x388   : > { %v616_v4 = vsel %vm1859_vm6, %v596_v0, %v604_v1  ;;  %633 = vrot.lane.b32.xlu0 %v615_v6, %s2310_s24 }
 0x389   : > { %635 = vrot.lane.b32.xlu1 %v616_v4, %s2310_s24  ;;  %v746_v10 = vpop.permute.xlu0 %745  ;;  %v605_v15 = vld [vmem:[#allocation2 + $0x32] sm:$0xff] }
 0x38a   : > { %v598_v7 = vld [vmem:[#allocation2 + $0x3e] sm:$0xff]  ;;  %v597_v9 = vld [vmem:[#allocation2 + $0x36] sm:$0xff]  ;;  %v748_v13 = vpop.permute.xlu1 %747  ;;  %1380 = vpush %v746_v10 }
 0x38b   : > { %v606_v8 = vld [vmem:[#allocation2 + $0x3a] sm:$0xff]  ;;  %v617_v16 = vsel %vm1863_vm7, %v597_v9, %v605_v15  ;;  %1382 = vpush %v748_v13 }
 0x38c   : > { %v618_v14 = vsel %vm1859_vm6, %v598_v7, %v606_v8  ;;  %637 = vrot.lane.b32.xlu0 %v617_v16, %s2310_s24  ;;  %v715_v16 = vstv %s1960_s17 }
 0x38d   : > { %639 = vrot.lane.b32.xlu1 %v618_v14, %s2310_s24  ;;  %v750_v21 = vpop.permute.xlu0 %749  ;;  %v607_v24 = vld [vmem:[#allocation2 + $0x4a] sm:$0xff] }
 0x38e   : > { %v600_v17 = vld [vmem:[#allocation2 + $0x56] sm:$0xff]  ;;  %v599_v20 = vld [vmem:[#allocation2 + $0x4e] sm:$0xff]  ;;  %v752_v22 = vpop.permute.xlu1 %751  ;;  %1384 = vpush %v750_v21 }
 0x38f   : > { %v608_v18 = vld [vmem:[#allocation2 + $0x52] sm:$0xff]  ;;  %v619_v27 = vsel %vm1863_vm7, %v599_v20, %v607_v24  ;;  %1386 = vpush %v752_v22 }
 0x390   : > { %v620_v23 = vsel %vm1859_vm6, %v600_v17, %v608_v18  ;;  %641 = vrot.lane.b32.xlu0 %v619_v27, %s2310_s24 }
 0x391   : > { %643 = vrot.lane.b32.xlu1 %v620_v23, %s2310_s24  ;;  %v814_v28 = vpop.permute.xlu0 %813 }
 0x392   : > { %v816_v33 = vpop.permute.xlu1 %815  ;;  %1388 = vpush %v814_v28 }
 0x393   : > { %1390 = vpush %v816_v33 }
 0x394   : > { %993 = vrot.lane.b32.xlu0 %v1842_v44, %s1477_s23 }
 0x395   : > { %991 = vrot.lane.b32.xlu1 %v1835_v43, %s1477_s23  ;;  %v818_v25 = vpop.permute.xlu0 %817 }
 0x396   : > { %v820_v31 = vpop.permute.xlu1 %819  ;;  %1392 = vpush %v818_v25 }
 0x397   : > { %1394 = vpush %v820_v31 }
 0x398   : > { %1093 = vrot.lane.b32.xlu0 %v1900_v34, %s1479_s6  ;;  %1396 = vpush %v1832_v38 }
 0x399   : > { %995 = vrot.lane.b32.xlu1 %v1845_v45, %s1477_s23  ;;  %v922_v3 = vpop.permute.xlu0 %921  ;;  %1398 = vpush %v1835_v43 }
 0x39a   : > { %v924_v46 = vpop.permute.xlu1 %923  ;;  %1400 = vpush %v1842_v44  ;;  %v1365_v44 = vld [vmem:[%s2308_s2 + $0x1] ss:$0 sm:$0xff] }
 0x39b   : > { %1402 = vpush %v1845_v45  ;;  %v1367_v45 = vld [vmem:[%s2308_s2 + $0x3] ss:$0 sm:$0xff] }
 0x39c   : > { %1097 = vrot.lane.b32.xlu0 %v1910_v37, %s1479_s6  ;;  %1404 = vpush %v922_v3 }
 0x39d   : > { %1095 = vrot.lane.b32.xlu1 %v1905_v32, %s1479_s6  ;;  %v926_v12 = vpop.permute.xlu0 %925  ;;  %1406 = vpush %v924_v46 }
 0x39e   : > { %v928_v38 = vpop.permute.xlu1 %927  ;;  %1408 = vpush %v926_v12 }
 0x39f   : > { %1410 = vpush %v928_v38  ;;  %v719_v38 = vstv %s1962_s18  ;;  %s1481_s18 = smov 120  }
 0x3a0   : > { %1161 = vrot.lane.b32.xlu0 %v1900_v34, %s1477_s23 }
 0x3a1   : > { %1099 = vrot.lane.b32.xlu1 %v1064_v11, %s1479_s6  ;;  %v990_v43 = vpop.permute.xlu0 %989 }
 0x3a2   : > { %1412 = vpush %v990_v43 }
 0x3a4   : > { %1165 = vrot.lane.b32.xlu0 %v1910_v37, %s1477_s23 }
 0x3a5   : > { %1163 = vrot.lane.b32.xlu1 %v1905_v32, %s1477_s23 }
 0x3a8   : > { %1254 = vperm.xlu0 %1462, %v1364_v19  }
 0x3a9   : > { %1167 = vrot.lane.b32.xlu1 %v1064_v11, %s1477_s23 }
 0x3ac   : > { %1266 = vperm.xlu0 %1462, %v1367_v45  }
 0x3ad   : > { %1258 = vperm.xlu1 %1463, %v1365_v44  }
 0x3b1   : > { %1262 = vperm.xlu1 %1463, %v1366_v47  }
 0x3f6   : > { %v630_v52 = vpop.permute.xlu0 %629 }
 0x3f7   : > { %v632_v49 = vpop.permute.xlu1 %631  ;;  %v653_v53 = vmax.f32 %v1779_v30, %v630_v52 }
 0x3f8   : > { %v654_v51 = vmax.f32 %v1776_v29, %v632_v49 }
 0x3f9   : > { %669 = vrot.lane.b32.xlu0 %v653_v53, %s1473_s19 }
 0x3fa   : > { %671 = vrot.lane.b32.xlu1 %v654_v51, %s1473_s19  ;;  %v634_v56 = vpop.permute.xlu0 %633 }
 0x3fb   : > { %v636_v54 = vpop.permute.xlu1 %635  ;;  %v655_v26 = vmax.f32 %v1789_v36, %v634_v56 }
 0x3fc   : > { %v656_v55 = vmax.f32 %v1786_v35, %v636_v54 }
 0x3fd   : > { %673 = vrot.lane.b32.xlu0 %v655_v26, %s1473_s19 }
 0x3fe   : > { %675 = vrot.lane.b32.xlu1 %v656_v55, %s1473_s19  ;;  %v638_v58 = vpop.permute.xlu0 %637 }
 0x3ff   : > { %v640_v57 = vpop.permute.xlu1 %639  ;;  %v657_v30 = vmax.f32 %v1799_v40, %v638_v58 }
 0x400   : > { %v658_v29 = vmax.f32 %v1796_v39, %v640_v57 }
 0x401   : > { %677 = vrot.lane.b32.xlu0 %v657_v30, %s1473_s19 }
 0x402   : > { %679 = vrot.lane.b32.xlu1 %v658_v29, %s1473_s19  ;;  %v642_v59 = vpop.permute.xlu0 %641 }
 0x403   : > { %v644_v50 = vpop.permute.xlu1 %643  ;;  %v659_v36 = vmax.f32 %v1809_v42, %v642_v59 }
 0x404   : > { %v660_v35 = vmax.f32 %v1806_v41, %v644_v50 }
 0x405   : > { %681 = vrot.lane.b32.xlu0 %v659_v36, %s1473_s19 }
 0x406   : > { %683 = vrot.lane.b32.xlu1 %v660_v35, %s1473_s19  ;;  %v994_v60 = vpop.permute.xlu0 %993  ;;  %s1964_s19 = spop %1376 }
 0x407   : > { %v992_v48 = vpop.permute.xlu1 %991  ;;  %s1966_s20 = spop %1378  ;;  %v723_v56 = vstv %s1964_s19 }
 0x408   : > { %1414 = vpush %v992_v48  ;;  %s1968_s21 = spop %1380  ;;  %v727_v58 = vstv %s1966_s20 }
 0x409   : > { %1416 = vpush %v994_v60  ;;  %s1970_s22 = spop %1382  ;;  %v754_v17 = vstv %s1968_s21 }
 0x40a   : > { %v1094_v40 = vpop.permute.xlu0 %1093  ;;  %s1972_s23 = spop %1384 }
 0x40b   : > { %v996_v39 = vpop.permute.xlu1 %995  ;;  %s1974_s25 = spop %1386  ;;  %v760_v47 = vstv %s1972_s23 }
 0x40c   : > { %1418 = vpush %v996_v39  ;;  %s1976_s26 = spop %1388  ;;  %v763_v30 = vstv %s1974_s25 }
 0x40d   : > { %1420 = vpush %v1900_v34  ;;  %s1978_s27 = spop %1390 }
 0x40e   : > { %1422 = vpush %v1905_v32  ;;  %v1098_v41 = vpop.permute.xlu0 %1097  ;;  %s1980_s28 = spop %1392 }
 0x40f   : > { %v1096_v61 = vpop.permute.xlu1 %1095  ;;  %1424 = vpush %v1910_v37  ;;  %s1982_s29 = spop %1394 }
 0x410   : > { %1426 = vpush %v1064_v11  ;;  %s1984_s30 = spop %1396  ;;  %v757_v11 = vstv %s1970_s22 }
 0x411   : > { %1428 = vpush %v1094_v40  ;;  %s1986_s4 = spop %1398  ;;  %v894_v49 = vstv %s1984_s30 }
 0x412   : > { %1430 = vpush %v1096_v61  ;;  %v1162_v62 = vpop.permute.xlu0 %1161  ;;  %s1988_s5 = spop %1400  ;;  %v897_v36 = vstv %s1986_s4 }
 0x413   : > { %v1100_v42 = vpop.permute.xlu1 %1099  ;;  %1432 = vpush %v1098_v41  ;;  %s1990_s6 = spop %1402  ;;  %v900_v48 = vstv %s1988_s5 }
 0x414   : > { %1434 = vpush %v1100_v42  ;;  %s1992_s7 = spop %1404  ;;  %v822_v42 = vstv %s1976_s26 }
 0x415   : > { %1436 = vpush %v1162_v62  ;;  %s1996_s8 = spop %1406  ;;  %v903_v62 = vstv %s1990_s6 }
 0x416   : > { %v1166_v0 = vpop.permute.xlu0 %1165  ;;  %s2000_s9 = spop %1408 }
 0x417   : > { %v1164_v63 = vpop.permute.xlu1 %1163  ;;  %s2002_s10 = spop %1410 }
 0x418   : > { %1438 = vpush %v1164_v63  ;;  %s2004_s11 = spop %1412 }
 0x419   : > { %1440 = vpush %v1166_v0 }
 0x41b   : > { %v1168_v1 = vpop.permute.xlu1 %1167 }
 0x41c   : > { %1442 = vpush %v1168_v1 }
 0x423   : > { %v1998_v4 = vpop.permute.xlu0 %1254 }
 0x427   : > { %v2008_v6 = vpop.permute.xlu0 %1266 }
 0x428   : > { %v1994_v2 = vpop.permute.xlu1 %1258 }
 0x42c   : > { %v2006_v5 = vpop.permute.xlu1 %1262 }
 0x439   : > { %s2010_s14 = spop %1414 }
 0x43a   : > { %s2012_s15 = spop %1416 }
 0x43d   : > { %s2015_s16 = spop %1418 }
 0x43e   : > { %s1421_s24 = spop %1420 }
 0x43f   : > { %v1066_v13 = vstv %s1421_s24  ;;  %s1423_s0 = spop %1422  ;;  %s2327_s24 = smov 124  }
 0x440   : > { %v1069_v24 = vstv %s1423_s0  ;;  %s2080_s0 = spop %1424 }
 0x441   : > { %s1427_s17 = spop %1426  ;;  %v1072_v63 = vstv %s2080_s0 }
 0x442   : > { %v1075_v0 = vstv %s1427_s17  ;;  %s1429_s19 = spop %1428 }
 0x443   : > { %s1431_s20 = spop %1430 }
 0x444   : > { %s1433_s21 = spop %1432 }
 0x445   : > { %s1435_s22 = spop %1434 }
 0x446   : > { %s1437_s23 = spop %1436 }
 0x449   : > { %s1439_s25 = spop %1438 }
 0x44a   : > { %s1441_s26 = spop %1440 }
 0x46b   : > { %v670_v8 = vpop.permute.xlu0 %669 }
 0x46c   : > { %v672_v7 = vpop.permute.xlu1 %671  ;;  %693 = vst.msk [vmem:[#allocation2 + $0x4] sm:$0xff] %vm232_vm1, %v670_v8 }
 0x46d   : > { %694 = vst.msk [vmem:[#allocation2 + $0xc] sm:$0xff] %vm232_vm1, %v672_v7 }
 0x46f   : > { %v674_v10 = vpop.permute.xlu0 %673 }
 0x470   : > { %v676_v9 = vpop.permute.xlu1 %675  ;;  %695 = vst.msk [vmem:[#allocation2 + $0x1c] sm:$0xff] %vm232_vm1, %v674_v10 }
 0x471   : > { %696 = vst.msk [vmem:[#allocation2 + $0x24] sm:$0xff] %vm232_vm1, %v676_v9 }
 0x473   : > { %v678_v21 = vpop.permute.xlu0 %677  ;;  %v2030_v22 = vld [vmem:[#allocation2] sm:$0xff] }
 0x474   : > { %v2020_v14 = vld [vmem:[#allocation2 + $0x10] sm:$0xff]  ;;  %v680_v15 = vpop.permute.xlu1 %679  ;;  %v2024_v18 = vld [vmem:[#allocation2 + $0x8] sm:$0xff]  ;;  %697 = vst.msk [vmem:[#allocation2 + $0x34] sm:$0xff] %vm232_vm1, %v678_v21  ;;  %v765_v28 = vmul.f32 %v754_v17, %v2030_v22  ;;  %v2045_v31 = vmul.f32 %v715_v16, %v2030_v22 }
 0x475   : > { %v2027_v20 = vmul.f32 %v1066_v13, %v2020_v14  ;;  %698 = vst.msk [vmem:[#allocation2 + $0x3c] sm:$0xff] %vm232_vm1, %v680_v15  ;;  %v2033_v23 = vmul.f32 %v1066_v13, %v2024_v18  ;;  %v766_v27 = vmul.f32 %v754_v17, %v2024_v18  ;;  %v2042_v25 = vmul.f32 %v715_v16, %v2024_v18  ;;  %v2076_v53 = vld [vmem:[#allocation2 + $0xc] sm:$0xff]  ;;  %v2096_v59 = vld [vmem:[#allocation2 + $0x4] sm:$0xff] }
 0x476   : > { %781 = vrot.lane.b32.xlu0 %v765_v28, %s2327_s24  ;;  %v2088_v29 = vmul.f32 %v894_v49, %v2076_v53  ;;  %v834_v13 = vmul.f32 %v822_v42, %v2024_v18  ;;  %v2127_v17 = vmul.f32 %v894_v49, %v2096_v59  ;;  %v825_v49 = vstv %s1978_s27  ;;  %s1443_s27 = spop %1442 }
 0x477   : > { %783 = vrot.lane.b32.xlu1 %v766_v27, %s2327_s24  ;;  %v682_v3 = vpop.permute.xlu0 %681  ;;  %v2054_v46 = vld [vmem:[#allocation2 + $0x18] sm:$0xff] }
 0x478   : > { %v2038_v33 = vld [vmem:[#allocation2 + $0x28] sm:$0xff]  ;;  %v684_v34 = vpop.permute.xlu1 %683  ;;  %v2047_v32 = vld [vmem:[#allocation2 + $0x20] sm:$0xff]  ;;  %699 = vst.msk [vmem:[#allocation2 + $0x4c] sm:$0xff] %vm232_vm1, %v682_v3  ;;  %v767_v19 = vmul.f32 %v757_v11, %v2054_v46  ;;  %v2068_v45 = vmul.f32 %v719_v38, %v2054_v46 }
 0x479   : > { %v2050_v37 = vmul.f32 %v1069_v24, %v2038_v33  ;;  %700 = vst.msk [vmem:[#allocation2 + $0x54] sm:$0xff] %vm232_vm1, %v684_v34  ;;  %v2058_v12 = vmul.f32 %v1069_v24, %v2047_v32  ;;  %v768_v43 = vmul.f32 %v757_v11, %v2047_v32  ;;  %v2065_v44 = vmul.f32 %v719_v38, %v2047_v32  ;;  %v2100_v60 = vld [vmem:[#allocation2 + $0x1c] sm:$0xff]  ;;  %v2102_v39 = vld [vmem:[#allocation2 + $0x24] sm:$0xff] }
 0x47a   : > { %785 = vrot.lane.b32.xlu0 %v767_v19, %s2327_s24  ;;  %v2132_v21 = vmul.f32 %v897_v36, %v2102_v39  ;;  %v2135_v24 = vmul.f32 %v897_v36, %v2100_v60  ;;  %v833_v38 = vmul.f32 %v822_v42, %v2030_v22  ;;  %v835_v22 = vmul.f32 %v825_v49, %v2054_v46 }
 0x47b   : > { %787 = vrot.lane.b32.xlu1 %v768_v43, %s2327_s24  ;;  %v709_v52 = vld [vmem:[#allocation2 + $0x30] sm:$0xff]  ;;  %v930_v46 = vstv %s1992_s7 }
 0x47c   : > { %v2072_v51 = vld [vmem:[#allocation2 + $0x38] sm:$0xff]  ;;  %v769_v55 = vmul.f32 %v760_v47, %v709_v52  ;;  %v2085_v57 = vmul.f32 %v723_v56, %v709_v52  ;;  %v2116_v9 = vld [vmem:[#allocation2 + $0x40] sm:$0xff] }
 0x47d   : > { %v770_v54 = vmul.f32 %v760_v47, %v2072_v51  ;;  %v2083_v26 = vmul.f32 %v723_v56, %v2072_v51  ;;  %v2105_v41 = vld [vmem:[#allocation2 + $0x3c] sm:$0xff]  ;;  %v2110_v1 = vld [vmem:[#allocation2 + $0x34] sm:$0xff]  ;;  %v2150_v11 = vmul.f32 %v1072_v63, %v2072_v51  ;;  %v2154_v43 = vmul.f32 %v1072_v63, %v2116_v9 }
 0x47e   : > { %789 = vrot.lane.b32.xlu0 %v769_v55, %s2327_s24  ;;  %v2138_v27 = vmul.f32 %v900_v48, %v2105_v41  ;;  %v2141_v28 = vmul.f32 %v900_v48, %v2110_v1  ;;  %v828_v55 = vstv %s1980_s28  ;;  %s1371_s28 = sshll.u32 %s2329_s13, 6 }
 0x47f   : > { %791 = vrot.lane.b32.xlu1 %v770_v54, %s2327_s24  ;;  %v711_v35 = vld [vmem:[#allocation2 + $0x48] sm:$0xff]  ;;  %v836_v54 = vmul.f32 %v825_v49, %v2047_v32  ;;  %v838_v56 = vmul.f32 %v828_v55, %v2072_v51  ;;  %s2277_s4 = scalar_lea.vmem %s2309_s3, %s1371_s28 }
 0x480   : > { %v2092_v50 = vld [vmem:[#allocation2 + $0x50] sm:$0xff]  ;;  %v771_v61 = vmul.f32 %v763_v30, %v711_v35  ;;  %v2118_v10 = vld [vmem:[#allocation2 + $0x58] sm:$0xff]  ;;  %v2124_v16 = vmul.f32 %v727_v58, %v711_v35 }
 0x481   : > { %v772_v40 = vmul.f32 %v763_v30, %v2092_v50  ;;  %v2112_v7 = vld [vmem:[#allocation2 + $0x54] sm:$0xff]  ;;  %v2114_v8 = vld [vmem:[#allocation2 + $0x4c] sm:$0xff]  ;;  %v2122_v15 = vmul.f32 %v727_v58, %v2092_v50  ;;  %v2157_v19 = vmul.f32 %v1075_v0, %v2092_v50  ;;  %v2160_v47 = vmul.f32 %v1075_v0, %v2118_v10 }
 0x482   : > { %793 = vrot.lane.b32.xlu0 %v771_v61, %s2327_s24  ;;  %v2144_v34 = vmul.f32 %v903_v62, %v2112_v7  ;;  %v2147_v3 = vmul.f32 %v903_v62, %v2114_v8  ;;  %v837_v58 = vmul.f32 %v828_v55, %v709_v52  ;;  %v831_v30 = vstv %s1982_s29 }
 0x483   : > { %795 = vrot.lane.b32.xlu1 %v772_v40, %s2327_s24  ;;  %v840_v36 = vmul.f32 %v831_v30, %v2092_v50  ;;  %v839_v48 = vmul.f32 %v831_v30, %v711_v35  ;;  %v942_v40 = vmul.f32 %v930_v46, %v2076_v53  ;;  %v941_v61 = vmul.f32 %v930_v46, %v2096_v59 }
 0x484   : > { %v933_v52 = vstv %s1996_s8  ;;  %v936_v62 = vstv %s2000_s9 }
 0x485   : > { %v943_v42 = vmul.f32 %v933_v52, %v2100_v60  ;;  %v944_v35 = vmul.f32 %v933_v52, %v2102_v39  ;;  %v946_v63 = vmul.f32 %v936_v62, %v2105_v41  ;;  %v945_v0 = vmul.f32 %v936_v62, %v2110_v1 }
 0x486   : > { %849 = vrot.lane.b32.xlu0 %v833_v38, %s1481_s18 }
 0x487   : > { %851 = vrot.lane.b32.xlu1 %v834_v13, %s1481_s18  ;;  %v939_v13 = vstv %s2002_s10 }
 0x488   : > { %v948_v38 = vmul.f32 %v939_v13, %v2112_v7  ;;  %v947_v49 = vmul.f32 %v939_v13, %v2114_v8 }
 0x48a   : > { %853 = vrot.lane.b32.xlu0 %v835_v22, %s1481_s18 }
 0x48b   : > { %855 = vrot.lane.b32.xlu1 %v836_v54, %s1481_s18  ;;  %v998_v54 = vstv %s2004_s11 }
 0x48c   : > { %v1010_v22 = vmul.f32 %v998_v54, %v2076_v53  ;;  %v1009_v55 = vmul.f32 %v998_v54, %v2096_v59  ;;  %v1007_v59 = vstv %s2015_s16 }
 0x48d   : > { %v1016_v46 = vmul.f32 %v1007_v59, %v2112_v7 }
 0x48e   : > { %857 = vrot.lane.b32.xlu0 %v837_v58, %s1481_s18 }
 0x48f   : > { %859 = vrot.lane.b32.xlu1 %v838_v56, %s1481_s18  ;;  %v1001_v56 = vstv %s2010_s14 }
 0x490   : > { %v1011_v58 = vmul.f32 %v1001_v56, %v2100_v60  ;;  %v1012_v30 = vmul.f32 %v1001_v56, %v2102_v39  ;;  %v1015_v60 = vmul.f32 %v1007_v59, %v2114_v8  ;;  %v1102_v39 = vstv %s1429_s19 }
 0x491   : > { %v1108_v8 = vstv %s1433_s21  ;;  %v1179_v56 = vstv %s1443_s27 }
 0x492   : > { %861 = vrot.lane.b32.xlu0 %v839_v48, %s1481_s18  ;;  %v1118_v52 = vmul.f32 %v1108_v8, %v2116_v9 }
 0x493   : > { %863 = vrot.lane.b32.xlu1 %v840_v36, %s1481_s18  ;;  %v1004_v36 = vstv %s2012_s15 }
 0x494   : > { %v1014_v48 = vmul.f32 %v1004_v36, %v2105_v41  ;;  %v1013_v53 = vmul.f32 %v1004_v36, %v2110_v1  ;;  %v1114_v41 = vmul.f32 %v1102_v39, %v2020_v14  ;;  %v1105_v1 = vstv %s1431_s20 }
 0x495   : > { %v1116_v7 = vmul.f32 %v1105_v1, %v2038_v33 }
 0x496   : > { %957 = vrot.lane.b32.xlu0 %v941_v61, %s2327_s24  ;;  %v1115_v61 = vmul.f32 %v1105_v1, %v2047_v32 }
 0x497   : > { %959 = vrot.lane.b32.xlu1 %v942_v40, %s2327_s24  ;;  %v1113_v40 = vmul.f32 %v1102_v39, %v2024_v18 }
 0x49a   : > { %961 = vrot.lane.b32.xlu0 %v943_v42, %s2327_s24  ;;  %v1117_v42 = vmul.f32 %v1108_v8, %v2072_v51 }
 0x49b   : > { %963 = vrot.lane.b32.xlu1 %v944_v35, %s2327_s24  ;;  %v1111_v35 = vstv %s1435_s22 }
 0x49c   : > { %v1120_v62 = vmul.f32 %v1111_v35, %v2118_v10 }
 0x49e   : > { %965 = vrot.lane.b32.xlu0 %v945_v0, %s2327_s24  ;;  %v1170_v0 = vstv %s1437_s23 }
 0x49f   : > { %967 = vrot.lane.b32.xlu1 %v946_v63, %s2327_s24  ;;  %v1119_v63 = vmul.f32 %v1111_v35, %v2092_v50  ;;  %v1181_v13 = vmul.f32 %v1170_v0, %v2024_v18 }
 0x4a2   : > { %969 = vrot.lane.b32.xlu0 %v947_v49, %s2327_s24  ;;  %v1173_v49 = vstv %s1439_s25 }
 0x4a3   : > { %971 = vrot.lane.b32.xlu1 %v948_v38, %s2327_s24  ;;  %v1182_v38 = vmul.f32 %v1170_v0, %v2020_v14  ;;  %v1183_v54 = vmul.f32 %v1173_v49, %v2047_v32  ;;  %v1188_v32 = vmul.f32 %v1179_v56, %v2118_v10 }
 0x4a6   : > { %1025 = vrot.lane.b32.xlu0 %v1009_v55, %s1481_s18  ;;  %v1176_v55 = vstv %s1441_s26 }
 0x4a7   : > { %1027 = vrot.lane.b32.xlu1 %v1010_v22, %s1481_s18  ;;  %v1184_v22 = vmul.f32 %v1173_v49, %v2038_v33  ;;  %v1185_v18 = vmul.f32 %v1176_v55, %v2072_v51  ;;  %v1186_v14 = vmul.f32 %v1176_v55, %v2116_v9 }
 0x4aa   : > { %1029 = vrot.lane.b32.xlu0 %v1011_v58, %s1481_s18  ;;  %v1187_v58 = vmul.f32 %v1179_v56, %v2092_v50 }
 0x4ab   : > { %1031 = vrot.lane.b32.xlu1 %v1012_v30, %s1481_s18 }
 0x4ae   : > { %1033 = vrot.lane.b32.xlu0 %v1013_v53, %s1481_s18 }
 0x4af   : > { %1035 = vrot.lane.b32.xlu1 %v1014_v48, %s1481_s18 }
 0x4b2   : > { %1037 = vrot.lane.b32.xlu0 %v1015_v60, %s1481_s18 }
 0x4b3   : > { %1039 = vrot.lane.b32.xlu1 %v1016_v46, %s1481_s18 }
 0x4b6   : > { %1131 = vrot.lane.b32.xlu0 %v1114_v41, %s2327_s24 }
 0x4b7   : > { %1129 = vrot.lane.b32.xlu1 %v1113_v40, %s2327_s24 }
 0x4ba   : > { %1135 = vrot.lane.b32.xlu0 %v1116_v7, %s2327_s24 }
 0x4bb   : > { %1133 = vrot.lane.b32.xlu1 %v1115_v61, %s2327_s24 }
 0x4be   : > { %1139 = vrot.lane.b32.xlu0 %v1118_v52, %s2327_s24 }
 0x4bf   : > { %1137 = vrot.lane.b32.xlu1 %v1117_v42, %s2327_s24 }
 0x4c2   : > { %1143 = vrot.lane.b32.xlu0 %v1120_v62, %s2327_s24 }
 0x4c3   : > { %1141 = vrot.lane.b32.xlu1 %v1119_v63, %s2327_s24 }
 0x4c6   : > { %1199 = vrot.lane.b32.xlu0 %v1182_v38, %s1481_s18 }
 0x4c7   : > { %1197 = vrot.lane.b32.xlu1 %v1181_v13, %s1481_s18 }
 0x4ca   : > { %1203 = vrot.lane.b32.xlu0 %v1184_v22, %s1481_s18 }
 0x4cb   : > { %1201 = vrot.lane.b32.xlu1 %v1183_v54, %s1481_s18 }
 0x4ce   : > { %1207 = vrot.lane.b32.xlu0 %v1186_v14, %s1481_s18 }
 0x4cf   : > { %1205 = vrot.lane.b32.xlu1 %v1185_v18, %s1481_s18 }
 0x4d2   : > { %1211 = vrot.lane.b32.xlu0 %v1188_v32, %s1481_s18 }
 0x4d3   : > { %1209 = vrot.lane.b32.xlu1 %v1187_v58, %s1481_s18 }
 0x4e8   : > { %v782_v36 = vpop.permute.xlu0 %781 }
 0x4e9   : > { %v784_v33 = vpop.permute.xlu1 %783  ;;  %v805_v51 = vadd.f32 %v782_v36, %v2045_v31 }
 0x4ea   : > { %v806_v30 = vadd.f32 %v784_v33, %v2042_v25 }
 0x4ec   : > { %v786_v48 = vpop.permute.xlu0 %785 }
 0x4ed   : > { %v788_v9 = vpop.permute.xlu1 %787  ;;  %v807_v59 = vadd.f32 %v786_v48, %v2068_v45 }
 0x4ee   : > { %v808_v53 = vadd.f32 %v788_v9, %v2065_v44 }
 0x4f0   : > { %v790_v50 = vpop.permute.xlu0 %789 }
 0x4f1   : > { %v792_v46 = vpop.permute.xlu1 %791  ;;  %v809_v60 = vadd.f32 %v790_v50, %v2085_v57 }
 0x4f2   : > { %v810_v10 = vadd.f32 %v792_v46, %v2083_v26 }
 0x4f4   : > { %v794_v40 = vpop.permute.xlu0 %793 }
 0x4f5   : > { %v796_v39 = vpop.permute.xlu1 %795  ;;  %v811_v25 = vadd.f32 %v794_v40, %v2124_v16 }
 0x4f6   : > { %v812_v41 = vadd.f32 %v796_v39, %v2122_v15 }
 0x4f8   : > { %v850_v31 = vpop.permute.xlu0 %849 }
 0x4f9   : > { %v852_v1 = vpop.permute.xlu1 %851  ;;  %v873_v7 = vadd.f32 %v850_v31, %v805_v51 }
 0x4fa   : > { %v874_v61 = vadd.f32 %v852_v1, %v806_v30 }
 0x4fb   : > { %v913_v45 = vadd.f32 %v2127_v17, %v873_v7 }
 0x4fc   : > { %v914_v44 = vadd.f32 %v2088_v29, %v874_v61  ;;  %v854_v52 = vpop.permute.xlu0 %853 }
 0x4fd   : > { %v856_v8 = vpop.permute.xlu1 %855  ;;  %v875_v26 = vadd.f32 %v854_v52, %v807_v59 }
 0x4fe   : > { %v876_v42 = vadd.f32 %v856_v8, %v808_v53 }
 0x4ff   : > { %v915_v35 = vadd.f32 %v2135_v24, %v875_v26 }
 0x500   : > { %v916_v57 = vadd.f32 %v2132_v21, %v876_v42  ;;  %v858_v15 = vpop.permute.xlu0 %857 }
 0x501   : > { %v860_v62 = vpop.permute.xlu1 %859  ;;  %v877_v16 = vadd.f32 %v858_v15, %v809_v60 }
 0x502   : > { %v878_v63 = vadd.f32 %v860_v62, %v810_v10 }
 0x503   : > { %v917_v13 = vadd.f32 %v2141_v28, %v877_v16 }
 0x504   : > { %v918_v0 = vadd.f32 %v2138_v27, %v878_v63  ;;  %v862_v29 = vpop.permute.xlu0 %861 }
 0x505   : > { %v864_v38 = vpop.permute.xlu1 %863  ;;  %v879_v17 = vadd.f32 %v862_v29, %v811_v25 }
 0x506   : > { %v880_v49 = vadd.f32 %v864_v38, %v812_v41 }
 0x507   : > { %v919_v22 = vadd.f32 %v2147_v3, %v879_v17 }
 0x508   : > { %v920_v54 = vadd.f32 %v2144_v34, %v880_v49  ;;  %v958_v21 = vpop.permute.xlu0 %957 }
 0x509   : > { %v960_v55 = vpop.permute.xlu1 %959  ;;  %v981_v27 = vadd.f32 %v958_v21, %v913_v45 }
 0x50a   : > { %v982_v33 = vadd.f32 %v960_v55, %v914_v44 }
 0x50c   : > { %v962_v24 = vpop.permute.xlu0 %961 }
 0x50d   : > { %v964_v18 = vpop.permute.xlu1 %963  ;;  %v983_v48 = vadd.f32 %v962_v24, %v915_v35 }
 0x50e   : > { %v984_v9 = vadd.f32 %v964_v18, %v916_v57 }
 0x510   : > { %v966_v56 = vpop.permute.xlu0 %965 }
 0x511   : > { %v968_v14 = vpop.permute.xlu1 %967  ;;  %v985_v60 = vadd.f32 %v966_v56, %v917_v13 }
 0x512   : > { %v986_v10 = vadd.f32 %v968_v14, %v918_v0 }
 0x514   : > { %v970_v32 = vpop.permute.xlu0 %969 }
 0x515   : > { %v972_v58 = vpop.permute.xlu1 %971  ;;  %v987_v7 = vadd.f32 %v970_v32, %v919_v22 }
 0x516   : > { %v988_v61 = vadd.f32 %v972_v58, %v920_v54 }
 0x518   : > { %v1026_v28 = vpop.permute.xlu0 %1025 }
 0x519   : > { %v1028_v30 = vpop.permute.xlu1 %1027  ;;  %v1049_v51 = vadd.f32 %v1026_v28, %v981_v27 }
 0x51a   : > { %v1050_v36 = vadd.f32 %v1028_v30, %v982_v33 }
 0x51b   : > { %v1085_v34 = vadd.f32 %v2033_v23, %v1049_v51 }
 0x51c   : > { %v1086_v3 = vadd.f32 %v2027_v20, %v1050_v36  ;;  %v1030_v59 = vpop.permute.xlu0 %1029 }
 0x51d   : > { %v1032_v53 = vpop.permute.xlu1 %1031  ;;  %v1051_v50 = vadd.f32 %v1030_v59, %v983_v48 }
 0x51e   : > { %v1052_v46 = vadd.f32 %v1032_v53, %v984_v9 }
 0x51f   : > { %v1087_v39 = vadd.f32 %v2058_v12, %v1051_v50 }
 0x520   : > { %v1088_v40 = vadd.f32 %v2050_v37, %v1052_v46  ;;  %v1034_v25 = vpop.permute.xlu0 %1033 }
 0x521   : > { %v1036_v41 = vpop.permute.xlu1 %1035  ;;  %v1053_v31 = vadd.f32 %v1034_v25, %v985_v60 }
 0x522   : > { %v1054_v1 = vadd.f32 %v1036_v41, %v986_v10 }
 0x523   : > { %v1089_v23 = vadd.f32 %v2150_v11, %v1053_v31 }
 0x524   : > { %v1090_v20 = vadd.f32 %v2154_v43, %v1054_v1  ;;  %v1038_v45 = vpop.permute.xlu0 %1037 }
 0x525   : > { %v1040_v44 = vpop.permute.xlu1 %1039  ;;  %v1055_v52 = vadd.f32 %v1038_v45, %v987_v7 }
 0x526   : > { %v1056_v8 = vadd.f32 %v1040_v44, %v988_v61 }
 0x527   : > { %v1091_v42 = vadd.f32 %v2157_v19, %v1055_v52 }
 0x528   : > { %v1092_v12 = vadd.f32 %v2160_v47, %v1056_v8  ;;  %v1132_v26 = vpop.permute.xlu0 %1131 }
 0x529   : > { %v1130_v37 = vpop.permute.xlu1 %1129  ;;  %v1154_v0 = vadd.f32 %v1132_v26, %v1086_v3 }
 0x52a   : > { %v1153_v11 = vadd.f32 %v1130_v37, %v1085_v34 }
 0x52c   : > { %v1136_v35 = vpop.permute.xlu0 %1135 }
 0x52d   : > { %v1134_v57 = vpop.permute.xlu1 %1133  ;;  %v1156_v47 = vadd.f32 %v1136_v35, %v1088_v40 }
 0x52e   : > { %v1155_v19 = vadd.f32 %v1134_v57, %v1087_v39 }
 0x530   : > { %v1140_v15 = vpop.permute.xlu0 %1139 }
 0x531   : > { %v1138_v62 = vpop.permute.xlu1 %1137  ;;  %v1158_v24 = vadd.f32 %v1140_v15, %v1090_v20 }
 0x532   : > { %v1157_v18 = vadd.f32 %v1138_v62, %v1089_v23 }
 0x534   : > { %v1144_v16 = vpop.permute.xlu0 %1143 }
 0x535   : > { %v1142_v63 = vpop.permute.xlu1 %1141  ;;  %v1160_v30 = vadd.f32 %v1144_v16, %v1092_v12 }
 0x536   : > { %v1159_v27 = vadd.f32 %v1142_v63, %v1091_v42 }
 0x538   : > { %v1200_v13 = vpop.permute.xlu0 %1199 }
 0x539   : > { %v1198_v43 = vpop.permute.xlu1 %1197  ;;  %v1222_v29 = vadd.f32 %v1200_v13, %v1154_v0 }
 0x53a   : > { %v1221_v38 = vadd.f32 %v1198_v43, %v1153_v11 }
 0x53b   : > { %v1270_v17 = vadd.f32 %v1998_v4, %v1222_v29 }
 0x53c   : > { %v1269_v49 = vadd.f32 %v1998_v4, %v1221_v38  ;;  %v1204_v22 = vpop.permute.xlu0 %1203 }
 0x53d   : > { %v1202_v54 = vpop.permute.xlu1 %1201  ;;  %1279 = vst.msk [vmem:[%s2277_s4 + $0x8] sm:$0xff] %vm1277_vm8, %v1270_v17  ;;  %v1224_v21 = vadd.f32 %v1204_v22, %v1156_v47 }
 0x53e   : > { %1278 = vst.msk [vmem:[%s2277_s4] sm:$0xff] %vm1277_vm8, %v1269_v49  ;;  %v1223_v55 = vadd.f32 %v1202_v54, %v1155_v19 }
 0x53f   : > { %v1272_v56 = vadd.f32 %v1994_v2, %v1224_v21 }
 0x540   : > { %v1271_v14 = vadd.f32 %v1994_v2, %v1223_v55  ;;  %v1208_v32 = vpop.permute.xlu0 %1207 }
 0x541   : > { %v1206_v58 = vpop.permute.xlu1 %1205  ;;  %1281 = vst.msk [vmem:[%s2277_s4 + $0x18] sm:$0xff] %vm1277_vm8, %v1272_v56  ;;  %v1226_v33 = vadd.f32 %v1208_v32, %v1158_v24 }
 0x542   : > { %1280 = vst.msk [vmem:[%s2277_s4 + $0x10] sm:$0xff] %vm1277_vm8, %v1271_v14  ;;  %v1225_v4 = vadd.f32 %v1206_v58, %v1157_v18 }
 0x543   : > { %v1274_v36 = vadd.f32 %v2006_v5, %v1226_v33 }
 0x544   : > { %v1273_v28 = vadd.f32 %v2006_v5, %v1225_v4  ;;  %v1212_v9 = vpop.permute.xlu0 %1211 }
 0x545   : > { %v1210_v51 = vpop.permute.xlu1 %1209  ;;  %1283 = vst.msk [vmem:[%s2277_s4 + $0x28] sm:$0xff] %vm1277_vm8, %v1274_v36  ;;  %v1228_v48 = vadd.f32 %v1212_v9, %v1160_v30 }
 0x546   : > { %1282 = vst.msk [vmem:[%s2277_s4 + $0x20] sm:$0xff] %vm1277_vm8, %v1273_v28  ;;  %v1227_v2 = vadd.f32 %v1210_v51, %v1159_v27 }
 0x547   : > { %v1276_v3 = vadd.f32 %v2008_v6, %v1228_v48 }
 0x548   : > { %v1275_v34 = vadd.f32 %v2008_v6, %v1227_v2 }
 0x549   : > { %1285 = vst.msk [vmem:[%s2277_s4 + $0x38] sm:$0xff] %vm1277_vm8, %v1276_v3 }
 0x54a   : > { %1284 = vst.msk [vmem:[%s2277_s4 + $0x30] sm:$0xff] %vm1277_vm8, %v1275_v34 }
 0x54b PF: > { %s13_s12 = sadd.s32 1, %s1470_s12  }
 0x54c   : > { %p10_p4 = scmp.ge.s32.totalorder %s13_s12, 4  }
 0x54e   :  { %12 = sbr.rel (!%p10_p4) target bundleno = 2 (0x2), region = 62 }

// kernel: dafm_forward.9
= control target key start
LH: loop header
LB: loop body
LE: loop exit
PB: predicated region body
PF: predicated region fallthrough
CT: control target
= control target key end

     0   :  { %s1208_s24 = smov 0   ;;  %s1210_s25 = smov 0   ;;  %s1285_s0 = inlined_call_operand.vmem [shape: f32[2,16,256], index: 0, kind: input, shape index: {}]   ;;  %s1286_s1 = inlined_call_operand.vmem [shape: f32[2,4,256], index: 1, kind: input, shape index: {}]   ;;  %s1287_s2 = inlined_call_operand.vmem [shape: f32[2,4,256], index: 2, kind: input, shape index: {}]   ;;  %s1288_s3 = inlined_call_operand.vmem [shape: f32[2,4,256], index: 3, kind: input, shape index: {}]   ;;  %s1289_s4 = inlined_call_operand.vmem [shape: f32[2,4,256], index: 4, kind: input, shape index: {}]   ;;  %s1290_s5 = inlined_call_operand.vmem [shape: f32[16,16], index: 5, kind: input, shape index: {}]   ;;  %s1291_s6 = inlined_call_operand.vmem [shape: f32[16,1], index: 6, kind: input, shape index: {}]   ;;  %s1292_s7 = inlined_call_operand.vmem [shape: f32[2,16,256], index: 7, kind: output, shape index: {}]  }
   0x1   :  { %s1212_s26 = smov 0  }
   0x2 LB: > { %s29_s27 = sadd.s32 1, %s1157_s25  ;;  %p1059_p0 = scmp.ge.s32.totalorder %s1161_s26, 1  ;;  %s1161_s26 = sphi %s1212_s26, %s17_s26   ;;  %s1157_s25 = sphi %s1210_s25, %s1294_s25   ;;  %s1153_s24 = sphi %s1208_s24, %s1293_s24  }
   0x3   : > { %p31_p1 = scmp.ge.s32.totalorder %s29_s27, 2  ;;  %p326_p2 = scmp.lt.s32.totalorder %s1161_s26, 3 }
   0x5   : > { %s1296_s27 = smov (%p31_p1, %s29_s27), 0  ;;  %p327_p3 = pnand %p1059_p0, %p326_p2 }
   0x6   : > { %s1163_s30 = smov (!%p327_p3), 124   ;;  %s1164_s8 = smov (!%p327_p3), 120  }
   0x7   : > { %330 = sbr.rel (%p327_p3) target bundleno = 364 (0x16c), region = 48  ;;  %p403_p4 = scmp.lt.s32.totalorder (!%p327_p3), %s1153_s24, 1 }
   0x8   : > { %s1167_s11 = smov (!%p327_p3), 116  }
   0xc   : > { %v462_v0 = vld [vmem:[%s1290_s5] sm:$0xff]  ;;  %v463_v1 = vld [vmem:[%s1290_s5 + $0x8] sm:$0xff]  ;;  %v1165_v2 = vmov 0.0   ;;  %s1298_s24 = smov (!%p403_p4, %s1153_s24), 1  ;;  %v1166_v3 = vmov 0   ;;  %vm479_vm0 = vcmask 1043456  }
   0xd   : > { %468 = vrot.lane.b32.xlu0 %v462_v0, %s1163_s30  ;;  %653 = vrot.lane.b32.xlu1 %v462_v0, %s1164_s8  ;;  %s1091_s12 = sshll.u32 %s1298_s24, 3  ;;  %vm474_vm1 = vcmask 31744   ;;  %v848_v12 = vld [vmem:[%s1291_s6] sm:$0xff]  ;;  %v849_v13 = vld [vmem:[%s1291_s6 + $0x8] sm:$0xff]  ;;  %s1090_s10 = sshll.u32 %s1298_s24, 5 }
   0xe   : > { %548 = vmatprep.mubr.f32.mxu0 %v1165_v2  ;;  %635 = vmatprep.mubr.f32.mxu1 %v1165_v2  ;;  %s430_s15 = scalar_lea.vmem %s1287_s2, %s1091_s12  ;;  %s420_s18 = scalar_lea.vmem %s1286_s1, %s1091_s12 }
   0xf   : > { %1125 = vset.pattern.permute.xlu0 %v1166_v3  ;;  %1126 = vset.pattern.permute.xlu1 %v1166_v3  ;;  %v465_v4 = vld [vmem:[%s430_s15] sm:$0xff]  ;;  %s440_s21 = scalar_lea.vmem %s1288_s3, %s1091_s12  ;;  %s450_s28 = scalar_lea.vmem %s1289_s4, %s1091_s12 }
  0x10   : > { %v473_v5 = vcombine.high %v465_v4, %v465_v4  ;;  %v464_v6 = vld [vmem:[%s420_s18] sm:$0xff]  ;;  %s410_s13 = scalar_lea.vmem %s1285_s0, %s1090_s10  ;;  %s460_s16 = scalar_lea.vmem %s1292_s7, %s1090_s10 }
  0x11   : > { %470 = vrot.lane.b32.xlu0 %v463_v1, %s1163_s30  ;;  %753 = vrot.lane.b32.xlu1 %v462_v0, %s1167_s11  ;;  %v650_v7 = vld [vmem:[%s440_s21] sm:$0xff]  ;;  %v562_v8 = vcombine.high %v464_v6, %v464_v6  ;;  %v885_v3 = vld [vmem:[%s410_s13 + $0x8] sm:$0xff] }
  0x12   : > { %v658_v9 = vcombine.high %v650_v7, %v650_v7  ;;  %v750_v10 = vld [vmem:[%s450_s28] sm:$0xff]  ;;  %1072 = vmatprep.subr.msk.mxu0 %vm479_vm0, %v473_v5 }
  0x13   : > { %v758_v11 = vcombine.high %v750_v10, %v750_v10  ;;  %1073 = vmatpush1.msk.msra.mxu0 %vm479_vm0, %v465_v4  ;;  %1076 = vmatprep.subr.msk.mxu1 %vm479_vm0, %v562_v8  ;;  %v884_v62 = vld [vmem:[%s410_s13] sm:$0xff]  ;;  %v886_v8 = vld [vmem:[%s410_s13 + $0x10] sm:$0xff] }
  0x14   : > { %1077 = vmatpush1.msk.msra.mxu1 %vm479_vm0, %v464_v6  ;;  %1080 = vmatprep.subr.msk.mxu0 %vm479_vm0, %v658_v9 }
  0x15   : > { %755 = vrot.lane.b32.xlu1 %v463_v1, %s1167_s11  ;;  %655 = vrot.lane.b32.xlu0 %v463_v1, %s1164_s8 }
  0x16   : > { %1078 = vmatmul.mubr.msk.f32.vlgmr.msra.gmra.mxu1 %vm474_vm1, %v462_v0  ;;  %1084 = vmatprep.subr.msk.mxu1 %vm479_vm0, %v758_v11 }
  0x17   : > { %1085 = vmatpush1.msk.msra.mxu1 %vm479_vm0, %v750_v10  ;;  %641 = vmatprep.mubr.f32.mxu1 %v1165_v2 }
  0x19   : > { %852 = vperm.xlu0 %1125, %v848_v12   ;;  %857 = vperm.xlu1 %1126, %v849_v13  }
  0x1a   : > { %1079 = vmatmul.mubr.msk.f32.gmra.mxu1 %vm474_vm1, %v463_v1 }
  0x1b   : > { %831 = vmatprep.mubr.f32.mxu1 %v1165_v2 }
  0x7f   : > { %v469_v14 = vpop.permute.xlu0 %468  ;;  %v654_v15 = vpop.permute.xlu1 %653 }
  0x80   : > { %1074 = vmatmul.mubr.msk.f32.vlgmr.msra.gmra.mxu0 %vm474_vm1, %v469_v14  ;;  %v887_v14 = vld [vmem:[%s410_s13 + $0x18] sm:$0xff] }
  0x81   : > { %1081 = vmatpush1.msk.msra.mxu0 %vm479_vm0, %v650_v7  ;;  %554 = vmatprep.mubr.f32.mxu0 %v1165_v2 }
  0x83   : > { %v471_v16 = vpop.permute.xlu0 %470  ;;  %v754_v17 = vpop.permute.xlu1 %753 }
  0x84   : > { %1075 = vmatmul.mubr.msk.f32.gmra.mxu0 %vm474_vm1, %v471_v16  ;;  %1086 = vmatmul.mubr.msk.f32.vlgmr.msra.gmra.mxu1 %vm474_vm1, %v754_v17 }
  0x85   : > { %731 = vmatprep.mubr.f32.mxu0 %v1165_v2  ;;  %837 = vmatprep.mubr.f32.mxu1 %v1165_v2 }
  0x87   : > { %v756_v18 = vpop.permute.xlu1 %755  ;;  %v656_v19 = vpop.permute.xlu0 %655 }
  0x88   : > { %1082 = vmatmul.mubr.msk.f32.vlgmr.msra.gmra.mxu0 %vm474_vm1, %v654_v15  ;;  %1087 = vmatmul.mubr.msk.f32.gmra.mxu1 %vm474_vm1, %v756_v18 }
  0x89   : > { %737 = vmatprep.mubr.f32.mxu0 %v1165_v2 }
  0x8c   : > { %1083 = vmatmul.mubr.msk.f32.gmra.mxu0 %vm474_vm1, %v656_v19 }
  0x94   : > { %v853_v35 = vpop.permute.xlu0 %852  ;;  %v858_v46 = vpop.permute.xlu1 %857 }
  0xd6   : > { %v637_v20 = vpop.f32.mrf.mxu1 }
  0xd8   : > { %v639_v21 = vpop.f32.mrf.mxu1 }
  0xda   : > { %v643_v22 = vpop.f32.mrf.mxu1 }
  0xdc   : > { %v645_v24 = vpop.f32.mrf.mxu1 }
 0x140   : > { %v550_v23 = vpop.f32.mrf.mxu0 }
 0x141   : > { %v638_v29 = vadd.f32 %v637_v20, %v550_v23 }
 0x142   : > { %v552_v25 = vpop.f32.mrf.mxu0 }
 0x143   : > { %v640_v31 = vadd.f32 %v639_v21, %v552_v25 }
 0x144   : > { %v556_v26 = vpop.f32.mrf.mxu0  ;;  %v833_v27 = vpop.f32.mrf.mxu1 }
 0x145   : > { %v644_v36 = vadd.f32 %v643_v22, %v556_v26 }
 0x146   : > { %v558_v28 = vpop.f32.mrf.mxu0  ;;  %v835_v33 = vpop.f32.mrf.mxu1 }
 0x147   : > { %v646_v44 = vadd.f32 %v645_v24, %v558_v28 }
 0x148   : > { %v733_v30 = vpop.f32.mrf.mxu0  ;;  %v839_v43 = vpop.f32.mrf.mxu1 }
 0x149   : > { %v744_v32 = vadd.f32 %v733_v30, %v638_v29 }
 0x14a   : > { %v735_v34 = vpop.f32.mrf.mxu0  ;;  %v841_v52 = vpop.f32.mrf.mxu1 }
 0x14b   : > { %v844_v37 = vadd.f32 %v833_v27, %v744_v32  ;;  %v745_v38 = vadd.f32 %v735_v34, %v640_v31 }
 0x14c   : > { %v739_v39 = vpop.f32.mrf.mxu0 }
 0x14d   : > { %v845_v40 = vadd.f32 %v835_v33, %v745_v38  ;;  %v860_v41 = vadd.f32 %v853_v35, %v844_v37  ;;  %v746_v42 = vadd.f32 %v739_v39, %v644_v36 }
 0x14e   : > { %v741_v45 = vpop.f32.mrf.mxu0 }
 0x14f   : > { %v861_v47 = vadd.f32 %v853_v35, %v845_v40  ;;  %v868_v48 = vmul.f32 0.70710677, %v860_v41  ;;  %v846_v49 = vadd.f32 %v839_v43, %v746_v42  ;;  %v747_v50 = vadd.f32 %v741_v45, %v646_v44 }
 0x150   : > { %v864_v59 = vmul.f32 0.5, %v860_v41 }
 0x151   : > { %v869_v51 = vmul.f32 0.70710677, %v861_v47  ;;  %1131 = verf.f32 %v868_v48  ;;  %v862_v53 = vadd.f32 %v858_v46, %v846_v49  ;;  %v847_v54 = vadd.f32 %v841_v52, %v747_v50 }
 0x152   : > { %v865_v63 = vmul.f32 0.5, %v861_v47 }
 0x153   : > { %1133 = verf.f32 %v869_v51  ;;  %v870_v55 = vmul.f32 0.70710677, %v862_v53  ;;  %v863_v56 = vadd.f32 %v858_v46, %v847_v54  ;;  %v866_v6 = vmul.f32 0.5, %v862_v53 }
 0x155   : > { %1135 = verf.f32 %v870_v55  ;;  %v871_v57 = vmul.f32 0.70710677, %v863_v56  ;;  %v867_v12 = vmul.f32 0.5, %v863_v56 }
 0x157   : > { %1137 = verf.f32 %v871_v57 }
 0x15e   : > { %v1132_v58 = vpop.eup %1131 }
 0x15f   : > { %v876_v60 = vadd.f32 1.0, %v1132_v58 }
 0x160   : > { %v1134_v61 = vpop.eup %1133 }
 0x161   : > { %v877_v0 = vadd.f32 1.0, %v1134_v61  ;;  %v880_v1 = vmul.f32 %v876_v60, %v864_v59 }
 0x162   : > { %v1136_v2 = vpop.eup %1135 }
 0x163   : > { %v881_v4 = vmul.f32 %v877_v0, %v865_v63  ;;  %v888_v5 = vmul.f32 %v884_v62, %v880_v1  ;;  %v878_v7 = vadd.f32 1.0, %v1136_v2 }
 0x164   : > { %v1138_v9 = vpop.eup %1137 }
 0x165   : > { %v889_v10 = vmul.f32 %v885_v3, %v881_v4  ;;  %892 = vst [vmem:[%s460_s16] sm:$0xff] %v888_v5  ;;  %v882_v11 = vmul.f32 %v878_v7, %v866_v6  ;;  %v879_v13 = vadd.f32 1.0, %v1138_v9 }
 0x167   : > { %893 = vst [vmem:[%s460_s16 + $0x8] sm:$0xff] %v889_v10  ;;  %v890_v15 = vmul.f32 %v886_v8, %v882_v11  ;;  %v883_v16 = vmul.f32 %v879_v13, %v867_v12 }
 0x169   : > { %894 = vst [vmem:[%s460_s16 + $0x10] sm:$0xff] %v890_v15  ;;  %v891_v17 = vmul.f32 %v887_v14, %v883_v16 }
 0x16b   : > { %895 = vst [vmem:[%s460_s16 + $0x18] sm:$0xff] %v891_v17 }
 0x16c PF: > { %s17_s26 = sadd.s32 1, %s1161_s26   ;;  %s1293_s24 = smov %s1157_s25 }
 0x16d   : > { %p14_p5 = scmp.ge.s32.totalorder %s17_s26, 4   ;;  %s1294_s25 = smov %s1296_s27 }
 0x16f   :  { %16 = sbr.rel (!%p14_p5) target bundleno = 2 (0x2), region = 90 }

</bundles_post_ra>
